<compile_context>
chip_gen: v7x
topology: tpu7x:2x2x1
jax: 0.10.0
libtpu: 0.0.40
codegen_flags: <defaults>
</compile_context>

<pallas_src>
import functools

import numpy as np
import jax
import jax.numpy as jnp
from jax import lax
from jax.experimental import pallas as pl
from jax.experimental.pallas import tpu as pltpu


def _round_up(v, m):
    return (v + m - 1) // m * m


# ------------------------------ Pallas kernel -------------------------------

def _make_kernel(*, rows, k, stride, w_out, cout_p):
    halo = (rows - 1) * stride + k

    def kernel(row_ids_ref, *refs):
        # refs = halo input-row refs, weight ref, bias ref, output ref.
        del row_ids_ref                    # consumed by the index_maps only
        x_refs = refs[:halo]
        w_ref = refs[halo]                 # (K, K*Cin_p, Cout_p) bf16
        b_ref = refs[halo + 1]             # (1, Cout_p) f32
        o_ref = refs[halo + 2]             # (1, ROWS, W_out, Cout_p) f32

        # Hoisted bias broadcast (f32), reused for every output row.
        bias = jnp.broadcast_to(b_ref[...], (w_out, cout_p))

        def row_lhs(xr):
            # Build the (W_out, K*Cin_p) LHS by concatenating kx-shifted
            # windows along lanes (Cin_p is a multiple of 128 -> cheap).
            wins = []
            for kx in range(k):
                if stride == 1:
                    wins.append(xr[0, 0, pl.ds(kx, w_out), :])
                else:
                    # stride > 1: strided ds handled in addressing.
                    wins.append(xr[0, 0, pl.ds(kx, w_out, stride), :])
            return jnp.concatenate(wins, axis=-1)

        for j in range(rows):              # static unroll over output rows
            acc = bias                     # f32 register accumulator
            for kh in range(k):
                lhs = row_lhs(x_refs[j * stride + kh])
                acc = acc + jnp.dot(lhs, w_ref[kh],
                                    preferred_element_type=jnp.float32)
            o_ref[0, j, :, :] = acc.astype(o_ref.dtype)

    return kernel, halo


# ------------------------------- wrapper -------------------------------------

def upsample_conv_forward(x_nchw, weight, bias, *, kernel_size, stride,
                          upsample=None, rows=8):
    """Forward of UpsampleConvLayer.

    x_nchw : (N, Cin, H, W) float32
    weight : (Cout, Cin, K, K) PyTorch Conv2d layout
    bias   : (Cout,)
    """
    up = int(upsample) if upsample else 1
    k = int(kernel_size)
    stride = int(stride)
    p = k // 2

    n, cin, h, w = x_nchw.shape
    cout = weight.shape[0]
    h_up, w_up = h * up, w * up
    h_out = (h_up + 2 * p - k) // stride + 1
    w_out = (w_up + 2 * p - k) // stride + 1

    cin_p = _round_up(cin, 128)
    cout_p = _round_up(cout, 128)

    rows = max(1, min(rows, h_out))
    h_out_pad = _round_up(h_out, rows)
    n_tiles = h_out_pad // rows

    # ---- XLA glue: NHWC, W-direction nearest upsample + reflection pad, ----
    # ---- bf16 cast and lane padding of channels.                        ----
    x = jnp.transpose(x_nchw, (0, 2, 3, 1))                    # (N, H, W, Cin)
    if up > 1:
        x = jnp.repeat(x, up, axis=2)
    if p > 0:
        x = jnp.pad(x, ((0, 0), (0, 0), (p, p), (0, 0)), mode="reflect")
    x = x.astype(jnp.bfloat16)
    if cin_p != cin:
        x = jnp.pad(x, ((0, 0), (0, 0), (0, 0), (0, cin_p - cin)))
    wp = x.shape[2]                                            # W*up + 2p

    # Row table: padded+upsampled row index -> source row of x along H.
    pr = np.arange((h_out_pad - 1) * stride + k)
    u = np.abs(pr - p)
    u = np.where(u >= h_up, 2 * h_up - 2 - u, u)
    u = np.clip(u, 0, h_up - 1)                 # clamp synthetic pad rows
    row_ids = jnp.asarray(u // up, dtype=jnp.int32)

    # Weights packed as (K, K*Cin_p, Cout_p) bf16 so the KW taps fold into a
    # single >=256-deep contraction per (row, kh). Bias -> (1, Cout_p) f32.
    w_hwio = jnp.transpose(weight, (2, 3, 1, 0))               # (K, K, Cin, Cout)
    w_hwio = jnp.pad(w_hwio, ((0, 0), (0, 0),
                              (0, cin_p - cin), (0, cout_p - cout)))
    w_packed = w_hwio.reshape(k, k * cin_p, cout_p).astype(jnp.bfloat16)
    b_pad = jnp.pad(bias.astype(jnp.float32),
                    (0, cout_p - cout)).reshape(1, cout_p)

    kernel, halo = _make_kernel(rows=rows, k=k, stride=stride,
                                w_out=w_out, cout_p=cout_p)

    def make_x_spec(hj):
        # One padded+upsampled source row per halo slot; the H-direction
        # upsample + reflection pad is purely the SMEM row table.
        return pl.BlockSpec(
            (1, 1, wp, cin_p),
            lambda ni, ti, rid, hj=hj: (ni, rid[ti * rows * stride + hj], 0, 0))

    in_specs = [make_x_spec(hj) for hj in range(halo)]
    # Weight slab: constant block index -> stays resident in VMEM.
    in_specs.append(pl.BlockSpec((k, k * cin_p, cout_p),
                                 lambda ni, ti, rid: (0, 0, 0)))
    in_specs.append(pl.BlockSpec((1, cout_p), lambda ni, ti, rid: (0, 0)))

    grid_spec = pltpu.PrefetchScalarGridSpec(
        num_scalar_prefetch=1,
        grid=(n, n_tiles),
        in_specs=in_specs,
        out_specs=pl.BlockSpec((1, rows, w_out, cout_p),
                               lambda ni, ti, rid: (ni, ti, 0, 0)),
    )

    out = pl.pallas_call(
        kernel,
        out_shape=jax.ShapeDtypeStruct((n, h_out_pad, w_out, cout_p),
                                       jnp.float32),
        grid_spec=grid_spec,
        compiler_params=pltpu.CompilerParams(
            # No reduction axis left: both axes parallel (v7x megacore split).
            dimension_semantics=("parallel", "parallel"),
            vmem_limit_bytes=32 * 1024 * 1024),
    )(row_ids, *([x] * halo), w_packed, b_pad)

    if h_out_pad != h_out:
        out = out[:, :h_out]
    if cout_p != cout:
        out = out[..., :cout]
    return jnp.transpose(out, (0, 3, 1, 2))                    # back to NCHW


# ------------------------ pure-JAX reference (check) -------------------------

def reference_forward(x_nchw, weight, bias, *, kernel_size, stride,
                      upsample=None):
    # Matches the kernel's bf16 MXU operands / f32 accumulation.
    x = jnp.transpose(x_nchw, (0, 2, 3, 1))
    x = x.astype(jnp.bfloat16).astype(jnp.float32)
    up = int(upsample) if upsample else 1
    if up > 1:
        x = jnp.repeat(jnp.repeat(x, up, axis=1), up, axis=2)
    p = kernel_size // 2
    if p > 0:
        x = jnp.pad(x, ((0, 0), (p, p), (p, p), (0, 0)), mode="reflect")
    w_hwio = jnp.transpose(weight, (2, 3, 1, 0))
    w_hwio = w_hwio.astype(jnp.bfloat16).astype(jnp.float32)
    y = lax.conv_general_dilated(
        x, w_hwio, (stride, stride), "VALID",
        dimension_numbers=("NHWC", "HWIO", "NHWC"),
        precision=lax.Precision.HIGHEST,
    ) + bias.astype(jnp.float32).reshape(1, 1, 1, -1)
    return jnp.transpose(y, (0, 3, 1, 2))


# ----------------------------------- main ------------------------------------

if __name__ == "__main__":
    key = jax.random.PRNGKey(0)
    kx_, kw_, kb_ = jax.random.split(key, 3)

    N, CIN, COUT, H, W = 2, 4, 8, 16, 16
    K, STRIDE = 3, 1

    x = jax.random.normal(kx_, (N, CIN, H, W), jnp.float32)
    weight = 0.1 * jax.random.normal(kw_, (COUT, CIN, K, K), jnp.float32)
    bias = 0.1 * jax.random.normal(kb_, (COUT,), jnp.float32)

    for upsample in (2, None):   # with and without nearest-upsample
        fwd = jax.jit(functools.partial(upsample_conv_forward,
                                        kernel_size=K, stride=STRIDE,
                                        upsample=upsample))
        out = jax.block_until_ready(fwd(x, weight, bias))
        up = upsample or 1
        assert out.shape == (N, COUT, H * up, W * up), out.shape

        ref = jax.block_until_ready(
            reference_forward(x, weight, bias, kernel_size=K, stride=STRIDE,
                              upsample=upsample))
        if not jnp.allclose(out, ref, rtol=2e-3, atol=2e-3):
            raise AssertionError(
                f"mismatch (upsample={upsample}): "
                f"max abs diff = {float(jnp.max(jnp.abs(out - ref)))}")

    print("KERNEL_OK")
</pallas_src>

<mosaic_0001>
module attributes {stable_mosaic.version = 11 : i64} {
  func.func @kernel(%arg0: i32, %arg1: i32, %arg2: memref<34xi32, #tpu.memory_space<smem>>, %arg3: memref<1x1x34x128xbf16, #tpu.memory_space<vmem>>, %arg4: memref<1x1x34x128xbf16, #tpu.memory_space<vmem>>, %arg5: memref<1x1x34x128xbf16, #tpu.memory_space<vmem>>, %arg6: memref<1x1x34x128xbf16, #tpu.memory_space<vmem>>, %arg7: memref<1x1x34x128xbf16, #tpu.memory_space<vmem>>, %arg8: memref<1x1x34x128xbf16, #tpu.memory_space<vmem>>, %arg9: memref<1x1x34x128xbf16, #tpu.memory_space<vmem>>, %arg10: memref<1x1x34x128xbf16, #tpu.memory_space<vmem>>, %arg11: memref<1x1x34x128xbf16, #tpu.memory_space<vmem>>, %arg12: memref<1x1x34x128xbf16, #tpu.memory_space<vmem>>, %arg13: memref<3x384x128xbf16, #tpu.memory_space<vmem>>, %arg14: memref<1x128xf32, #tpu.memory_space<vmem>>, %arg15: memref<1x8x32x128xf32, #tpu.memory_space<vmem>>) attributes {dimension_semantics = [#tpu.dimension_semantics<parallel>, #tpu.dimension_semantics<parallel>], iteration_bounds = array<i64: 2, 4>, scalar_prefetch = 1 : i64, scratch_operands = 0 : i64, tpu.core_type = #tpu.core_type<tc>, window_params = [{transform_indices = @transform_0, window_bounds = array<i64: 1, 1, 34, 128>}, {transform_indices = @transform_1, window_bounds = array<i64: 1, 1, 34, 128>}, {transform_indices = @transform_2, window_bounds = array<i64: 1, 1, 34, 128>}, {transform_indices = @transform_3, window_bounds = array<i64: 1, 1, 34, 128>}, {transform_indices = @transform_4, window_bounds = array<i64: 1, 1, 34, 128>}, {transform_indices = @transform_5, window_bounds = array<i64: 1, 1, 34, 128>}, {transform_indices = @transform_6, window_bounds = array<i64: 1, 1, 34, 128>}, {transform_indices = @transform_7, window_bounds = array<i64: 1, 1, 34, 128>}, {transform_indices = @transform_8, window_bounds = array<i64: 1, 1, 34, 128>}, {transform_indices = @transform_9, window_bounds = array<i64: 1, 1, 34, 128>}, {pipeline_mode = #tpu.pipeline_mode<synchronous>, transform_indices = @transform_10, window_bounds = array<i64: 3, 384, 128>}, {pipeline_mode = #tpu.pipeline_mode<synchronous>, transform_indices = @transform_11, window_bounds = array<i64: 1, 128>}, {transform_indices = @transform_12, window_bounds = array<i64: 1, 8, 32, 128>}]} {
    %c0 = arith.constant 0 : index
    %c0_0 = arith.constant 0 : index
    %0 = vector.load %arg14[%c0, %c0_0] : memref<1x128xf32, #tpu.memory_space<vmem>>, vector<1x128xf32>
    %1 = vector.shape_cast %0 : vector<1x128xf32> to vector<1x128xf32>
    %2 = vector.broadcast %1 : vector<1x128xf32> to vector<32x128xf32>
    %c0_1 = arith.constant 0 : index
    %c0_2 = arith.constant 0 : index
    %c0_3 = arith.constant 0 : index
    %c0_4 = arith.constant 0 : index
    %3 = vector.load %arg3[%c0_1, %c0_2, %c0_3, %c0_4] : memref<1x1x34x128xbf16, #tpu.memory_space<vmem>>, vector<1x1x32x128xbf16>
    %4 = vector.shape_cast %3 : vector<1x1x32x128xbf16> to vector<32x128xbf16>
    %c0_5 = arith.constant 0 : index
    %c0_6 = arith.constant 0 : index
    %c1 = arith.constant 1 : index
    %c0_7 = arith.constant 0 : index
    %5 = vector.load %arg3[%c0_5, %c0_6, %c1, %c0_7] : memref<1x1x34x128xbf16, #tpu.memory_space<vmem>>, vector<1x1x32x128xbf16>
    %6 = vector.shape_cast %5 : vector<1x1x32x128xbf16> to vector<32x128xbf16>
    %c0_8 = arith.constant 0 : index
    %c0_9 = arith.constant 0 : index
    %c2 = arith.constant 2 : index
    %c0_10 = arith.constant 0 : index
    %7 = vector.load %arg3[%c0_8, %c0_9, %c2, %c0_10] : memref<1x1x34x128xbf16, #tpu.memory_space<vmem>>, vector<1x1x32x128xbf16>
    %8 = vector.shape_cast %7 : vector<1x1x32x128xbf16> to vector<32x128xbf16>
    %9 = tpu.concatenate %4, %6, %8 in 1 : vector<32x128xbf16>, vector<32x128xbf16>, vector<32x128xbf16> -> vector<32x384xbf16>
    %c0_11 = arith.constant 0 : index
    %c0_12 = arith.constant 0 : index
    %c0_13 = arith.constant 0 : index
    %10 = vector.load %arg13[%c0_11, %c0_12, %c0_13] : memref<3x384x128xbf16, #tpu.memory_space<vmem>>, vector<1x384x128xbf16>
    %11 = vector.shape_cast %10 : vector<1x384x128xbf16> to vector<384x128xbf16>
    %cst = arith.constant dense<0.000000e+00> : vector<32x128xf32>
    %12 = tpu.matmul %9, %11, %cst {dimension_numbers = #tpu.dot_dimension_numbers<[1], [0], [0], [1], [0, 0, 1, 1], [], []>} : vector<32x384xbf16>, vector<384x128xbf16>, vector<32x128xf32> -> vector<32x128xf32>
    %13 = arith.addf %2, %12 : vector<32x128xf32>
    %c0_14 = arith.constant 0 : index
    %c0_15 = arith.constant 0 : index
    %c0_16 = arith.constant 0 : index
    %c0_17 = arith.constant 0 : index
    %14 = vector.load %arg4[%c0_14, %c0_15, %c0_16, %c0_17] : memref<1x1x34x128xbf16, #tpu.memory_space<vmem>>, vector<1x1x32x128xbf16>
    %15 = vector.shape_cast %14 : vector<1x1x32x128xbf16> to vector<32x128xbf16>
    %c0_18 = arith.constant 0 : index
    %c0_19 = arith.constant 0 : index
    %c1_20 = arith.constant 1 : index
    %c0_21 = arith.constant 0 : index
    %16 = vector.load %arg4[%c0_18, %c0_19, %c1_20, %c0_21] : memref<1x1x34x128xbf16, #tpu.memory_space<vmem>>, vector<1x1x32x128xbf16>
    %17 = vector.shape_cast %16 : vector<1x1x32x128xbf16> to vector<32x128xbf16>
    %c0_22 = arith.constant 0 : index
    %c0_23 = arith.constant 0 : index
    %c2_24 = arith.constant 2 : index
    %c0_25 = arith.constant 0 : index
    %18 = vector.load %arg4[%c0_22, %c0_23, %c2_24, %c0_25] : memref<1x1x34x128xbf16, #tpu.memory_space<vmem>>, vector<1x1x32x128xbf16>
    %19 = vector.shape_cast %18 : vector<1x1x32x128xbf16> to vector<32x128xbf16>
    %20 = tpu.concatenate %15, %17, %19 in 1 : vector<32x128xbf16>, vector<32x128xbf16>, vector<32x128xbf16> -> vector<32x384xbf16>
    %c1_26 = arith.constant 1 : index
    %c0_27 = arith.constant 0 : index
    %c0_28 = arith.constant 0 : index
    %21 = vector.load %arg13[%c1_26, %c0_27, %c0_28] : memref<3x384x128xbf16, #tpu.memory_space<vmem>>, vector<1x384x128xbf16>
    %22 = vector.shape_cast %21 : vector<1x384x128xbf16> to vector<384x128xbf16>
    %cst_29 = arith.constant dense<0.000000e+00> : vector<32x128xf32>
    %23 = tpu.matmul %20, %22, %cst_29 {dimension_numbers = #tpu.dot_dimension_numbers<[1], [0], [0], [1], [0, 0, 1, 1], [], []>} : vector<32x384xbf16>, vector<384x128xbf16>, vector<32x128xf32> -> vector<32x128xf32>
    %24 = arith.addf %13, %23 : vector<32x128xf32>
    %c0_30 = arith.constant 0 : index
    %c0_31 = arith.constant 0 : index
    %c0_32 = arith.constant 0 : index
    %c0_33 = arith.constant 0 : index
    %25 = vector.load %arg5[%c0_30, %c0_31, %c0_32, %c0_33] : memref<1x1x34x128xbf16, #tpu.memory_space<vmem>>, vector<1x1x32x128xbf16>
    %26 = vector.shape_cast %25 : vector<1x1x32x128xbf16> to vector<32x128xbf16>
    %c0_34 = arith.constant 0 : index
    %c0_35 = arith.constant 0 : index
    %c1_36 = arith.constant 1 : index
    %c0_37 = arith.constant 0 : index
    %27 = vector.load %arg5[%c0_34, %c0_35, %c1_36, %c0_37] : memref<1x1x34x128xbf16, #tpu.memory_space<vmem>>, vector<1x1x32x128xbf16>
    %28 = vector.shape_cast %27 : vector<1x1x32x128xbf16> to vector<32x128xbf16>
    %c0_38 = arith.constant 0 : index
    %c0_39 = arith.constant 0 : index
    %c2_40 = arith.constant 2 : index
    %c0_41 = arith.constant 0 : index
    %29 = vector.load %arg5[%c0_38, %c0_39, %c2_40, %c0_41] : memref<1x1x34x128xbf16, #tpu.memory_space<vmem>>, vector<1x1x32x128xbf16>
    %30 = vector.shape_cast %29 : vector<1x1x32x128xbf16> to vector<32x128xbf16>
    %31 = tpu.concatenate %26, %28, %30 in 1 : vector<32x128xbf16>, vector<32x128xbf16>, vector<32x128xbf16> -> vector<32x384xbf16>
    %c2_42 = arith.constant 2 : index
    %c0_43 = arith.constant 0 : index
    %c0_44 = arith.constant 0 : index
    %32 = vector.load %arg13[%c2_42, %c0_43, %c0_44] : memref<3x384x128xbf16, #tpu.memory_space<vmem>>, vector<1x384x128xbf16>
    %33 = vector.shape_cast %32 : vector<1x384x128xbf16> to vector<384x128xbf16>
    %cst_45 = arith.constant dense<0.000000e+00> : vector<32x128xf32>
    %34 = tpu.matmul %31, %33, %cst_45 {dimension_numbers = #tpu.dot_dimension_numbers<[1], [0], [0], [1], [0, 0, 1, 1], [], []>} : vector<32x384xbf16>, vector<384x128xbf16>, vector<32x128xf32> -> vector<32x128xf32>
    %35 = arith.addf %24, %34 : vector<32x128xf32>
    %c0_46 = arith.constant 0 : index
    %c0_47 = arith.constant 0 : index
    %c0_48 = arith.constant 0 : index
    %c0_49 = arith.constant 0 : index
    %36 = vector.load %arg15[%c0_46, %c0_47, %c0_48, %c0_49] : memref<1x8x32x128xf32, #tpu.memory_space<vmem>>, vector<1x1x32x128xf32>
    %37 = vector.shape_cast %36 : vector<1x1x32x128xf32> to vector<32x128xf32>
    %38 = vector.shape_cast %35 : vector<32x128xf32> to vector<1x1x32x128xf32>
    tpu.vector_store %arg15[%c0_46, %c0_47, %c0_48, %c0_49], %38 {strides = array<i32>} : memref<1x8x32x128xf32, #tpu.memory_space<vmem>>, vector<1x1x32x128xf32>,
    %c0_50 = arith.constant 0 : index
    %c0_51 = arith.constant 0 : index
    %c0_52 = arith.constant 0 : index
    %c0_53 = arith.constant 0 : index
    %39 = vector.load %arg4[%c0_50, %c0_51, %c0_52, %c0_53] : memref<1x1x34x128xbf16, #tpu.memory_space<vmem>>, vector<1x1x32x128xbf16>
    %40 = vector.shape_cast %39 : vector<1x1x32x128xbf16> to vector<32x128xbf16>
    %c0_54 = arith.constant 0 : index
    %c0_55 = arith.constant 0 : index
    %c1_56 = arith.constant 1 : index
    %c0_57 = arith.constant 0 : index
    %41 = vector.load %arg4[%c0_54, %c0_55, %c1_56, %c0_57] : memref<1x1x34x128xbf16, #tpu.memory_space<vmem>>, vector<1x1x32x128xbf16>
    %42 = vector.shape_cast %41 : vector<1x1x32x128xbf16> to vector<32x128xbf16>
    %c0_58 = arith.constant 0 : index
    %c0_59 = arith.constant 0 : index
    %c2_60 = arith.constant 2 : index
    %c0_61 = arith.constant 0 : index
    %43 = vector.load %arg4[%c0_58, %c0_59, %c2_60, %c0_61] : memref<1x1x34x128xbf16, #tpu.memory_space<vmem>>, vector<1x1x32x128xbf16>
    %44 = vector.shape_cast %43 : vector<1x1x32x128xbf16> to vector<32x128xbf16>
    %45 = tpu.concatenate %40, %42, %44 in 1 : vector<32x128xbf16>, vector<32x128xbf16>, vector<32x128xbf16> -> vector<32x384xbf16>
    %c0_62 = arith.constant 0 : index
    %c0_63 = arith.constant 0 : index
    %c0_64 = arith.constant 0 : index
    %46 = vector.load %arg13[%c0_62, %c0_63, %c0_64] : memref<3x384x128xbf16, #tpu.memory_space<vmem>>, vector<1x384x128xbf16>
    %47 = vector.shape_cast %46 : vector<1x384x128xbf16> to vector<384x128xbf16>
    %cst_65 = arith.constant dense<0.000000e+00> : vector<32x128xf32>
    %48 = tpu.matmul %45, %47, %cst_65 {dimension_numbers = #tpu.dot_dimension_numbers<[1], [0], [0], [1], [0, 0, 1, 1], [], []>} : vector<32x384xbf16>, vector<384x128xbf16>, vector<32x128xf32> -> vector<32x128xf32>
    %49 = arith.addf %2, %48 : vector<32x128xf32>
    %c0_66 = arith.constant 0 : index
    %c0_67 = arith.constant 0 : index
    %c0_68 = arith.constant 0 : index
    %c0_69 = arith.constant 0 : index
    %50 = vector.load %arg5[%c0_66, %c0_67, %c0_68, %c0_69] : memref<1x1x34x128xbf16, #tpu.memory_space<vmem>>, vector<1x1x32x128xbf16>
    %51 = vector.shape_cast %50 : vector<1x1x32x128xbf16> to vector<32x128xbf16>
    %c0_70 = arith.constant 0 : index
    %c0_71 = arith.constant 0 : index
    %c1_72 = arith.constant 1 : index
    %c0_73 = arith.constant 0 : index
    %52 = vector.load %arg5[%c0_70, %c0_71, %c1_72, %c0_73] : memref<1x1x34x128xbf16, #tpu.memory_space<vmem>>, vector<1x1x32x128xbf16>
    %53 = vector.shape_cast %52 : vector<1x1x32x128xbf16> to vector<32x128xbf16>
    %c0_74 = arith.constant 0 : index
    %c0_75 = arith.constant 0 : index
    %c2_76 = arith.constant 2 : index
    %c0_77 = arith.constant 0 : index
    %54 = vector.load %arg5[%c0_74, %c0_75, %c2_76, %c0_77] : memref<1x1x34x128xbf16, #tpu.memory_space<vmem>>, vector<1x1x32x128xbf16>
    %55 = vector.shape_cast %54 : vector<1x1x32x128xbf16> to vector<32x128xbf16>
    %56 = tpu.concatenate %51, %53, %55 in 1 : vector<32x128xbf16>, vector<32x128xbf16>, vector<32x128xbf16> -> vector<32x384xbf16>
    %c1_78 = arith.constant 1 : index
    %c0_79 = arith.constant 0 : index
    %c0_80 = arith.constant 0 : index
    %57 = vector.load %arg13[%c1_78, %c0_79, %c0_80] : memref<3x384x128xbf16, #tpu.memory_space<vmem>>, vector<1x384x128xbf16>
    %58 = vector.shape_cast %57 : vector<1x384x128xbf16> to vector<384x128xbf16>
    %cst_81 = arith.constant dense<0.000000e+00> : vector<32x128xf32>
    %59 = tpu.matmul %56, %58, %cst_81 {dimension_numbers = #tpu.dot_dimension_numbers<[1], [0], [0], [1], [0, 0, 1, 1], [], []>} : vector<32x384xbf16>, vector<384x128xbf16>, vector<32x128xf32> -> vector<32x128xf32>
    %60 = arith.addf %49, %59 : vector<32x128xf32>
    %c0_82 = arith.constant 0 : index
    %c0_83 = arith.constant 0 : index
    %c0_84 = arith.constant 0 : index
    %c0_85 = arith.constant 0 : index
    %61 = vector.load %arg6[%c0_82, %c0_83, %c0_84, %c0_85] : memref<1x1x34x128xbf16, #tpu.memory_space<vmem>>, vector<1x1x32x128xbf16>
    %62 = vector.shape_cast %61 : vector<1x1x32x128xbf16> to vector<32x128xbf16>
    %c0_86 = arith.constant 0 : index
    %c0_87 = arith.constant 0 : index
    %c1_88 = arith.constant 1 : index
    %c0_89 = arith.constant 0 : index
    %63 = vector.load %arg6[%c0_86, %c0_87, %c1_88, %c0_89] : memref<1x1x34x128xbf16, #tpu.memory_space<vmem>>, vector<1x1x32x128xbf16>
    %64 = vector.shape_cast %63 : vector<1x1x32x128xbf16> to vector<32x128xbf16>
    %c0_90 = arith.constant 0 : index
    %c0_91 = arith.constant 0 : index
    %c2_92 = arith.constant 2 : index
    %c0_93 = arith.constant 0 : index
    %65 = vector.load %arg6[%c0_90, %c0_91, %c2_92, %c0_93] : memref<1x1x34x128xbf16, #tpu.memory_space<vmem>>, vector<1x1x32x128xbf16>
    %66 = vector.shape_cast %65 : vector<1x1x32x128xbf16> to vector<32x128xbf16>
    %67 = tpu.concatenate %62, %64, %66 in 1 : vector<32x128xbf16>, vector<32x128xbf16>, vector<32x128xbf16> -> vector<32x384xbf16>
    %c2_94 = arith.constant 2 : index
    %c0_95 = arith.constant 0 : index
    %c0_96 = arith.constant 0 : index
    %68 = vector.load %arg13[%c2_94, %c0_95, %c0_96] : memref<3x384x128xbf16, #tpu.memory_space<vmem>>, vector<1x384x128xbf16>
    %69 = vector.shape_cast %68 : vector<1x384x128xbf16> to vector<384x128xbf16>
    %cst_97 = arith.constant dense<0.000000e+00> : vector<32x128xf32>
    %70 = tpu.matmul %67, %69, %cst_97 {dimension_numbers = #tpu.dot_dimension_numbers<[1], [0], [0], [1], [0, 0, 1, 1], [], []>} : vector<32x384xbf16>, vector<384x128xbf16>, vector<32x128xf32> -> vector<32x128xf32>
    %71 = arith.addf %60, %70 : vector<32x128xf32>
    %c0_98 = arith.constant 0 : index
    %c1_99 = arith.constant 1 : index
    %c0_100 = arith.constant 0 : index
    %c0_101 = arith.constant 0 : index
    %72 = vector.load %arg15[%c0_98, %c1_99, %c0_100, %c0_101] : memref<1x8x32x128xf32, #tpu.memory_space<vmem>>, vector<1x1x32x128xf32>
    %73 = vector.shape_cast %72 : vector<1x1x32x128xf32> to vector<32x128xf32>
    %74 = vector.shape_cast %71 : vector<32x128xf32> to vector<1x1x32x128xf32>
    tpu.vector_store %arg15[%c0_98, %c1_99, %c0_100, %c0_101], %74 {strides = array<i32>} : memref<1x8x32x128xf32, #tpu.memory_space<vmem>>, vector<1x1x32x128xf32>,
    %c0_102 = arith.constant 0 : index
    %c0_103 = arith.constant 0 : index
    %c0_104 = arith.constant 0 : index
    %c0_105 = arith.constant 0 : index
    %75 = vector.load %arg5[%c0_102, %c0_103, %c0_104, %c0_105] : memref<1x1x34x128xbf16, #tpu.memory_space<vmem>>, vector<1x1x32x128xbf16>
    %76 = vector.shape_cast %75 : vector<1x1x32x128xbf16> to vector<32x128xbf16>
    %c0_106 = arith.constant 0 : index
    %c0_107 = arith.constant 0 : index
    %c1_108 = arith.constant 1 : index
    %c0_109 = arith.constant 0 : index
    %77 = vector.load %arg5[%c0_106, %c0_107, %c1_108, %c0_109] : memref<1x1x34x128xbf16, #tpu.memory_space<vmem>>, vector<1x1x32x128xbf16>
    %78 = vector.shape_cast %77 : vector<1x1x32x128xbf16> to vector<32x128xbf16>
    %c0_110 = arith.constant 0 : index
    %c0_111 = arith.constant 0 : index
    %c2_112 = arith.constant 2 : index
    %c0_113 = arith.constant 0 : index
    %79 = vector.load %arg5[%c0_110, %c0_111, %c2_112, %c0_113] : memref<1x1x34x128xbf16, #tpu.memory_space<vmem>>, vector<1x1x32x128xbf16>
    %80 = vector.shape_cast %79 : vector<1x1x32x128xbf16> to vector<32x128xbf16>
    %81 = tpu.concatenate %76, %78, %80 in 1 : vector<32x128xbf16>, vector<32x128xbf16>, vector<32x128xbf16> -> vector<32x384xbf16>
    %c0_114 = arith.constant 0 : index
    %c0_115 = arith.constant 0 : index
    %c0_116 = arith.constant 0 : index
    %82 = vector.load %arg13[%c0_114, %c0_115, %c0_116] : memref<3x384x128xbf16, #tpu.memory_space<vmem>>, vector<1x384x128xbf16>
    %83 = vector.shape_cast %82 : vector<1x384x128xbf16> to vector<384x128xbf16>
    %cst_117 = arith.constant dense<0.000000e+00> : vector<32x128xf32>
    %84 = tpu.matmul %81, %83, %cst_117 {dimension_numbers = #tpu.dot_dimension_numbers<[1], [0], [0], [1], [0, 0, 1, 1], [], []>} : vector<32x384xbf16>, vector<384x128xbf16>, vector<32x128xf32> -> vector<32x128xf32>
    %85 = arith.addf %2, %84 : vector<32x128xf32>
    %c0_118 = arith.constant 0 : index
    %c0_119 = arith.constant 0 : index
    %c0_120 = arith.constant 0 : index
    %c0_121 = arith.constant 0 : index
    %86 = vector.load %arg6[%c0_118, %c0_119, %c0_120, %c0_121] : memref<1x1x34x128xbf16, #tpu.memory_space<vmem>>, vector<1x1x32x128xbf16>
    %87 = vector.shape_cast %86 : vector<1x1x32x128xbf16> to vector<32x128xbf16>
    %c0_122 = arith.constant 0 : index
    %c0_123 = arith.constant 0 : index
    %c1_124 = arith.constant 1 : index
    %c0_125 = arith.constant 0 : index
    %88 = vector.load %arg6[%c0_122, %c0_123, %c1_124, %c0_125] : memref<1x1x34x128xbf16, #tpu.memory_space<vmem>>, vector<1x1x32x128xbf16>
    %89 = vector.shape_cast %88 : vector<1x1x32x128xbf16> to vector<32x128xbf16>
    %c0_126 = arith.constant 0 : index
    %c0_127 = arith.constant 0 : index
    %c2_128 = arith.constant 2 : index
    %c0_129 = arith.constant 0 : index
    %90 = vector.load %arg6[%c0_126, %c0_127, %c2_128, %c0_129] : memref<1x1x34x128xbf16, #tpu.memory_space<vmem>>, vector<1x1x32x128xbf16>
    %91 = vector.shape_cast %90 : vector<1x1x32x128xbf16> to vector<32x128xbf16>
    %92 = tpu.concatenate %87, %89, %91 in 1 : vector<32x128xbf16>, vector<32x128xbf16>, vector<32x128xbf16> -> vector<32x384xbf16>
    %c1_130 = arith.constant 1 : index
    %c0_131 = arith.constant 0 : index
    %c0_132 = arith.constant 0 : index
    %93 = vector.load %arg13[%c1_130, %c0_131, %c0_132] : memref<3x384x128xbf16, #tpu.memory_space<vmem>>, vector<1x384x128xbf16>
    %94 = vector.shape_cast %93 : vector<1x384x128xbf16> to vector<384x128xbf16>
    %cst_133 = arith.constant dense<0.000000e+00> : vector<32x128xf32>
    %95 = tpu.matmul %92, %94, %cst_133 {dimension_numbers = #tpu.dot_dimension_numbers<[1], [0], [0], [1], [0, 0, 1, 1], [], []>} : vector<32x384xbf16>, vector<384x128xbf16>, vector<32x128xf32> -> vector<32x128xf32>
    %96 = arith.addf %85, %95 : vector<32x128xf32>
    %c0_134 = arith.constant 0 : index
    %c0_135 = arith.constant 0 : index
    %c0_136 = arith.constant 0 : index
    %c0_137 = arith.constant 0 : index
    %97 = vector.load %arg7[%c0_134, %c0_135, %c0_136, %c0_137] : memref<1x1x34x128xbf16, #tpu.memory_space<vmem>>, vector<1x1x32x128xbf16>
    %98 = vector.shape_cast %97 : vector<1x1x32x128xbf16> to vector<32x128xbf16>
    %c0_138 = arith.constant 0 : index
    %c0_139 = arith.constant 0 : index
    %c1_140 = arith.constant 1 : index
    %c0_141 = arith.constant 0 : index
    %99 = vector.load %arg7[%c0_138, %c0_139, %c1_140, %c0_141] : memref<1x1x34x128xbf16, #tpu.memory_space<vmem>>, vector<1x1x32x128xbf16>
    %100 = vector.shape_cast %99 : vector<1x1x32x128xbf16> to vector<32x128xbf16>
    %c0_142 = arith.constant 0 : index
    %c0_143 = arith.constant 0 : index
    %c2_144 = arith.constant 2 : index
    %c0_145 = arith.constant 0 : index
    %101 = vector.load %arg7[%c0_142, %c0_143, %c2_144, %c0_145] : memref<1x1x34x128xbf16, #tpu.memory_space<vmem>>, vector<1x1x32x128xbf16>
    %102 = vector.shape_cast %101 : vector<1x1x32x128xbf16> to vector<32x128xbf16>
    %103 = tpu.concatenate %98, %100, %102 in 1 : vector<32x128xbf16>, vector<32x128xbf16>, vector<32x128xbf16> -> vector<32x384xbf16>
    %c2_146 = arith.constant 2 : index
    %c0_147 = arith.constant 0 : index
    %c0_148 = arith.constant 0 : index
    %104 = vector.load %arg13[%c2_146, %c0_147, %c0_148] : memref<3x384x128xbf16, #tpu.memory_space<vmem>>, vector<1x384x128xbf16>
    %105 = vector.shape_cast %104 : vector<1x384x128xbf16> to vector<384x128xbf16>
    %cst_149 = arith.constant dense<0.000000e+00> : vector<32x128xf32>
    %106 = tpu.matmul %103, %105, %cst_149 {dimension_numbers = #tpu.dot_dimension_numbers<[1], [0], [0], [1], [0, 0, 1, 1], [], []>} : vector<32x384xbf16>, vector<384x128xbf16>, vector<32x128xf32> -> vector<32x128xf32>
    %107 = arith.addf %96, %106 : vector<32x128xf32>
    %c0_150 = arith.constant 0 : index
    %c2_151 = arith.constant 2 : index
    %c0_152 = arith.constant 0 : index
    %c0_153 = arith.constant 0 : index
    %108 = vector.load %arg15[%c0_150, %c2_151, %c0_152, %c0_153] : memref<1x8x32x128xf32, #tpu.memory_space<vmem>>, vector<1x1x32x128xf32>
    %109 = vector.shape_cast %108 : vector<1x1x32x128xf32> to vector<32x128xf32>
    %110 = vector.shape_cast %107 : vector<32x128xf32> to vector<1x1x32x128xf32>
    tpu.vector_store %arg15[%c0_150, %c2_151, %c0_152, %c0_153], %110 {strides = array<i32>} : memref<1x8x32x128xf32, #tpu.memory_space<vmem>>, vector<1x1x32x128xf32>,
    %c0_154 = arith.constant 0 : index
    %c0_155 = arith.constant 0 : index
    %c0_156 = arith.constant 0 : index
    %c0_157 = arith.constant 0 : index
    %111 = vector.load %arg6[%c0_154, %c0_155, %c0_156, %c0_157] : memref<1x1x34x128xbf16, #tpu.memory_space<vmem>>, vector<1x1x32x128xbf16>
    %112 = vector.shape_cast %111 : vector<1x1x32x128xbf16> to vector<32x128xbf16>
    %c0_158 = arith.constant 0 : index
    %c0_159 = arith.constant 0 : index
    %c1_160 = arith.constant 1 : index
    %c0_161 = arith.constant 0 : index
    %113 = vector.load %arg6[%c0_158, %c0_159, %c1_160, %c0_161] : memref<1x1x34x128xbf16, #tpu.memory_space<vmem>>, vector<1x1x32x128xbf16>
    %114 = vector.shape_cast %113 : vector<1x1x32x128xbf16> to vector<32x128xbf16>
    %c0_162 = arith.constant 0 : index
    %c0_163 = arith.constant 0 : index
    %c2_164 = arith.constant 2 : index
    %c0_165 = arith.constant 0 : index
    %115 = vector.load %arg6[%c0_162, %c0_163, %c2_164, %c0_165] : memref<1x1x34x128xbf16, #tpu.memory_space<vmem>>, vector<1x1x32x128xbf16>
    %116 = vector.shape_cast %115 : vector<1x1x32x128xbf16> to vector<32x128xbf16>
    %117 = tpu.concatenate %112, %114, %116 in 1 : vector<32x128xbf16>, vector<32x128xbf16>, vector<32x128xbf16> -> vector<32x384xbf16>
    %c0_166 = arith.constant 0 : index
    %c0_167 = arith.constant 0 : index
    %c0_168 = arith.constant 0 : index
    %118 = vector.load %arg13[%c0_166, %c0_167, %c0_168] : memref<3x384x128xbf16, #tpu.memory_space<vmem>>, vector<1x384x128xbf16>
    %119 = vector.shape_cast %118 : vector<1x384x128xbf16> to vector<384x128xbf16>
    %cst_169 = arith.constant dense<0.000000e+00> : vector<32x128xf32>
    %120 = tpu.matmul %117, %119, %cst_169 {dimension_numbers = #tpu.dot_dimension_numbers<[1], [0], [0], [1], [0, 0, 1, 1], [], []>} : vector<32x384xbf16>, vector<384x128xbf16>, vector<32x128xf32> -> vector<32x128xf32>
    %121 = arith.addf %2, %120 : vector<32x128xf32>
    %c0_170 = arith.constant 0 : index
    %c0_171 = arith.constant 0 : index
    %c0_172 = arith.constant 0 : index
    %c0_173 = arith.constant 0 : index
    %122 = vector.load %arg7[%c0_170, %c0_171, %c0_172, %c0_173] : memref<1x1x34x128xbf16, #tpu.memory_space<vmem>>, vector<1x1x32x128xbf16>
    %123 = vector.shape_cast %122 : vector<1x1x32x128xbf16> to vector<32x128xbf16>
    %c0_174 = arith.constant 0 : index
    %c0_175 = arith.constant 0 : index
    %c1_176 = arith.constant 1 : index
    %c0_177 = arith.constant 0 : index
    %124 = vector.load %arg7[%c0_174, %c0_175, %c1_176, %c0_177] : memref<1x1x34x128xbf16, #tpu.memory_space<vmem>>, vector<1x1x32x128xbf16>
    %125 = vector.shape_cast %124 : vector<1x1x32x128xbf16> to vector<32x128xbf16>
    %c0_178 = arith.constant 0 : index
    %c0_179 = arith.constant 0 : index
    %c2_180 = arith.constant 2 : index
    %c0_181 = arith.constant 0 : index
    %126 = vector.load %arg7[%c0_178, %c0_179, %c2_180, %c0_181] : memref<1x1x34x128xbf16, #tpu.memory_space<vmem>>, vector<1x1x32x128xbf16>
    %127 = vector.shape_cast %126 : vector<1x1x32x128xbf16> to vector<32x128xbf16>
    %128 = tpu.concatenate %123, %125, %127 in 1 : vector<32x128xbf16>, vector<32x128xbf16>, vector<32x128xbf16> -> vector<32x384xbf16>
    %c1_182 = arith.constant 1 : index
    %c0_183 = arith.constant 0 : index
    %c0_184 = arith.constant 0 : index
    %129 = vector.load %arg13[%c1_182, %c0_183, %c0_184] : memref<3x384x128xbf16, #tpu.memory_space<vmem>>, vector<1x384x128xbf16>
    %130 = vector.shape_cast %129 : vector<1x384x128xbf16> to vector<384x128xbf16>
    %cst_185 = arith.constant dense<0.000000e+00> : vector<32x128xf32>
    %131 = tpu.matmul %128, %130, %cst_185 {dimension_numbers = #tpu.dot_dimension_numbers<[1], [0], [0], [1], [0, 0, 1, 1], [], []>} : vector<32x384xbf16>, vector<384x128xbf16>, vector<32x128xf32> -> vector<32x128xf32>
    %132 = arith.addf %121, %131 : vector<32x128xf32>
    %c0_186 = arith.constant 0 : index
    %c0_187 = arith.constant 0 : index
    %c0_188 = arith.constant 0 : index
    %c0_189 = arith.constant 0 : index
    %133 = vector.load %arg8[%c0_186, %c0_187, %c0_188, %c0_189] : memref<1x1x34x128xbf16, #tpu.memory_space<vmem>>, vector<1x1x32x128xbf16>
    %134 = vector.shape_cast %133 : vector<1x1x32x128xbf16> to vector<32x128xbf16>
    %c0_190 = arith.constant 0 : index
    %c0_191 = arith.constant 0 : index
    %c1_192 = arith.constant 1 : index
    %c0_193 = arith.constant 0 : index
    %135 = vector.load %arg8[%c0_190, %c0_191, %c1_192, %c0_193] : memref<1x1x34x128xbf16, #tpu.memory_space<vmem>>, vector<1x1x32x128xbf16>
    %136 = vector.shape_cast %135 : vector<1x1x32x128xbf16> to vector<32x128xbf16>
    %c0_194 = arith.constant 0 : index
    %c0_195 = arith.constant 0 : index
    %c2_196 = arith.constant 2 : index
    %c0_197 = arith.constant 0 : index
    %137 = vector.load %arg8[%c0_194, %c0_195, %c2_196, %c0_197] : memref<1x1x34x128xbf16, #tpu.memory_space<vmem>>, vector<1x1x32x128xbf16>
    %138 = vector.shape_cast %137 : vector<1x1x32x128xbf16> to vector<32x128xbf16>
    %139 = tpu.concatenate %134, %136, %138 in 1 : vector<32x128xbf16>, vector<32x128xbf16>, vector<32x128xbf16> -> vector<32x384xbf16>
    %c2_198 = arith.constant 2 : index
    %c0_199 = arith.constant 0 : index
    %c0_200 = arith.constant 0 : index
    %140 = vector.load %arg13[%c2_198, %c0_199, %c0_200] : memref<3x384x128xbf16, #tpu.memory_space<vmem>>, vector<1x384x128xbf16>
    %141 = vector.shape_cast %140 : vector<1x384x128xbf16> to vector<384x128xbf16>
    %cst_201 = arith.constant dense<0.000000e+00> : vector<32x128xf32>
    %142 = tpu.matmul %139, %141, %cst_201 {dimension_numbers = #tpu.dot_dimension_numbers<[1], [0], [0], [1], [0, 0, 1, 1], [], []>} : vector<32x384xbf16>, vector<384x128xbf16>, vector<32x128xf32> -> vector<32x128xf32>
    %143 = arith.addf %132, %142 : vector<32x128xf32>
    %c0_202 = arith.constant 0 : index
    %c3 = arith.constant 3 : index
    %c0_203 = arith.constant 0 : index
    %c0_204 = arith.constant 0 : index
    %144 = vector.load %arg15[%c0_202, %c3, %c0_203, %c0_204] : memref<1x8x32x128xf32, #tpu.memory_space<vmem>>, vector<1x1x32x128xf32>
    %145 = vector.shape_cast %144 : vector<1x1x32x128xf32> to vector<32x128xf32>
    %146 = vector.shape_cast %143 : vector<32x128xf32> to vector<1x1x32x128xf32>
    tpu.vector_store %arg15[%c0_202, %c3, %c0_203, %c0_204], %146 {strides = array<i32>} : memref<1x8x32x128xf32, #tpu.memory_space<vmem>>, vector<1x1x32x128xf32>,
    %c0_205 = arith.constant 0 : index
    %c0_206 = arith.constant 0 : index
    %c0_207 = arith.constant 0 : index
    %c0_208 = arith.constant 0 : index
    %147 = vector.load %arg7[%c0_205, %c0_206, %c0_207, %c0_208] : memref<1x1x34x128xbf16, #tpu.memory_space<vmem>>, vector<1x1x32x128xbf16>
    %148 = vector.shape_cast %147 : vector<1x1x32x128xbf16> to vector<32x128xbf16>
    %c0_209 = arith.constant 0 : index
    %c0_210 = arith.constant 0 : index
    %c1_211 = arith.constant 1 : index
    %c0_212 = arith.constant 0 : index
    %149 = vector.load %arg7[%c0_209, %c0_210, %c1_211, %c0_212] : memref<1x1x34x128xbf16, #tpu.memory_space<vmem>>, vector<1x1x32x128xbf16>
    %150 = vector.shape_cast %149 : vector<1x1x32x128xbf16> to vector<32x128xbf16>
    %c0_213 = arith.constant 0 : index
    %c0_214 = arith.constant 0 : index
    %c2_215 = arith.constant 2 : index
    %c0_216 = arith.constant 0 : index
    %151 = vector.load %arg7[%c0_213, %c0_214, %c2_215, %c0_216] : memref<1x1x34x128xbf16, #tpu.memory_space<vmem>>, vector<1x1x32x128xbf16>
    %152 = vector.shape_cast %151 : vector<1x1x32x128xbf16> to vector<32x128xbf16>
    %153 = tpu.concatenate %148, %150, %152 in 1 : vector<32x128xbf16>, vector<32x128xbf16>, vector<32x128xbf16> -> vector<32x384xbf16>
    %c0_217 = arith.constant 0 : index
    %c0_218 = arith.constant 0 : index
    %c0_219 = arith.constant 0 : index
    %154 = vector.load %arg13[%c0_217, %c0_218, %c0_219] : memref<3x384x128xbf16, #tpu.memory_space<vmem>>, vector<1x384x128xbf16>
    %155 = vector.shape_cast %154 : vector<1x384x128xbf16> to vector<384x128xbf16>
    %cst_220 = arith.constant dense<0.000000e+00> : vector<32x128xf32>
    %156 = tpu.matmul %153, %155, %cst_220 {dimension_numbers = #tpu.dot_dimension_numbers<[1], [0], [0], [1], [0, 0, 1, 1], [], []>} : vector<32x384xbf16>, vector<384x128xbf16>, vector<32x128xf32> -> vector<32x128xf32>
    %157 = arith.addf %2, %156 : vector<32x128xf32>
    %c0_221 = arith.constant 0 : index
    %c0_222 = arith.constant 0 : index
    %c0_223 = arith.constant 0 : index
    %c0_224 = arith.constant 0 : index
    %158 = vector.load %arg8[%c0_221, %c0_222, %c0_223, %c0_224] : memref<1x1x34x128xbf16, #tpu.memory_space<vmem>>, vector<1x1x32x128xbf16>
    %159 = vector.shape_cast %158 : vector<1x1x32x128xbf16> to vector<32x128xbf16>
    %c0_225 = arith.constant 0 : index
    %c0_226 = arith.constant 0 : index
    %c1_227 = arith.constant 1 : index
    %c0_228 = arith.constant 0 : index
    %160 = vector.load %arg8[%c0_225, %c0_226, %c1_227, %c0_228] : memref<1x1x34x128xbf16, #tpu.memory_space<vmem>>, vector<1x1x32x128xbf16>
    %161 = vector.shape_cast %160 : vector<1x1x32x128xbf16> to vector<32x128xbf16>
    %c0_229 = arith.constant 0 : index
    %c0_230 = arith.constant 0 : index
    %c2_231 = arith.constant 2 : index
    %c0_232 = arith.constant 0 : index
    %162 = vector.load %arg8[%c0_229, %c0_230, %c2_231, %c0_232] : memref<1x1x34x128xbf16, #tpu.memory_space<vmem>>, vector<1x1x32x128xbf16>
    %163 = vector.shape_cast %162 : vector<1x1x32x128xbf16> to vector<32x128xbf16>
    %164 = tpu.concatenate %159, %161, %163 in 1 : vector<32x128xbf16>, vector<32x128xbf16>, vector<32x128xbf16> -> vector<32x384xbf16>
    %c1_233 = arith.constant 1 : index
    %c0_234 = arith.constant 0 : index
    %c0_235 = arith.constant 0 : index
    %165 = vector.load %arg13[%c1_233, %c0_234, %c0_235] : memref<3x384x128xbf16, #tpu.memory_space<vmem>>, vector<1x384x128xbf16>
    %166 = vector.shape_cast %165 : vector<1x384x128xbf16> to vector<384x128xbf16>
    %cst_236 = arith.constant dense<0.000000e+00> : vector<32x128xf32>
    %167 = tpu.matmul %164, %166, %cst_236 {dimension_numbers = #tpu.dot_dimension_numbers<[1], [0], [0], [1], [0, 0, 1, 1], [], []>} : vector<32x384xbf16>, vector<384x128xbf16>, vector<32x128xf32> -> vector<32x128xf32>
    %168 = arith.addf %157, %167 : vector<32x128xf32>
    %c0_237 = arith.constant 0 : index
    %c0_238 = arith.constant 0 : index
    %c0_239 = arith.constant 0 : index
    %c0_240 = arith.constant 0 : index
    %169 = vector.load %arg9[%c0_237, %c0_238, %c0_239, %c0_240] : memref<1x1x34x128xbf16, #tpu.memory_space<vmem>>, vector<1x1x32x128xbf16>
    %170 = vector.shape_cast %169 : vector<1x1x32x128xbf16> to vector<32x128xbf16>
    %c0_241 = arith.constant 0 : index
    %c0_242 = arith.constant 0 : index
    %c1_243 = arith.constant 1 : index
    %c0_244 = arith.constant 0 : index
    %171 = vector.load %arg9[%c0_241, %c0_242, %c1_243, %c0_244] : memref<1x1x34x128xbf16, #tpu.memory_space<vmem>>, vector<1x1x32x128xbf16>
    %172 = vector.shape_cast %171 : vector<1x1x32x128xbf16> to vector<32x128xbf16>
    %c0_245 = arith.constant 0 : index
    %c0_246 = arith.constant 0 : index
    %c2_247 = arith.constant 2 : index
    %c0_248 = arith.constant 0 : index
    %173 = vector.load %arg9[%c0_245, %c0_246, %c2_247, %c0_248] : memref<1x1x34x128xbf16, #tpu.memory_space<vmem>>, vector<1x1x32x128xbf16>
    %174 = vector.shape_cast %173 : vector<1x1x32x128xbf16> to vector<32x128xbf16>
    %175 = tpu.concatenate %170, %172, %174 in 1 : vector<32x128xbf16>, vector<32x128xbf16>, vector<32x128xbf16> -> vector<32x384xbf16>
    %c2_249 = arith.constant 2 : index
    %c0_250 = arith.constant 0 : index
    %c0_251 = arith.constant 0 : index
    %176 = vector.load %arg13[%c2_249, %c0_250, %c0_251] : memref<3x384x128xbf16, #tpu.memory_space<vmem>>, vector<1x384x128xbf16>
    %177 = vector.shape_cast %176 : vector<1x384x128xbf16> to vector<384x128xbf16>
    %cst_252 = arith.constant dense<0.000000e+00> : vector<32x128xf32>
    %178 = tpu.matmul %175, %177, %cst_252 {dimension_numbers = #tpu.dot_dimension_numbers<[1], [0], [0], [1], [0, 0, 1, 1], [], []>} : vector<32x384xbf16>, vector<384x128xbf16>, vector<32x128xf32> -> vector<32x128xf32>
    %179 = arith.addf %168, %178 : vector<32x128xf32>
    %c0_253 = arith.constant 0 : index
    %c4 = arith.constant 4 : index
    %c0_254 = arith.constant 0 : index
    %c0_255 = arith.constant 0 : index
    %180 = vector.load %arg15[%c0_253, %c4, %c0_254, %c0_255] : memref<1x8x32x128xf32, #tpu.memory_space<vmem>>, vector<1x1x32x128xf32>
    %181 = vector.shape_cast %180 : vector<1x1x32x128xf32> to vector<32x128xf32>
    %182 = vector.shape_cast %179 : vector<32x128xf32> to vector<1x1x32x128xf32>
    tpu.vector_store %arg15[%c0_253, %c4, %c0_254, %c0_255], %182 {strides = array<i32>} : memref<1x8x32x128xf32, #tpu.memory_space<vmem>>, vector<1x1x32x128xf32>,
    %c0_256 = arith.constant 0 : index
    %c0_257 = arith.constant 0 : index
    %c0_258 = arith.constant 0 : index
    %c0_259 = arith.constant 0 : index
    %183 = vector.load %arg8[%c0_256, %c0_257, %c0_258, %c0_259] : memref<1x1x34x128xbf16, #tpu.memory_space<vmem>>, vector<1x1x32x128xbf16>
    %184 = vector.shape_cast %183 : vector<1x1x32x128xbf16> to vector<32x128xbf16>
    %c0_260 = arith.constant 0 : index
    %c0_261 = arith.constant 0 : index
    %c1_262 = arith.constant 1 : index
    %c0_263 = arith.constant 0 : index
    %185 = vector.load %arg8[%c0_260, %c0_261, %c1_262, %c0_263] : memref<1x1x34x128xbf16, #tpu.memory_space<vmem>>, vector<1x1x32x128xbf16>
    %186 = vector.shape_cast %185 : vector<1x1x32x128xbf16> to vector<32x128xbf16>
    %c0_264 = arith.constant 0 : index
    %c0_265 = arith.constant 0 : index
    %c2_266 = arith.constant 2 : index
    %c0_267 = arith.constant 0 : index
    %187 = vector.load %arg8[%c0_264, %c0_265, %c2_266, %c0_267] : memref<1x1x34x128xbf16, #tpu.memory_space<vmem>>, vector<1x1x32x128xbf16>
    %188 = vector.shape_cast %187 : vector<1x1x32x128xbf16> to vector<32x128xbf16>
    %189 = tpu.concatenate %184, %186, %188 in 1 : vector<32x128xbf16>, vector<32x128xbf16>, vector<32x128xbf16> -> vector<32x384xbf16>
    %c0_268 = arith.constant 0 : index
    %c0_269 = arith.constant 0 : index
    %c0_270 = arith.constant 0 : index
    %190 = vector.load %arg13[%c0_268, %c0_269, %c0_270] : memref<3x384x128xbf16, #tpu.memory_space<vmem>>, vector<1x384x128xbf16>
    %191 = vector.shape_cast %190 : vector<1x384x128xbf16> to vector<384x128xbf16>
    %cst_271 = arith.constant dense<0.000000e+00> : vector<32x128xf32>
    %192 = tpu.matmul %189, %191, %cst_271 {dimension_numbers = #tpu.dot_dimension_numbers<[1], [0], [0], [1], [0, 0, 1, 1], [], []>} : vector<32x384xbf16>, vector<384x128xbf16>, vector<32x128xf32> -> vector<32x128xf32>
    %193 = arith.addf %2, %192 : vector<32x128xf32>
    %c0_272 = arith.constant 0 : index
    %c0_273 = arith.constant 0 : index
    %c0_274 = arith.constant 0 : index
    %c0_275 = arith.constant 0 : index
    %194 = vector.load %arg9[%c0_272, %c0_273, %c0_274, %c0_275] : memref<1x1x34x128xbf16, #tpu.memory_space<vmem>>, vector<1x1x32x128xbf16>
    %195 = vector.shape_cast %194 : vector<1x1x32x128xbf16> to vector<32x128xbf16>
    %c0_276 = arith.constant 0 : index
    %c0_277 = arith.constant 0 : index
    %c1_278 = arith.constant 1 : index
    %c0_279 = arith.constant 0 : index
    %196 = vector.load %arg9[%c0_276, %c0_277, %c1_278, %c0_279] : memref<1x1x34x128xbf16, #tpu.memory_space<vmem>>, vector<1x1x32x128xbf16>
    %197 = vector.shape_cast %196 : vector<1x1x32x128xbf16> to vector<32x128xbf16>
    %c0_280 = arith.constant 0 : index
    %c0_281 = arith.constant 0 : index
    %c2_282 = arith.constant 2 : index
    %c0_283 = arith.constant 0 : index
    %198 = vector.load %arg9[%c0_280, %c0_281, %c2_282, %c0_283] : memref<1x1x34x128xbf16, #tpu.memory_space<vmem>>, vector<1x1x32x128xbf16>
    %199 = vector.shape_cast %198 : vector<1x1x32x128xbf16> to vector<32x128xbf16>
    %200 = tpu.concatenate %195, %197, %199 in 1 : vector<32x128xbf16>, vector<32x128xbf16>, vector<32x128xbf16> -> vector<32x384xbf16>
    %c1_284 = arith.constant 1 : index
    %c0_285 = arith.constant 0 : index
    %c0_286 = arith.constant 0 : index
    %201 = vector.load %arg13[%c1_284, %c0_285, %c0_286] : memref<3x384x128xbf16, #tpu.memory_space<vmem>>, vector<1x384x128xbf16>
    %202 = vector.shape_cast %201 : vector<1x384x128xbf16> to vector<384x128xbf16>
    %cst_287 = arith.constant dense<0.000000e+00> : vector<32x128xf32>
    %203 = tpu.matmul %200, %202, %cst_287 {dimension_numbers = #tpu.dot_dimension_numbers<[1], [0], [0], [1], [0, 0, 1, 1], [], []>} : vector<32x384xbf16>, vector<384x128xbf16>, vector<32x128xf32> -> vector<32x128xf32>
    %204 = arith.addf %193, %203 : vector<32x128xf32>
    %c0_288 = arith.constant 0 : index
    %c0_289 = arith.constant 0 : index
    %c0_290 = arith.constant 0 : index
    %c0_291 = arith.constant 0 : index
    %205 = vector.load %arg10[%c0_288, %c0_289, %c0_290, %c0_291] : memref<1x1x34x128xbf16, #tpu.memory_space<vmem>>, vector<1x1x32x128xbf16>
    %206 = vector.shape_cast %205 : vector<1x1x32x128xbf16> to vector<32x128xbf16>
    %c0_292 = arith.constant 0 : index
    %c0_293 = arith.constant 0 : index
    %c1_294 = arith.constant 1 : index
    %c0_295 = arith.constant 0 : index
    %207 = vector.load %arg10[%c0_292, %c0_293, %c1_294, %c0_295] : memref<1x1x34x128xbf16, #tpu.memory_space<vmem>>, vector<1x1x32x128xbf16>
    %208 = vector.shape_cast %207 : vector<1x1x32x128xbf16> to vector<32x128xbf16>
    %c0_296 = arith.constant 0 : index
    %c0_297 = arith.constant 0 : index
    %c2_298 = arith.constant 2 : index
    %c0_299 = arith.constant 0 : index
    %209 = vector.load %arg10[%c0_296, %c0_297, %c2_298, %c0_299] : memref<1x1x34x128xbf16, #tpu.memory_space<vmem>>, vector<1x1x32x128xbf16>
    %210 = vector.shape_cast %209 : vector<1x1x32x128xbf16> to vector<32x128xbf16>
    %211 = tpu.concatenate %206, %208, %210 in 1 : vector<32x128xbf16>, vector<32x128xbf16>, vector<32x128xbf16> -> vector<32x384xbf16>
    %c2_300 = arith.constant 2 : index
    %c0_301 = arith.constant 0 : index
    %c0_302 = arith.constant 0 : index
    %212 = vector.load %arg13[%c2_300, %c0_301, %c0_302] : memref<3x384x128xbf16, #tpu.memory_space<vmem>>, vector<1x384x128xbf16>
    %213 = vector.shape_cast %212 : vector<1x384x128xbf16> to vector<384x128xbf16>
    %cst_303 = arith.constant dense<0.000000e+00> : vector<32x128xf32>
    %214 = tpu.matmul %211, %213, %cst_303 {dimension_numbers = #tpu.dot_dimension_numbers<[1], [0], [0], [1], [0, 0, 1, 1], [], []>} : vector<32x384xbf16>, vector<384x128xbf16>, vector<32x128xf32> -> vector<32x128xf32>
    %215 = arith.addf %204, %214 : vector<32x128xf32>
    %c0_304 = arith.constant 0 : index
    %c5 = arith.constant 5 : index
    %c0_305 = arith.constant 0 : index
    %c0_306 = arith.constant 0 : index
    %216 = vector.load %arg15[%c0_304, %c5, %c0_305, %c0_306] : memref<1x8x32x128xf32, #tpu.memory_space<vmem>>, vector<1x1x32x128xf32>
    %217 = vector.shape_cast %216 : vector<1x1x32x128xf32> to vector<32x128xf32>
    %218 = vector.shape_cast %215 : vector<32x128xf32> to vector<1x1x32x128xf32>
    tpu.vector_store %arg15[%c0_304, %c5, %c0_305, %c0_306], %218 {strides = array<i32>} : memref<1x8x32x128xf32, #tpu.memory_space<vmem>>, vector<1x1x32x128xf32>,
    %c0_307 = arith.constant 0 : index
    %c0_308 = arith.constant 0 : index
    %c0_309 = arith.constant 0 : index
    %c0_310 = arith.constant 0 : index
    %219 = vector.load %arg9[%c0_307, %c0_308, %c0_309, %c0_310] : memref<1x1x34x128xbf16, #tpu.memory_space<vmem>>, vector<1x1x32x128xbf16>
    %220 = vector.shape_cast %219 : vector<1x1x32x128xbf16> to vector<32x128xbf16>
    %c0_311 = arith.constant 0 : index
    %c0_312 = arith.constant 0 : index
    %c1_313 = arith.constant 1 : index
    %c0_314 = arith.constant 0 : index
    %221 = vector.load %arg9[%c0_311, %c0_312, %c1_313, %c0_314] : memref<1x1x34x128xbf16, #tpu.memory_space<vmem>>, vector<1x1x32x128xbf16>
    %222 = vector.shape_cast %221 : vector<1x1x32x128xbf16> to vector<32x128xbf16>
    %c0_315 = arith.constant 0 : index
    %c0_316 = arith.constant 0 : index
    %c2_317 = arith.constant 2 : index
    %c0_318 = arith.constant 0 : index
    %223 = vector.load %arg9[%c0_315, %c0_316, %c2_317, %c0_318] : memref<1x1x34x128xbf16, #tpu.memory_space<vmem>>, vector<1x1x32x128xbf16>
    %224 = vector.shape_cast %223 : vector<1x1x32x128xbf16> to vector<32x128xbf16>
    %225 = tpu.concatenate %220, %222, %224 in 1 : vector<32x128xbf16>, vector<32x128xbf16>, vector<32x128xbf16> -> vector<32x384xbf16>
    %c0_319 = arith.constant 0 : index
    %c0_320 = arith.constant 0 : index
    %c0_321 = arith.constant 0 : index
    %226 = vector.load %arg13[%c0_319, %c0_320, %c0_321] : memref<3x384x128xbf16, #tpu.memory_space<vmem>>, vector<1x384x128xbf16>
    %227 = vector.shape_cast %226 : vector<1x384x128xbf16> to vector<384x128xbf16>
    %cst_322 = arith.constant dense<0.000000e+00> : vector<32x128xf32>
    %228 = tpu.matmul %225, %227, %cst_322 {dimension_numbers = #tpu.dot_dimension_numbers<[1], [0], [0], [1], [0, 0, 1, 1], [], []>} : vector<32x384xbf16>, vector<384x128xbf16>, vector<32x128xf32> -> vector<32x128xf32>
    %229 = arith.addf %2, %228 : vector<32x128xf32>
    %c0_323 = arith.constant 0 : index
    %c0_324 = arith.constant 0 : index
    %c0_325 = arith.constant 0 : index
    %c0_326 = arith.constant 0 : index
    %230 = vector.load %arg10[%c0_323, %c0_324, %c0_325, %c0_326] : memref<1x1x34x128xbf16, #tpu.memory_space<vmem>>, vector<1x1x32x128xbf16>
    %231 = vector.shape_cast %230 : vector<1x1x32x128xbf16> to vector<32x128xbf16>
    %c0_327 = arith.constant 0 : index
    %c0_328 = arith.constant 0 : index
    %c1_329 = arith.constant 1 : index
    %c0_330 = arith.constant 0 : index
    %232 = vector.load %arg10[%c0_327, %c0_328, %c1_329, %c0_330] : memref<1x1x34x128xbf16, #tpu.memory_space<vmem>>, vector<1x1x32x128xbf16>
    %233 = vector.shape_cast %232 : vector<1x1x32x128xbf16> to vector<32x128xbf16>
    %c0_331 = arith.constant 0 : index
    %c0_332 = arith.constant 0 : index
    %c2_333 = arith.constant 2 : index
    %c0_334 = arith.constant 0 : index
    %234 = vector.load %arg10[%c0_331, %c0_332, %c2_333, %c0_334] : memref<1x1x34x128xbf16, #tpu.memory_space<vmem>>, vector<1x1x32x128xbf16>
    %235 = vector.shape_cast %234 : vector<1x1x32x128xbf16> to vector<32x128xbf16>
    %236 = tpu.concatenate %231, %233, %235 in 1 : vector<32x128xbf16>, vector<32x128xbf16>, vector<32x128xbf16> -> vector<32x384xbf16>
    %c1_335 = arith.constant 1 : index
    %c0_336 = arith.constant 0 : index
    %c0_337 = arith.constant 0 : index
    %237 = vector.load %arg13[%c1_335, %c0_336, %c0_337] : memref<3x384x128xbf16, #tpu.memory_space<vmem>>, vector<1x384x128xbf16>
    %238 = vector.shape_cast %237 : vector<1x384x128xbf16> to vector<384x128xbf16>
    %cst_338 = arith.constant dense<0.000000e+00> : vector<32x128xf32>
    %239 = tpu.matmul %236, %238, %cst_338 {dimension_numbers = #tpu.dot_dimension_numbers<[1], [0], [0], [1], [0, 0, 1, 1], [], []>} : vector<32x384xbf16>, vector<384x128xbf16>, vector<32x128xf32> -> vector<32x128xf32>
    %240 = arith.addf %229, %239 : vector<32x128xf32>
    %c0_339 = arith.constant 0 : index
    %c0_340 = arith.constant 0 : index
    %c0_341 = arith.constant 0 : index
    %c0_342 = arith.constant 0 : index
    %241 = vector.load %arg11[%c0_339, %c0_340, %c0_341, %c0_342] : memref<1x1x34x128xbf16, #tpu.memory_space<vmem>>, vector<1x1x32x128xbf16>
    %242 = vector.shape_cast %241 : vector<1x1x32x128xbf16> to vector<32x128xbf16>
    %c0_343 = arith.constant 0 : index
    %c0_344 = arith.constant 0 : index
    %c1_345 = arith.constant 1 : index
    %c0_346 = arith.constant 0 : index
    %243 = vector.load %arg11[%c0_343, %c0_344, %c1_345, %c0_346] : memref<1x1x34x128xbf16, #tpu.memory_space<vmem>>, vector<1x1x32x128xbf16>
    %244 = vector.shape_cast %243 : vector<1x1x32x128xbf16> to vector<32x128xbf16>
    %c0_347 = arith.constant 0 : index
    %c0_348 = arith.constant 0 : index
    %c2_349 = arith.constant 2 : index
    %c0_350 = arith.constant 0 : index
    %245 = vector.load %arg11[%c0_347, %c0_348, %c2_349, %c0_350] : memref<1x1x34x128xbf16, #tpu.memory_space<vmem>>, vector<1x1x32x128xbf16>
    %246 = vector.shape_cast %245 : vector<1x1x32x128xbf16> to vector<32x128xbf16>
    %247 = tpu.concatenate %242, %244, %246 in 1 : vector<32x128xbf16>, vector<32x128xbf16>, vector<32x128xbf16> -> vector<32x384xbf16>
    %c2_351 = arith.constant 2 : index
    %c0_352 = arith.constant 0 : index
    %c0_353 = arith.constant 0 : index
    %248 = vector.load %arg13[%c2_351, %c0_352, %c0_353] : memref<3x384x128xbf16, #tpu.memory_space<vmem>>, vector<1x384x128xbf16>
    %249 = vector.shape_cast %248 : vector<1x384x128xbf16> to vector<384x128xbf16>
    %cst_354 = arith.constant dense<0.000000e+00> : vector<32x128xf32>
    %250 = tpu.matmul %247, %249, %cst_354 {dimension_numbers = #tpu.dot_dimension_numbers<[1], [0], [0], [1], [0, 0, 1, 1], [], []>} : vector<32x384xbf16>, vector<384x128xbf16>, vector<32x128xf32> -> vector<32x128xf32>
    %251 = arith.addf %240, %250 : vector<32x128xf32>
    %c0_355 = arith.constant 0 : index
    %c6 = arith.constant 6 : index
    %c0_356 = arith.constant 0 : index
    %c0_357 = arith.constant 0 : index
    %252 = vector.load %arg15[%c0_355, %c6, %c0_356, %c0_357] : memref<1x8x32x128xf32, #tpu.memory_space<vmem>>, vector<1x1x32x128xf32>
    %253 = vector.shape_cast %252 : vector<1x1x32x128xf32> to vector<32x128xf32>
    %254 = vector.shape_cast %251 : vector<32x128xf32> to vector<1x1x32x128xf32>
    tpu.vector_store %arg15[%c0_355, %c6, %c0_356, %c0_357], %254 {strides = array<i32>} : memref<1x8x32x128xf32, #tpu.memory_space<vmem>>, vector<1x1x32x128xf32>,
    %c0_358 = arith.constant 0 : index
    %c0_359 = arith.constant 0 : index
    %c0_360 = arith.constant 0 : index
    %c0_361 = arith.constant 0 : index
    %255 = vector.load %arg10[%c0_358, %c0_359, %c0_360, %c0_361] : memref<1x1x34x128xbf16, #tpu.memory_space<vmem>>, vector<1x1x32x128xbf16>
    %256 = vector.shape_cast %255 : vector<1x1x32x128xbf16> to vector<32x128xbf16>
    %c0_362 = arith.constant 0 : index
    %c0_363 = arith.constant 0 : index
    %c1_364 = arith.constant 1 : index
    %c0_365 = arith.constant 0 : index
    %257 = vector.load %arg10[%c0_362, %c0_363, %c1_364, %c0_365] : memref<1x1x34x128xbf16, #tpu.memory_space<vmem>>, vector<1x1x32x128xbf16>
    %258 = vector.shape_cast %257 : vector<1x1x32x128xbf16> to vector<32x128xbf16>
    %c0_366 = arith.constant 0 : index
    %c0_367 = arith.constant 0 : index
    %c2_368 = arith.constant 2 : index
    %c0_369 = arith.constant 0 : index
    %259 = vector.load %arg10[%c0_366, %c0_367, %c2_368, %c0_369] : memref<1x1x34x128xbf16, #tpu.memory_space<vmem>>, vector<1x1x32x128xbf16>
    %260 = vector.shape_cast %259 : vector<1x1x32x128xbf16> to vector<32x128xbf16>
    %261 = tpu.concatenate %256, %258, %260 in 1 : vector<32x128xbf16>, vector<32x128xbf16>, vector<32x128xbf16> -> vector<32x384xbf16>
    %c0_370 = arith.constant 0 : index
    %c0_371 = arith.constant 0 : index
    %c0_372 = arith.constant 0 : index
    %262 = vector.load %arg13[%c0_370, %c0_371, %c0_372] : memref<3x384x128xbf16, #tpu.memory_space<vmem>>, vector<1x384x128xbf16>
    %263 = vector.shape_cast %262 : vector<1x384x128xbf16> to vector<384x128xbf16>
    %cst_373 = arith.constant dense<0.000000e+00> : vector<32x128xf32>
    %264 = tpu.matmul %261, %263, %cst_373 {dimension_numbers = #tpu.dot_dimension_numbers<[1], [0], [0], [1], [0, 0, 1, 1], [], []>} : vector<32x384xbf16>, vector<384x128xbf16>, vector<32x128xf32> -> vector<32x128xf32>
    %265 = arith.addf %2, %264 : vector<32x128xf32>
    %c0_374 = arith.constant 0 : index
    %c0_375 = arith.constant 0 : index
    %c0_376 = arith.constant 0 : index
    %c0_377 = arith.constant 0 : index
    %266 = vector.load %arg11[%c0_374, %c0_375, %c0_376, %c0_377] : memref<1x1x34x128xbf16, #tpu.memory_space<vmem>>, vector<1x1x32x128xbf16>
    %267 = vector.shape_cast %266 : vector<1x1x32x128xbf16> to vector<32x128xbf16>
    %c0_378 = arith.constant 0 : index
    %c0_379 = arith.constant 0 : index
    %c1_380 = arith.constant 1 : index
    %c0_381 = arith.constant 0 : index
    %268 = vector.load %arg11[%c0_378, %c0_379, %c1_380, %c0_381] : memref<1x1x34x128xbf16, #tpu.memory_space<vmem>>, vector<1x1x32x128xbf16>
    %269 = vector.shape_cast %268 : vector<1x1x32x128xbf16> to vector<32x128xbf16>
    %c0_382 = arith.constant 0 : index
    %c0_383 = arith.constant 0 : index
    %c2_384 = arith.constant 2 : index
    %c0_385 = arith.constant 0 : index
    %270 = vector.load %arg11[%c0_382, %c0_383, %c2_384, %c0_385] : memref<1x1x34x128xbf16, #tpu.memory_space<vmem>>, vector<1x1x32x128xbf16>
    %271 = vector.shape_cast %270 : vector<1x1x32x128xbf16> to vector<32x128xbf16>
    %272 = tpu.concatenate %267, %269, %271 in 1 : vector<32x128xbf16>, vector<32x128xbf16>, vector<32x128xbf16> -> vector<32x384xbf16>
    %c1_386 = arith.constant 1 : index
    %c0_387 = arith.constant 0 : index
    %c0_388 = arith.constant 0 : index
    %273 = vector.load %arg13[%c1_386, %c0_387, %c0_388] : memref<3x384x128xbf16, #tpu.memory_space<vmem>>, vector<1x384x128xbf16>
    %274 = vector.shape_cast %273 : vector<1x384x128xbf16> to vector<384x128xbf16>
    %cst_389 = arith.constant dense<0.000000e+00> : vector<32x128xf32>
    %275 = tpu.matmul %272, %274, %cst_389 {dimension_numbers = #tpu.dot_dimension_numbers<[1], [0], [0], [1], [0, 0, 1, 1], [], []>} : vector<32x384xbf16>, vector<384x128xbf16>, vector<32x128xf32> -> vector<32x128xf32>
    %276 = arith.addf %265, %275 : vector<32x128xf32>
    %c0_390 = arith.constant 0 : index
    %c0_391 = arith.constant 0 : index
    %c0_392 = arith.constant 0 : index
    %c0_393 = arith.constant 0 : index
    %277 = vector.load %arg12[%c0_390, %c0_391, %c0_392, %c0_393] : memref<1x1x34x128xbf16, #tpu.memory_space<vmem>>, vector<1x1x32x128xbf16>
    %278 = vector.shape_cast %277 : vector<1x1x32x128xbf16> to vector<32x128xbf16>
    %c0_394 = arith.constant 0 : index
    %c0_395 = arith.constant 0 : index
    %c1_396 = arith.constant 1 : index
    %c0_397 = arith.constant 0 : index
    %279 = vector.load %arg12[%c0_394, %c0_395, %c1_396, %c0_397] : memref<1x1x34x128xbf16, #tpu.memory_space<vmem>>, vector<1x1x32x128xbf16>
    %280 = vector.shape_cast %279 : vector<1x1x32x128xbf16> to vector<32x128xbf16>
    %c0_398 = arith.constant 0 : index
    %c0_399 = arith.constant 0 : index
    %c2_400 = arith.constant 2 : index
    %c0_401 = arith.constant 0 : index
    %281 = vector.load %arg12[%c0_398, %c0_399, %c2_400, %c0_401] : memref<1x1x34x128xbf16, #tpu.memory_space<vmem>>, vector<1x1x32x128xbf16>
    %282 = vector.shape_cast %281 : vector<1x1x32x128xbf16> to vector<32x128xbf16>
    %283 = tpu.concatenate %278, %280, %282 in 1 : vector<32x128xbf16>, vector<32x128xbf16>, vector<32x128xbf16> -> vector<32x384xbf16>
    %c2_402 = arith.constant 2 : index
    %c0_403 = arith.constant 0 : index
    %c0_404 = arith.constant 0 : index
    %284 = vector.load %arg13[%c2_402, %c0_403, %c0_404] : memref<3x384x128xbf16, #tpu.memory_space<vmem>>, vector<1x384x128xbf16>
    %285 = vector.shape_cast %284 : vector<1x384x128xbf16> to vector<384x128xbf16>
    %cst_405 = arith.constant dense<0.000000e+00> : vector<32x128xf32>
    %286 = tpu.matmul %283, %285, %cst_405 {dimension_numbers = #tpu.dot_dimension_numbers<[1], [0], [0], [1], [0, 0, 1, 1], [], []>} : vector<32x384xbf16>, vector<384x128xbf16>, vector<32x128xf32> -> vector<32x128xf32>
    %287 = arith.addf %276, %286 : vector<32x128xf32>
    %c0_406 = arith.constant 0 : index
    %c7 = arith.constant 7 : index
    %c0_407 = arith.constant 0 : index
    %c0_408 = arith.constant 0 : index
    %288 = vector.load %arg15[%c0_406, %c7, %c0_407, %c0_408] : memref<1x8x32x128xf32, #tpu.memory_space<vmem>>, vector<1x1x32x128xf32>
    %289 = vector.shape_cast %288 : vector<1x1x32x128xf32> to vector<32x128xf32>
    %290 = vector.shape_cast %287 : vector<32x128xf32> to vector<1x1x32x128xf32>
    tpu.vector_store %arg15[%c0_406, %c7, %c0_407, %c0_408], %290 {strides = array<i32>} : memref<1x8x32x128xf32, #tpu.memory_space<vmem>>, vector<1x1x32x128xf32>,
    return
  }
  func.func @transform_0(%arg0: i32, %arg1: i32, %arg2: memref<34xi32, #tpu.memory_space<smem>>) -> (i32, i32, i32, i32) {
    %c8_i32 = arith.constant 8 : i32
    %0 = arith.muli %arg1, %c8_i32 : i32
    %c1_i32 = arith.constant 1 : i32
    %1 = arith.muli %0, %c1_i32 : i32
    %c0_i32 = arith.constant 0 : i32
    %2 = arith.addi %1, %c0_i32 : i32
    %3 = arith.index_cast %2 : i32 to index
    %4 = memref.load %arg2[%3] : memref<34xi32, #tpu.memory_space<smem>>
    %c0_i32_0 = arith.constant 0 : i32
    %c0_i32_1 = arith.constant 0 : i32
    %c0_i32_2 = arith.constant 0 : i32
    return %arg0, %4, %c0_i32_0, %c0_i32_1 : i32, i32, i32, i32
  }
  func.func @transform_1(%arg0: i32, %arg1: i32, %arg2: memref<34xi32, #tpu.memory_space<smem>>) -> (i32, i32, i32, i32) {
    %c8_i32 = arith.constant 8 : i32
    %0 = arith.muli %arg1, %c8_i32 : i32
    %c1_i32 = arith.constant 1 : i32
    %1 = arith.muli %0, %c1_i32 : i32
    %c1_i32_0 = arith.constant 1 : i32
    %2 = arith.addi %1, %c1_i32_0 : i32
    %3 = arith.index_cast %2 : i32 to index
    %4 = memref.load %arg2[%3] : memref<34xi32, #tpu.memory_space<smem>>
    %c0_i32 = arith.constant 0 : i32
    %c0_i32_1 = arith.constant 0 : i32
    %c0_i32_2 = arith.constant 0 : i32
    return %arg0, %4, %c0_i32, %c0_i32_1 : i32, i32, i32, i32
  }
  func.func @transform_2(%arg0: i32, %arg1: i32, %arg2: memref<34xi32, #tpu.memory_space<smem>>) -> (i32, i32, i32, i32) {
    %c8_i32 = arith.constant 8 : i32
    %0 = arith.muli %arg1, %c8_i32 : i32
    %c1_i32 = arith.constant 1 : i32
    %1 = arith.muli %0, %c1_i32 : i32
    %c2_i32 = arith.constant 2 : i32
    %2 = arith.addi %1, %c2_i32 : i32
    %3 = arith.index_cast %2 : i32 to index
    %4 = memref.load %arg2[%3] : memref<34xi32, #tpu.memory_space<smem>>
    %c0_i32 = arith.constant 0 : i32
    %c0_i32_0 = arith.constant 0 : i32
    %c0_i32_1 = arith.constant 0 : i32
    return %arg0, %4, %c0_i32, %c0_i32_0 : i32, i32, i32, i32
  }
  func.func @transform_3(%arg0: i32, %arg1: i32, %arg2: memref<34xi32, #tpu.memory_space<smem>>) -> (i32, i32, i32, i32) {
    %c8_i32 = arith.constant 8 : i32
    %0 = arith.muli %arg1, %c8_i32 : i32
    %c1_i32 = arith.constant 1 : i32
    %1 = arith.muli %0, %c1_i32 : i32
    %c3_i32 = arith.constant 3 : i32
    %2 = arith.addi %1, %c3_i32 : i32
    %3 = arith.index_cast %2 : i32 to index
    %4 = memref.load %arg2[%3] : memref<34xi32, #tpu.memory_space<smem>>
    %c0_i32 = arith.constant 0 : i32
    %c0_i32_0 = arith.constant 0 : i32
    %c0_i32_1 = arith.constant 0 : i32
    return %arg0, %4, %c0_i32, %c0_i32_0 : i32, i32, i32, i32
  }
  func.func @transform_4(%arg0: i32, %arg1: i32, %arg2: memref<34xi32, #tpu.memory_space<smem>>) -> (i32, i32, i32, i32) {
    %c8_i32 = arith.constant 8 : i32
    %0 = arith.muli %arg1, %c8_i32 : i32
    %c1_i32 = arith.constant 1 : i32
    %1 = arith.muli %0, %c1_i32 : i32
    %c4_i32 = arith.constant 4 : i32
    %2 = arith.addi %1, %c4_i32 : i32
    %3 = arith.index_cast %2 : i32 to index
    %4 = memref.load %arg2[%3] : memref<34xi32, #tpu.memory_space<smem>>
    %c0_i32 = arith.constant 0 : i32
    %c0_i32_0 = arith.constant 0 : i32
    %c0_i32_1 = arith.constant 0 : i32
    return %arg0, %4, %c0_i32, %c0_i32_0 : i32, i32, i32, i32
  }
  func.func @transform_5(%arg0: i32, %arg1: i32, %arg2: memref<34xi32, #tpu.memory_space<smem>>) -> (i32, i32, i32, i32) {
    %c8_i32 = arith.constant 8 : i32
    %0 = arith.muli %arg1, %c8_i32 : i32
    %c1_i32 = arith.constant 1 : i32
    %1 = arith.muli %0, %c1_i32 : i32
    %c5_i32 = arith.constant 5 : i32
    %2 = arith.addi %1, %c5_i32 : i32
    %3 = arith.index_cast %2 : i32 to index
    %4 = memref.load %arg2[%3] : memref<34xi32, #tpu.memory_space<smem>>
    %c0_i32 = arith.constant 0 : i32
    %c0_i32_0 = arith.constant 0 : i32
    %c0_i32_1 = arith.constant 0 : i32
    return %arg0, %4, %c0_i32, %c0_i32_0 : i32, i32, i32, i32
  }
  func.func @transform_6(%arg0: i32, %arg1: i32, %arg2: memref<34xi32, #tpu.memory_space<smem>>) -> (i32, i32, i32, i32) {
    %c8_i32 = arith.constant 8 : i32
    %0 = arith.muli %arg1, %c8_i32 : i32
    %c1_i32 = arith.constant 1 : i32
    %1 = arith.muli %0, %c1_i32 : i32
    %c6_i32 = arith.constant 6 : i32
    %2 = arith.addi %1, %c6_i32 : i32
    %3 = arith.index_cast %2 : i32 to index
    %4 = memref.load %arg2[%3] : memref<34xi32, #tpu.memory_space<smem>>
    %c0_i32 = arith.constant 0 : i32
    %c0_i32_0 = arith.constant 0 : i32
    %c0_i32_1 = arith.constant 0 : i32
    return %arg0, %4, %c0_i32, %c0_i32_0 : i32, i32, i32, i32
  }
  func.func @transform_7(%arg0: i32, %arg1: i32, %arg2: memref<34xi32, #tpu.memory_space<smem>>) -> (i32, i32, i32, i32) {
    %c8_i32 = arith.constant 8 : i32
    %0 = arith.muli %arg1, %c8_i32 : i32
    %c1_i32 = arith.constant 1 : i32
    %1 = arith.muli %0, %c1_i32 : i32
    %c7_i32 = arith.constant 7 : i32
    %2 = arith.addi %1, %c7_i32 : i32
    %3 = arith.index_cast %2 : i32 to index
    %4 = memref.load %arg2[%3] : memref<34xi32, #tpu.memory_space<smem>>
    %c0_i32 = arith.constant 0 : i32
    %c0_i32_0 = arith.constant 0 : i32
    %c0_i32_1 = arith.constant 0 : i32
    return %arg0, %4, %c0_i32, %c0_i32_0 : i32, i32, i32, i32
  }
  func.func @transform_8(%arg0: i32, %arg1: i32, %arg2: memref<34xi32, #tpu.memory_space<smem>>) -> (i32, i32, i32, i32) {
    %c8_i32 = arith.constant 8 : i32
    %0 = arith.muli %arg1, %c8_i32 : i32
    %c1_i32 = arith.constant 1 : i32
    %1 = arith.muli %0, %c1_i32 : i32
    %c8_i32_0 = arith.constant 8 : i32
    %2 = arith.addi %1, %c8_i32_0 : i32
    %3 = arith.index_cast %2 : i32 to index
    %4 = memref.load %arg2[%3] : memref<34xi32, #tpu.memory_space<smem>>
    %c0_i32 = arith.constant 0 : i32
    %c0_i32_1 = arith.constant 0 : i32
    %c0_i32_2 = arith.constant 0 : i32
    return %arg0, %4, %c0_i32, %c0_i32_1 : i32, i32, i32, i32
  }
  func.func @transform_9(%arg0: i32, %arg1: i32, %arg2: memref<34xi32, #tpu.memory_space<smem>>) -> (i32, i32, i32, i32) {
    %c8_i32 = arith.constant 8 : i32
    %0 = arith.muli %arg1, %c8_i32 : i32
    %c1_i32 = arith.constant 1 : i32
    %1 = arith.muli %0, %c1_i32 : i32
    %c9_i32 = arith.constant 9 : i32
    %2 = arith.addi %1, %c9_i32 : i32
    %3 = arith.index_cast %2 : i32 to index
    %4 = memref.load %arg2[%3] : memref<34xi32, #tpu.memory_space<smem>>
    %c0_i32 = arith.constant 0 : i32
    %c0_i32_0 = arith.constant 0 : i32
    %c0_i32_1 = arith.constant 0 : i32
    return %arg0, %4, %c0_i32, %c0_i32_0 : i32, i32, i32, i32
  }
  func.func @transform_10(%arg0: i32, %arg1: i32, %arg2: memref<34xi32, #tpu.memory_space<smem>>) -> (i32, i32, i32) {
    %c0_i32 = arith.constant 0 : i32
    %c0_i32_0 = arith.constant 0 : i32
    %c0_i32_1 = arith.constant 0 : i32
    %c0_i32_2 = arith.constant 0 : i32
    return %c0_i32, %c0_i32_0, %c0_i32_1 : i32, i32, i32
  }
  func.func @transform_11(%arg0: i32, %arg1: i32, %arg2: memref<34xi32, #tpu.memory_space<smem>>) -> (i32, i32) {
    %c0_i32 = arith.constant 0 : i32
    %c0_i32_0 = arith.constant 0 : i32
    %c0_i32_1 = arith.constant 0 : i32
    return %c0_i32, %c0_i32_0 : i32, i32
  }
  func.func @transform_12(%arg0: i32, %arg1: i32, %arg2: memref<34xi32, #tpu.memory_space<smem>>) -> (i32, i32, i32, i32) {
    %c0_i32 = arith.constant 0 : i32
    %c0_i32_0 = arith.constant 0 : i32
    %c0_i32_1 = arith.constant 0 : i32
    return %arg0, %arg1, %c0_i32, %c0_i32_0 : i32, i32, i32, i32
  }
}

</mosaic_0001>

<bundles_post_ra>
// kernel: upsample_conv_forward.1
= control target key start
LH: loop header
LB: loop body
LE: loop exit
PB: predicated region body
PF: predicated region fallthrough
CT: control target
= control target key end

     0   :  { %s16380_s0 = inlined_call_operand.vmem [shape: s32[34], index: 0, kind: input, shape index: {}]   ;;  %s16381_s1 = inlined_call_operand.vmem [shape: bf16[2,16,34,128], index: 1, kind: input, shape index: {}, may-alias: {1,2,3,4,5,6,7,8,9,10}]   ;;  %s16382_s2 = inlined_call_operand.vmem [shape: bf16[2,16,34,128], index: 2, kind: input, shape index: {}, may-alias: {1,2,3,4,5,6,7,8,9,10}]   ;;  %s16383_s3 = inlined_call_operand.vmem [shape: bf16[2,16,34,128], index: 3, kind: input, shape index: {}, may-alias: {1,2,3,4,5,6,7,8,9,10}]   ;;  %s16384_s4 = inlined_call_operand.vmem [shape: bf16[2,16,34,128], index: 4, kind: input, shape index: {}, may-alias: {1,2,3,4,5,6,7,8,9,10}]   ;;  %s16385_s5 = inlined_call_operand.vmem [shape: bf16[2,16,34,128], index: 5, kind: input, shape index: {}, may-alias: {1,2,3,4,5,6,7,8,9,10}]   ;;  %s16386_s6 = inlined_call_operand.vmem [shape: bf16[2,16,34,128], index: 6, kind: input, shape index: {}, may-alias: {1,2,3,4,5,6,7,8,9,10}]   ;;  %s16387_s7 = inlined_call_operand.vmem [shape: bf16[2,16,34,128], index: 7, kind: input, shape index: {}, may-alias: {1,2,3,4,5,6,7,8,9,10}]   ;;  %s16388_s8 = inlined_call_operand.vmem [shape: bf16[2,16,34,128], index: 8, kind: input, shape index: {}, may-alias: {1,2,3,4,5,6,7,8,9,10}]   ;;  %s16389_s9 = inlined_call_operand.vmem [shape: bf16[2,16,34,128], index: 9, kind: input, shape index: {}, may-alias: {1,2,3,4,5,6,7,8,9,10}]   ;;  %s16390_s10 = inlined_call_operand.vmem [shape: bf16[2,16,34,128], index: 10, kind: input, shape index: {}, may-alias: {1,2,3,4,5,6,7,8,9,10}]   ;;  %s16391_s11 = inlined_call_operand.vmem [shape: bf16[3,384,128], index: 11, kind: input, shape index: {}]   ;;  %s16392_s12 = inlined_call_operand.vmem [shape: f32[1,128], index: 12, kind: input, shape index: {}]   ;;  %s16393_s13 = inlined_call_operand.vmem [shape: f32[2,32,32,128], index: 13, kind: output, shape index: {}]  }
   0x1   :  { %16394 = sst [smem:[#allocation7_spill]] %s16381_s1  ;;  %s18_s27 = sshll.u32 %s16380_s0, 4  ;;  %s19_s27 = int_to_ptr.vmem [resolvable:$true] %s18_s27 }
   0x2   :  { %16395 = sst [smem:[#allocation8_spill]] %s16382_s2  ;;  %s13468_s28 = scalar_lea.vmem %s19_s27, 16 }
   0x3   :  { %p13469_p0 = scmp.ne.s32.totalorder %s19_s27, %s13468_s28  ;;  %p13473_p1 = scmp.lt.s32.totalorder %s19_s27, %s19_s27 }
   0x4   :  { %p13474_p2 = scmp.lt.s32.totalorder %s13468_s28, %s13468_s28 }
   0x6   :  { %p13475_p3 = por %p13474_p2, %p13473_p1 }
   0x8   :  { %p13476_p4 = pnand %p13475_p3, %p13469_p0 }
   0xa   :  { %13479 = shalt.err (!%p13476_p4)  }
   0xb   :  { %s13522_s29 = smov [#allocation3]  }
   0xc   :  { %21 = dma.vmem_to_smem %s19_s27, 16, %s13522_s29, [#allocation2] }
   0xd   :  { %13500 = dma.done.wait [#allocation2], 16 }
   0xe   :  { %13501 = vsyncadd [#allocation2], 4294967280 }
   0xf   :  { %23 = sfence }
  0x10   :  { %s13596_s30 = smov 0   ;;  %s13598_s14 = smov 0  }
  0x11   :  { %s13600_s15 = smov 0   ;;  %s13602_s0 = smov 0  }
  0x12   :  { %s13604_s16 = smov 0  }
  0x13 LB: > { %s38_s17 = sadd.s32 1, %s13512_s15  ;;  %s41_s18 = sadd.s32 1, %s13516_s0  ;;  %s13520_s16 = sphi %s13604_s16, %s29_s16   ;;  %s13516_s0 = sphi %s13602_s0, %s16405_s0   ;;  %s13512_s15 = sphi %s13600_s15, %s16404_s15   ;;  %s13508_s14 = sphi %s13598_s14, %s16403_s14   ;;  %s13504_s30 = sphi %s13596_s30, %s16402_s30  }
  0x14   : > { %p39_p5 = scmp.ge.s32.totalorder %s38_s17, 4  ;;  %p9660_p6 = scmp.ge.s32.totalorder %s13520_s16, 1 }
  0x15   : > { %p649_p7 = scmp.lt.s32.totalorder %s13520_s16, 9 }
  0x16   : > { %s16407_s17 = smov (%p39_p5, %s38_s17), 0  ;;  %s16409_s18 = smov (!%p39_p5, %s41_s18), %s13516_s0 }
  0x17   : > { %16396 = sst [smem:[#allocation5_spill]] %s16407_s17  ;;  %p650_p8 = pnand %p9660_p6, %p649_p7 }
  0x18   : > { %p43_p9 = scmp.ge.s32.totalorder %s16409_s18, 2  ;;  %v12792_v0 = vld [vmem:[%s16391_s11 + $0x40] sm:$0xff] (!%p650_p8)   ;;  %s13631_s21 = sshll.u32 (!%p650_p8), %s13504_s30, 3  ;;  %v12795_v3 = vld [vmem:[%s16391_s11 + $0x48] sm:$0xff] (!%p650_p8)   ;;  %v12798_v6 = vld [vmem:[%s16391_s11 + $0x50] sm:$0xff] (!%p650_p8)   ;;  %vm1024_vm0 = vcmask (!%p650_p8), 1046528  }
  0x19   : > { %653 = sbr.rel (%p650_p8) target bundleno = 1024 (0x400), region = 68  ;;  %v12793_v1 = vld [vmem:[%s16391_s11 + $0x80] sm:$0xff] (!%p650_p8)   ;;  %s811_s24 = sld [smem:[#allocation3 + %s13631_s21]] (!%p650_p8)  ;;  %11156 = vmatprep.subr.bf16.mxu0 (!%p650_p8), %v12792_v0  ;;  %v12796_v4 = vld [vmem:[%s16391_s11 + $0x88] sm:$0xff] (!%p650_p8)   ;;  %v12799_v7 = vld [vmem:[%s16391_s11 + $0x90] sm:$0xff] (!%p650_p8)  }
  0x1a   : > { %s16411_s18 = smov (%p43_p9, %s16409_s18), 0  ;;  %v12794_v2 = vld [vmem:[%s16391_s11] sm:$0xff] (!%p650_p8)   ;;  %p812_p10 = scmp.lt.s32.totalorder (!%p650_p8), %s13508_s14, 1  ;;  %12068 = vmatprep.subr.bf16.mxu1 (!%p650_p8), %v12793_v1  ;;  %v12797_v5 = vld [vmem:[%s16391_s11 + $0x8] sm:$0xff] (!%p650_p8)   ;;  %v12800_v8 = vld [vmem:[%s16391_s11 + $0x10] sm:$0xff] (!%p650_p8)  }
  0x1b   : > { %16397 = sst [smem:[#allocation6_spill]] %s16411_s18  ;;  %11157 = vmatpush3.bf16.msra.mxu0 (!%p650_p8), %v12794_v2  ;;  %12069 = vmatpush3.bf16.msra.mxu1 (!%p650_p8), %v12793_v1  ;;  %v12801_v9 = vld [vmem:[%s16391_s11 + $0x58] sm:$0xff] (!%p650_p8)   ;;  %v12804_v12 = vld [vmem:[%s16391_s11 + $0x60] sm:$0xff] (!%p650_p8)   ;;  %s824_s25 = sadd.s32 (!%p650_p8), 1, %s13631_s21  ;;  %v12807_v15 = vld [vmem:[%s16391_s11 + $0x68] sm:$0xff] (!%p650_p8)  }
  0x1c   : > { %11158 = vmatprep.subr.bf16.mxu0 (!%p650_p8), %v12795_v3  ;;  %12070 = vmatprep.subr.bf16.mxu1 (!%p650_p8), %v12796_v4  ;;  %v12802_v10 = vld [vmem:[%s16391_s11 + $0x98] sm:$0xff] (!%p650_p8)   ;;  %v12805_v13 = vld [vmem:[%s16391_s11 + $0xa0] sm:$0xff] (!%p650_p8)   ;;  %v12808_v16 = vld [vmem:[%s16391_s11 + $0xa8] sm:$0xff] (!%p650_p8)   ;;  %s13691_s29 = sld [smem:[#allocation3 + %s824_s25]] (!%p650_p8)  ;;  %vm998_vm1 = vsmask.f32 (!%p650_p8), 7424 }
  0x1d   : > { %v12803_v11 = vld [vmem:[%s16391_s11 + $0x18] sm:$0xff] (!%p650_p8)   ;;  %v12806_v14 = vld [vmem:[%s16391_s11 + $0x20] sm:$0xff] (!%p650_p8)   ;;  %v12809_v17 = vld [vmem:[%s16391_s11 + $0x28] sm:$0xff] (!%p650_p8)   ;;  %s16398_s1 = sld [smem:[#allocation7_spill]] (!%p650_p8)  ;;  %s16399_s2 = sld [smem:[#allocation8_spill]] (!%p650_p8) }
  0x1e   : > { %v12810_v18 = vld [vmem:[%s16391_s11 + $0x70] sm:$0xff] (!%p650_p8)   ;;  %v12813_v21 = vld [vmem:[%s16391_s11 + $0x78] sm:$0xff] (!%p650_p8)   ;;  %v12819_v33 = vld [vmem:[%s16391_s11 + $0x100] sm:$0xff] (!%p650_p8)   ;;  %p961_p2 = scmp.lt.s32.totalorder (!%p650_p8), %s13631_s21, 31 }
  0x1f   : > { %p814_p11 = scmp.lt.s32.totalorder (!%p650_p8), %s811_s24, 15  ;;  %11159 = vmatpush3.bf16.msra.mxu0 (!%p650_p8), %v12797_v5  ;;  %12071 = vmatpush3.bf16.msra.mxu1 (!%p650_p8), %v12796_v4  ;;  %v12811_v19 = vld [vmem:[%s16391_s11 + $0xb0] sm:$0xff] (!%p650_p8)   ;;  %v12814_v22 = vld [vmem:[%s16391_s11 + $0xb8] sm:$0xff] (!%p650_p8)   ;;  %v12820_v35 = vld [vmem:[%s16391_s11 + $0x140] sm:$0xff] (!%p650_p8)  }
  0x20   : > { %s16413_s14 = smov (!%p812_p10, %s13508_s14), 1  ;;  %11160 = vmatprep.subr.bf16.mxu0 %v12798_v6  ;;  %12072 = vmatprep.subr.bf16.mxu1 %v12799_v7  ;;  %v12812_v20 = vld [vmem:[%s16391_s11 + $0x30] sm:$0xff]   ;;  %v12815_v27 = vld [vmem:[%s16391_s11 + $0x38] sm:$0xff]   ;;  %v12822_v43 = vld [vmem:[%s16391_s11 + $0xc0] sm:$0xff]  }
  0x21   : > { %s16415_s24 = smov (!%p814_p11, %s811_s24), 15  ;;  %s13669_s22 = smul.u32 80, %s16413_s14  ;;  %v12823_v44 = vld [vmem:[%s16391_s11 + $0x108] sm:$0xff]   ;;  %v12826_v53 = vld [vmem:[%s16391_s11 + $0x110] sm:$0xff]   ;;  %v12829_v57 = vld [vmem:[%s16391_s11 + $0x118] sm:$0xff]  }
  0x22   : > { %s12740_s26 = smul.u32 5, %s16415_s24  ;;  %p828_p12 = scmp.lt.s32.totalorder %s13691_s29, 15  ;;  %v12824_v48 = vld [vmem:[%s16391_s11 + $0x148] sm:$0xff]   ;;  %v12827_v54 = vld [vmem:[%s16391_s11 + $0x150] sm:$0xff]   ;;  %v12830_v58 = vld [vmem:[%s16391_s11 + $0x158] sm:$0xff]  }
  0x23   : > { %11161 = vmatpush3.bf16.msra.mxu0 %v12800_v8  ;;  %12073 = vmatpush3.bf16.msra.mxu1 %v12799_v7  ;;  %v12825_v51 = vld [vmem:[%s16391_s11 + $0xc8] sm:$0xff]   ;;  %v12828_v56 = vld [vmem:[%s16391_s11 + $0xd0] sm:$0xff]   ;;  %v12831_v59 = vld [vmem:[%s16391_s11 + $0xd8] sm:$0xff]   ;;  %s9683_s25 = sshll.u32 %s16413_s14, 7 }
  0x24   : > { %11162 = vmatprep.subr.bf16.mxu0 %v12801_v9  ;;  %12074 = vmatprep.subr.bf16.mxu1 %v12802_v10  ;;  %s818_s23 = sadd.s32 %s13669_s22, %s12740_s26  ;;  %s16417_s29 = smov (!%p828_p12, %s13691_s29), 15  ;;  %v12832_v60 = vld [vmem:[%s16391_s11 + $0x120] sm:$0xff]   ;;  %v12835_v63 = vld [vmem:[%s16391_s11 + $0x128] sm:$0xff]   ;;  %v12838_v2 = vld [vmem:[%s16391_s11 + $0x130] sm:$0xff]  }
  0x25   : > { %s9662_s30 = sshll.u32 %s818_s23, 2  ;;  %s12742_s26 = smul.u32 5, %s16417_s29  ;;  %v12833_v61 = vld [vmem:[%s16391_s11 + $0x160] sm:$0xff]   ;;  %v12836_v0 = vld [vmem:[%s16391_s11 + $0x168] sm:$0xff]   ;;  %v12839_v3 = vld [vmem:[%s16391_s11 + $0x170] sm:$0xff]  }
  0x26   : > { %s13705_s23 = scalar_lea.vmem %s16398_s1, %s9662_s30  ;;  %s839_s29 = sadd.s32 2, %s13631_s21  ;;  %v12834_v62 = vld [vmem:[%s16391_s11 + $0xe0] sm:$0xff]   ;;  %v12837_v1 = vld [vmem:[%s16391_s11 + $0xe8] sm:$0xff]   ;;  %v12840_v9 = vld [vmem:[%s16391_s11 + $0xf0] sm:$0xff]  }
  0x27   : > { %11163 = vmatpush3.bf16.msra.mxu0 %v12803_v11  ;;  %12075 = vmatpush3.bf16.msra.mxu1 %v12802_v10  ;;  %v977_v23 = vld [vmem:[%s13705_s23] sm:$0xf]  ;;  %v978_v24 = vld [vmem:[%s13705_s23 + $0x4] sm:$0xf]  ;;  %v12817_v26 = vld [vmem:[%s13705_s23 + $0x8] sm:$0xff]   ;;  %s832_s27 = sadd.s32 %s12742_s26, %s13669_s22  ;;  %s13776_s26 = sld [smem:[#allocation3 + %s839_s29]] }
  0x28   : > { %11164 = vmatprep.subr.bf16.mxu0 %v12804_v12  ;;  %12076 = vmatprep.subr.bf16.mxu1 %v12805_v13  ;;  %v9686_v25 = vcombine.low %v977_v23, %v978_v24  ;;  %v982_v28 = vld [vmem:[%s13705_s23] sm:$0xe]  ;;  %v1007_v31 = vshll.u32 %v12817_v26, 16  ;;  %v1026_v34 = vrot.slane %v12817_v26, 1  ;;  %v1011_v45 = vshrl.u32 %v12817_v26, 16  ;;  %s9664_s30 = sshll.u32 %s832_s27, 2 }
  0x29   : > { %v9689_v32 = vcombine.low %v982_v28, %v978_v24  ;;  %v12821_v39 = vld [vmem:[%s13705_s23 + $0x10] ss:$0 sps:$4 sm:$0x11]   ;;  %s13787_s1 = scalar_lea.vmem %s16399_s2, %s9664_s30  ;;  %v12847_v24 = vld [vmem:[%s16391_s11 + $0x1c0] sm:$0xff]   ;;  %s869_s23 = sadd.s32 4, %s13631_s21 }
  0x2a   : > { %v1000_v29 = vshrl.u32 %v9686_v25, 16  ;;  %v1002_v30 = vshll.u32 %v9686_v25, 16  ;;  %v1009_v37 = vrot.slane %v1007_v31, 1  ;;  %v1028_v42 = vrot.slane %v12821_v39, 1  ;;  %v1326_v4 = vld [vmem:[%s13787_s1] sm:$0xf] }
  0x2b   : > { %11165 = vmatpush3.bf16.msra.mxu0 %v12806_v14  ;;  %12077 = vmatpush3.bf16.msra.mxu1 %v12805_v13  ;;  %v1025_v38 = vrot.slane %v9689_v32, 1  ;;  %v1015_v49 = vshll.u32 %v12821_v39, 16  ;;  %v1327_v5 = vld [vmem:[%s13787_s1 + $0x4] sm:$0xf]  ;;  %v13804_v7 = vld [vmem:[%s13787_s1 + $0x8] sm:$0xff]   ;;  %v12855_v39 = vld [vmem:[%s16391_s11 + $0x210] sm:$0xff]  }
  0x2c   : > { %11166 = vmatprep.subr.bf16.mxu0 %v12807_v15  ;;  %12078 = vmatprep.subr.bf16.mxu1 %v12808_v16  ;;  %v1004_v36 = vrot.slane %v1002_v30, 1  ;;  %v1029_v47 = vsel %vm1024_vm0, %v1026_v34, %v1028_v42  ;;  %v1013_v50 = vor.u32 %v1011_v45, %v1009_v37  ;;  %v9714_v6 = vcombine.low %v1326_v4, %v1327_v5  ;;  %v1331_v8 = vld [vmem:[%s13787_s1] sm:$0xe]  ;;  %v12841_v15 = vld [vmem:[%s16391_s11 + $0x138] sm:$0xff]   ;;  %v12868_v4 = vld [vmem:[%s16391_s11 + $0x1b0] sm:$0xff]   ;;  %s14591_s27 = scalar_select %p961_p2, %s13631_s21, 31 }
  0x2d   : > { %v1027_v41 = vsel %vm1024_vm0, %v1025_v38, %v1026_v34  ;;  %v1017_v52 = vrot.slane %v1015_v49, 1  ;;  %v9717_v10 = vcombine.low %v1331_v8, %v1327_v5  ;;  %p843_p13 = scmp.lt.s32.totalorder %s13776_s26, 15  ;;  %v1355_v13 = vshll.u32 %v13804_v7, 16  ;;  %v12848_v28 = vld [vmem:[%s16391_s11 + $0x200] sm:$0xff]   ;;  %v12851_v34 = vld [vmem:[%s16391_s11 + $0x1c8] sm:$0xff]   ;;  %v12854_v38 = vld [vmem:[%s16391_s11 + $0x1d0] sm:$0xff]  }
  0x2e   : > { %v1005_v40 = vor.u32 %v1004_v36, %v1000_v29  ;;  %12084 = vmatprep.mubr.bf16.mxu1 %v1027_v41  ;;  %v1348_v11 = vshrl.u32 %v9714_v6, 16  ;;  %v1350_v12 = vshll.u32 %v9714_v6, 16  ;;  %v1373_v14 = vrot.slane %v13804_v7, 1  ;;  %v12850_v30 = vld [vmem:[%s16391_s11 + $0x180] sm:$0xff]   ;;  %v12853_v36 = vld [vmem:[%s16391_s11 + $0x188] sm:$0xff]   ;;  %v12857_v41 = vld [vmem:[%s16391_s11 + $0x1d8] sm:$0xff]  }
  0x2f   : > { %11167 = vmatpush3.bf16.msra.mxu0 %v12809_v17  ;;  %12079 = vmatpush3.bf16.msra.mxu1 %v12808_v16  ;;  %v1018_v55 = vsel %vm998_vm1, %v1013_v50, %v1017_v52  ;;  %v1372_v16 = vrot.slane %v9717_v10, 1  ;;  %v12842_v17 = vld [vmem:[%s16391_s11 + $0x178] sm:$0xff]   ;;  %s16419_s26 = smov (!%p843_p13, %s13776_s26), 15  ;;  %v12861_v45 = vld [vmem:[%s16391_s11 + $0x220] sm:$0xff]   ;;  %s899_s2 = sadd.s32 6, %s13631_s21 }
  0x30   : > { %11168 = vmatprep.subr.bf16.mxu0 %v12810_v18  ;;  %12080 = vmatprep.subr.bf16.mxu1 %v12811_v19  ;;  %v1010_v46 = vsel %vm998_vm1, %v1005_v40, %v1009_v37  ;;  %v1352_v18 = vrot.slane %v1350_v12, 1  ;;  %s12743_s24 = smul.u32 5, %s16419_s26  ;;  %v12856_v40 = vld [vmem:[%s16391_s11 + $0x190] sm:$0xff]   ;;  %v12858_v42 = vld [vmem:[%s16391_s11 + $0x218] sm:$0xff]   ;;  %v12876_v12 = vld [vmem:[%s16391_s11 + $0x40] sm:$0xff]  }
  0x31   : > { %1256 = vmatprep.mubr.bf16.mxu0 %v1010_v46  ;;  %v12862_v46 = vld [vmem:[%s16391_s11 + $0x1a0] sm:$0xff]   ;;  %v12869_v5 = vld [vmem:[%s16391_s11 + $0x1f8] sm:$0xff]  }
  0x32   : > { %v1353_v23 = vor.u32 %v1352_v18, %v1348_v11  ;;  %s847_s26 = sadd.s32 %s12743_s24, %s13669_s22  ;;  %v12871_v8 = vld [vmem:[%s16391_s11 + $0x1b8] sm:$0xff]   ;;  %v12879_v18 = vld [vmem:[%s16391_s11 + $0x48] sm:$0xff]  }
  0x33   : > { %11169 = vmatpush3.bf16.msra.mxu0 %v12812_v20  ;;  %12081 = vmatpush3.bf16.msra.mxu1 %v12811_v19  ;;  %v1357_v19 = vrot.slane %v1355_v13, 1  ;;  %v12849_v20 = vld [vmem:[%s13787_s1 + $0x10] ss:$0 sps:$4 sm:$0x11]   ;;  %s9666_s17 = sshll.u32 %s847_s26, 2  ;;  %v12877_v13 = vld [vmem:[%s16391_s11 + $0x80] sm:$0xff]  }
  0x34   : > { %11170 = vmatprep.subr.bf16.mxu0 %v12813_v21  ;;  %12082 = vmatprep.subr.bf16.mxu1 %v12814_v22  ;;  %v12843_v21 = vld [vmem:[%s16391_s11 + $0xf8] sm:$0xff]   ;;  %v1363_v29 = vshll.u32 %v12849_v20, 16  ;;  %s13875_s18 = scalar_lea.vmem %s16383_s3, %s9666_s17  ;;  %s854_s26 = sadd.s32 3, %s13631_s21 }
  0x35   : > { %v1674_v49 = vld [vmem:[%s13875_s18] sm:$0xf]  ;;  %v1675_v50 = vld [vmem:[%s13875_s18 + $0x4] sm:$0xf]  ;;  %v13892_v52 = vld [vmem:[%s13875_s18 + $0x8] sm:$0xff]   ;;  %s14030_s24 = sld [smem:[#allocation3 + %s854_s26]] }
  0x36   : > { %v1365_v32 = vrot.slane %v1363_v29, 1  ;;  %v12889_v29 = vld [vmem:[%s16391_s11 + $0xa0] sm:$0xff]  }
  0x37   : > { %11171 = vmatpush3.bf16.msra.mxu0 %v12815_v27  ;;  %12083 = vmatpush3.bf16.msra.mxu1 %v12814_v22  ;;  %v1374_v22 = vsel %vm1024_vm0, %v1372_v16, %v1373_v14  ;;  %v1358_v27 = vsel %vm998_vm1, %v1353_v23, %v1357_v19  ;;  %v12883_v23 = vld [vmem:[%s16391_s11 + $0x90] sm:$0xff]  }
  0x38   : > { %11194 = vmatprep.subr.bf16.mxu0 %v12819_v33  ;;  %12088 = vmatprep.subr.bf16.mxu1 %v12820_v35 }
  0x3a   : > { %1257 = vmatmul.mubr.bf16.vlgmr.msra.gmra.mrb[0].mxu0 %v9686_v25  ;;  %12085 = vmatmul.mubr.bf16.vlgmr.msra.gmra.mrb[0].mxu1 %v1029_v47  ;;  %v1375_v25 = vrot.slane %v12849_v20, 1  ;;  %v12863_v47 = vld [vmem:[%s16391_s11 + $0x1e8] sm:$0xff]  }
  0x3b   : > { %11195 = vmatpush3.bf16.msra.mxu0 %v12822_v43  ;;  %12089 = vmatpush3.bf16.msra.mxu1 %v12820_v35  ;;  %v12852_v35 = vld [vmem:[%s16391_s11 + $0x208] sm:$0xff]   ;;  %v12859_v43 = vld [vmem:[%s16391_s11 + $0x198] sm:$0xff]   ;;  %p858_p0 = scmp.lt.s32.totalorder %s14030_s24, 15 }
  0x3c   : > { %11196 = vmatprep.subr.bf16.mxu0 %v12823_v44  ;;  %12090 = vmatprep.subr.bf16.mxu1 %v12824_v48  ;;  %v1376_v33 = vsel %vm1024_vm0, %v1373_v14, %v1375_v25  ;;  %v12860_v44 = vld [vmem:[%s16391_s11 + $0x1e0] sm:$0xff]   ;;  %v12881_v20 = vld [vmem:[%s16391_s11 + $0x8] sm:$0xff]   ;;  %v12885_v25 = vld [vmem:[%s16391_s11 + $0x58] sm:$0xff]  }
  0x3d   : > { %1264 = vmatprep.mubr.bf16.mxu0 %v1018_v55  ;;  %12104 = vmatprep.mubr.bf16.mxu1 %v1374_v22  ;;  %v12878_v14 = vld [vmem:[%s16391_s11] sm:$0xff]   ;;  %v12882_v22 = vld [vmem:[%s16391_s11 + $0x50] sm:$0xff]   ;;  %s16421_s24 = smov (!%p858_p0, %s14030_s24), 15 }
  0x3e   : > { %s12744_s19 = smul.u32 5, %s16421_s24 }
  0x3f   : > { %11197 = vmatpush3.bf16.msra.mxu0 %v12825_v51  ;;  %12091 = vmatpush3.bf16.msra.mxu1 %v12824_v48  ;;  %v12864_v48 = vld [vmem:[%s16391_s11 + $0x228] sm:$0xff]   ;;  %v9790_v51 = vcombine.low %v1674_v49, %v1675_v50  ;;  %v12894_v49 = vld [vmem:[%s16391_s11 + $0x70] sm:$0xff]  }
  0x40   : > { %11198 = vmatprep.subr.bf16.mxu0 %v12826_v53  ;;  %12092 = vmatprep.subr.bf16.mxu1 %v12827_v54  ;;  %v1679_v53 = vld [vmem:[%s13875_s18] sm:$0xe]  ;;  %s862_s30 = sadd.s32 %s12744_s19, %s13669_s22 }
  0x41   : > { %v1698_v55 = vshll.u32 %v9790_v51, 16  ;;  %s9668_s29 = sshll.u32 %s862_s30, 2  ;;  %s884_s30 = sadd.s32 5, %s13631_s21 }
  0x42   : > { %1265 = vmatmul.mubr.bf16.gmra.mrb[4].mxu0 %v12817_v26  ;;  %v1359_v26 = vshrl.u32 %v13804_v7, 16  ;;  %s14120_s17 = scalar_lea.vmem %s16384_s4, %s9668_s29 }
  0x43   : > { %11199 = vmatpush3.bf16.msra.mxu0 %v12828_v56  ;;  %12093 = vmatpush3.bf16.msra.mxu1 %v12827_v54  ;;  %v1696_v54 = vshrl.u32 %v9790_v51, 16  ;;  %v1703_v56 = vshll.u32 %v13892_v52, 16 }
  0x44   : > { %11200 = vmatprep.subr.bf16.mxu0 %v12829_v57  ;;  %12094 = vmatprep.subr.bf16.mxu1 %v12830_v58  ;;  %v1361_v31 = vor.u32 %v1359_v26, %v1357_v19  ;;  %v9793_v57 = vcombine.low %v1679_v53, %v1675_v50  ;;  %v12880_v19 = vld [vmem:[%s16391_s11 + $0x88] sm:$0xff]   ;;  %v12886_v26 = vld [vmem:[%s16391_s11 + $0x98] sm:$0xff]   ;;  %v12896_v53 = vld [vmem:[%s16391_s11 + $0x30] sm:$0xff]  }
  0x45   : > { %1604 = vmatprep.mubr.bf16.mxu0 %v1358_v27  ;;  %v12887_v27 = vld [vmem:[%s16391_s11 + $0x18] sm:$0xff]  }
  0x46   : > { %v1366_v37 = vsel %vm998_vm1, %v1361_v31, %v1365_v32  ;;  %v2027_v31 = vld [vmem:[%s13787_s1 + $0x4] sm:$0xf] }
  0x47   : > { %11201 = vmatpush3.bf16.msra.mxu0 %v12831_v59  ;;  %12095 = vmatpush3.bf16.msra.mxu1 %v12830_v58  ;;  %v12865_v58 = vld [vmem:[%s16391_s11 + $0x1a8] sm:$0xff]   ;;  %v1721_v59 = vrot.slane %v13892_v52, 1 }
  0x48   : > { %11202 = vmatprep.subr.bf16.mxu0 %v12832_v60  ;;  %12096 = vmatprep.subr.bf16.mxu1 %v12833_v61  ;;  %v12866_v60 = vld [vmem:[%s16391_s11 + $0x1f0] sm:$0xff]  }
  0x4b   : > { %11203 = vmatpush3.bf16.msra.mxu0 %v12834_v62  ;;  %12097 = vmatpush3.bf16.msra.mxu1 %v12833_v61  ;;  %v1700_v61 = vrot.slane %v1698_v55, 1  ;;  %v1705_v62 = vrot.slane %v1703_v56, 1  ;;  %v12898_v55 = vld [vmem:[%s16391_s11 + $0xb8] sm:$0xff]  }
  0x4c   : > { %11204 = vmatprep.subr.bf16.mxu0 %v12835_v63  ;;  %12098 = vmatprep.subr.bf16.mxu1 %v12836_v0  ;;  %v1720_v63 = vrot.slane %v9793_v57, 1  ;;  %v12899_v56 = vld [vmem:[%s16391_s11 + $0x38] sm:$0xff]  }
  0x4f   : > { %11205 = vmatpush3.bf16.msra.mxu0 %v12837_v1  ;;  %12099 = vmatpush3.bf16.msra.mxu1 %v12836_v0  ;;  %v12867_v0 = vld [vmem:[%s16391_s11 + $0x230] sm:$0xff]   ;;  %v1701_v1 = vor.u32 %v1700_v61, %v1696_v54  ;;  %v12897_v54 = vld [vmem:[%s16391_s11 + $0x78] sm:$0xff]   ;;  %v12904_v61 = vld [vmem:[%s16391_s11 + $0x140] sm:$0xff]  }
  0x50   : > { %11206 = vmatprep.subr.bf16.mxu0 %v12838_v2  ;;  %12100 = vmatprep.subr.bf16.mxu1 %v12839_v3  ;;  %v1722_v2 = vsel %vm1024_vm0, %v1720_v63, %v1721_v59 }
  0x53   : > { %11207 = vmatpush3.bf16.msra.mxu0 %v12840_v9  ;;  %12101 = vmatpush3.bf16.msra.mxu1 %v12839_v3  ;;  %v12875_v3 = vld [vmem:[%s13875_s18 + $0x10] ss:$0 sps:$4 sm:$0x11]   ;;  %v1707_v9 = vshrl.u32 %v13892_v52, 16 }
  0x54   : > { %11208 = vmatprep.subr.bf16.mxu0 %v12841_v15  ;;  %12102 = vmatprep.subr.bf16.mxu1 %v12842_v17  ;;  %v1711_v10 = vshll.u32 %v12875_v3, 16  ;;  %v1723_v11 = vrot.slane %v12875_v3, 1  ;;  %v12908_v3 = vld [vmem:[%s16391_s11 + $0x148] sm:$0xff]  }
  0x55   : > { %v1709_v15 = vor.u32 %v1707_v9, %v1705_v62  ;;  %v12913_v9 = vld [vmem:[%s16391_s11 + $0x118] sm:$0xff]  }
  0x56   : > { %v1713_v16 = vrot.slane %v1711_v10, 1  ;;  %v2373_v10 = vld [vmem:[%s13875_s18] sm:$0xf] }
  0x57   : > { %11209 = vmatpush3.bf16.msra.mxu0 %v12843_v21  ;;  %12103 = vmatpush3.bf16.msra.mxu1 %v12842_v17  ;;  %v1724_v17 = vsel %vm1024_vm0, %v1721_v59, %v1723_v11  ;;  %v12903_v59 = vld [vmem:[%s16391_s11 + $0x100] sm:$0xff]  }
  0x58   : > { %11232 = vmatprep.subr.bf16.mxu0 %v12847_v24  ;;  %12108 = vmatprep.subr.bf16.mxu1 %v12848_v28  ;;  %v1714_v21 = vsel %vm998_vm1, %v1709_v15, %v1713_v16  ;;  %v12884_v24 = vld [vmem:[%s16391_s11 + $0x10] sm:$0xff]   ;;  %v2374_v11 = vld [vmem:[%s13875_s18 + $0x4] sm:$0xf]  ;;  %v12914_v15 = vld [vmem:[%s16391_s11 + $0x158] sm:$0xff]  }
  0x5a   : > { %1605 = vmatmul.mubr.bf16.vlgmr.msra.gmra.mrb[8].mxu0 %v9714_v6  ;;  %12105 = vmatmul.mubr.bf16.vlgmr.msra.gmra.mrb[0].mxu1 %v1376_v33  ;;  %v1706_v6 = vsel %vm998_vm1, %v1701_v1, %v1705_v62  ;;  %v13970_v33 = vld [vmem:[%s13787_s1 + $0x8] sm:$0xff]   ;;  %v12906_v62 = vld [vmem:[%s16391_s11 + $0xc0] sm:$0xff]  }
  0x5b   : > { %11233 = vmatpush3.bf16.msra.mxu0 %v12850_v30  ;;  %12109 = vmatpush3.bf16.msra.mxu1 %v12848_v28  ;;  %v12888_v28 = vld [vmem:[%s16391_s11 + $0x60] sm:$0xff]   ;;  %v2059_v57 = vshrl.u32 %v13970_v33, 16 }
  0x5c   : > { %11234 = vmatprep.subr.bf16.mxu0 %v12851_v34  ;;  %12110 = vmatprep.subr.bf16.mxu1 %v12852_v35  ;;  %v2026_v30 = vld [vmem:[%s13787_s1] sm:$0xf] }
  0x5d   : > { %1612 = vmatprep.mubr.bf16.mxu0 %v1366_v37  ;;  %12124 = vmatprep.mubr.bf16.mxu1 %v1722_v2  ;;  %v9866_v32 = vcombine.low %v2026_v30, %v2027_v31  ;;  %v2031_v34 = vld [vmem:[%s13787_s1] sm:$0xe]  ;;  %v2055_v37 = vshll.u32 %v13970_v33, 16  ;;  %v12907_v2 = vld [vmem:[%s16391_s11 + $0x108] sm:$0xff]  }
  0x5e   : > { %v12919_v30 = vld [vmem:[%s16391_s11 + $0x128] sm:$0xff]  }
  0x5f   : > { %11235 = vmatpush3.bf16.msra.mxu0 %v12853_v36  ;;  %12111 = vmatpush3.bf16.msra.mxu1 %v12852_v35  ;;  %v2048_v35 = vshrl.u32 %v9866_v32, 16  ;;  %v2050_v36 = vshll.u32 %v9866_v32, 16 }
  0x60   : > { %11236 = vmatprep.subr.bf16.mxu0 %v12854_v38  ;;  %12112 = vmatprep.subr.bf16.mxu1 %v12855_v39  ;;  %v9869_v38 = vcombine.low %v2031_v34, %v2027_v31  ;;  %v12922_v34 = vld [vmem:[%s16391_s11 + $0x130] sm:$0xff]  }
  0x62   : > { %1613 = vmatmul.mubr.bf16.gmra.mrb[12].mxu0 %v13804_v7  ;;  %v12870_v7 = vld [vmem:[%s16391_s11 + $0x238] sm:$0xff]  }
  0x63   : > { %11237 = vmatpush3.bf16.msra.mxu0 %v12856_v40  ;;  %12113 = vmatpush3.bf16.msra.mxu1 %v12855_v39  ;;  %v2073_v39 = vrot.slane %v13970_v33, 1  ;;  %v12890_v40 = vld [vmem:[%s16391_s11 + $0x20] sm:$0xff]  }
  0x64   : > { %11238 = vmatprep.subr.bf16.mxu0 %v12857_v41  ;;  %12114 = vmatprep.subr.bf16.mxu1 %v12858_v42  ;;  %v12891_v41 = vld [vmem:[%s16391_s11 + $0x68] sm:$0xff]  }
  0x65   : > { %1952 = vmatprep.mubr.bf16.mxu0 %v1706_v6  ;;  %v12910_v6 = vld [vmem:[%s16391_s11 + $0x110] sm:$0xff]  }
  0x67   : > { %11239 = vmatpush3.bf16.msra.mxu0 %v12859_v43  ;;  %12115 = vmatpush3.bf16.msra.mxu1 %v12858_v42  ;;  %v2052_v42 = vrot.slane %v2050_v36, 1  ;;  %v2057_v43 = vrot.slane %v2055_v37, 1  ;;  %v12933_v36 = vld [vmem:[%s13875_s18 + $0x10] ss:$0 sps:$4 sm:$0x11]  }
  0x68   : > { %11240 = vmatprep.subr.bf16.mxu0 %v12860_v44  ;;  %12116 = vmatprep.subr.bf16.mxu1 %v12861_v45  ;;  %v2072_v44 = vrot.slane %v9869_v38, 1  ;;  %v12924_v37 = vld [vmem:[%s16391_s11 + $0xf0] sm:$0xff]   ;;  %v12925_v38 = vld [vmem:[%s16391_s11 + $0x138] sm:$0xff]  }
  0x69   : > { %v2061_v63 = vor.u32 %v2059_v57, %v2057_v43  ;;  %v14139_v57 = vld [vmem:[%s14120_s17 + $0x8] sm:$0xff]  }
  0x6b   : > { %11241 = vmatpush3.bf16.msra.mxu0 %v12862_v46  ;;  %12117 = vmatpush3.bf16.msra.mxu1 %v12861_v45  ;;  %v12892_v45 = vld [vmem:[%s16391_s11 + $0xa8] sm:$0xff]   ;;  %v2053_v46 = vor.u32 %v2052_v42, %v2048_v35  ;;  %v12923_v35 = vld [vmem:[%s16391_s11 + $0x170] sm:$0xff]   ;;  %v2410_v42 = vshll.u32 %v12933_v36, 16 }
  0x6c   : > { %11242 = vmatprep.subr.bf16.mxu0 %v12863_v47  ;;  %12118 = vmatprep.subr.bf16.mxu1 %v12864_v48  ;;  %v2074_v47 = vsel %vm1024_vm0, %v2072_v44, %v2073_v39  ;;  %v2422_v44 = vrot.slane %v12933_v36, 1  ;;  %v14221_v36 = vld [vmem:[%s13875_s18 + $0x8] sm:$0xff]  }
  0x6d   : > { %v2058_v50 = vsel %vm998_vm1, %v2053_v46, %v2057_v43  ;;  %v12931_v43 = vld [vmem:[%s16391_s11 + $0x1c0] sm:$0xff]  }
  0x6e   : > { %v12934_v46 = vld [vmem:[%s16391_s11 + $0x180] sm:$0xff]  }
  0x6f   : > { %11243 = vmatpush3.bf16.msra.mxu0 %v12865_v58  ;;  %12119 = vmatpush3.bf16.msra.mxu1 %v12864_v48  ;;  %v12893_v48 = vld [vmem:[%s16391_s11 + $0x28] sm:$0xff]  }
  0x70   : > { %11244 = vmatprep.subr.bf16.mxu0 %v12866_v60  ;;  %12120 = vmatprep.subr.bf16.mxu1 %v12867_v0 }
  0x73   : > { %11245 = vmatpush3.bf16.msra.mxu0 %v12868_v4  ;;  %12121 = vmatpush3.bf16.msra.mxu1 %v12867_v0  ;;  %v12909_v4 = vld [vmem:[%s16391_s11 + $0xc8] sm:$0xff]  }
  0x74   : > { %11246 = vmatprep.subr.bf16.mxu0 %v12869_v5  ;;  %12122 = vmatprep.subr.bf16.mxu1 %v12870_v7 }
  0x77   : > { %11247 = vmatpush3.bf16.msra.mxu0 %v12871_v8  ;;  %12123 = vmatpush3.bf16.msra.mxu1 %v12870_v7  ;;  %v12911_v7 = vld [vmem:[%s16391_s11 + $0x150] sm:$0xff]  }
  0x78   : > { %11270 = vmatprep.subr.bf16.mxu0 %v12876_v12  ;;  %12128 = vmatprep.subr.bf16.mxu1 %v12877_v13  ;;  %v12912_v8 = vld [vmem:[%s16391_s11 + $0xd0] sm:$0xff]   ;;  %v14046_v12 = vcombine.low %v2373_v10, %v2374_v11  ;;  %v12943_v10 = vld [vmem:[%s16391_s11 + $0x198] sm:$0xff]  }
  0x7a   : > { %1953 = vmatmul.mubr.bf16.vlgmr.msra.gmra.mrb[16].mxu0 %v9790_v51  ;;  %12125 = vmatmul.mubr.bf16.vlgmr.msra.gmra.mrb[0].mxu1 %v1724_v17  ;;  %v12895_v51 = vld [vmem:[%s16391_s11 + $0xb0] sm:$0xff]   ;;  %v2395_v17 = vshrl.u32 %v14046_v12, 16 }
  0x7b   : > { %11271 = vmatpush3.bf16.msra.mxu0 %v12878_v14  ;;  %12129 = vmatpush3.bf16.msra.mxu1 %v12877_v13  ;;  %v14049_v13 = vld [vmem:[%s13875_s18 + $0x8] sm:$0xff]   ;;  %v2378_v14 = vld [vmem:[%s13875_s18] sm:$0xe] }
  0x7c   : > { %11272 = vmatprep.subr.bf16.mxu0 %v12879_v18  ;;  %12130 = vmatprep.subr.bf16.mxu1 %v12880_v19  ;;  %v9897_v16 = vcombine.low %v2378_v14, %v2374_v11  ;;  %v2397_v18 = vshll.u32 %v14046_v12, 16  ;;  %v12944_v11 = vld [vmem:[%s16391_s11 + $0x1e0] sm:$0xff]  }
  0x7d   : > { %1960 = vmatprep.mubr.bf16.mxu0 %v1714_v21  ;;  %12144 = vmatprep.mubr.bf16.mxu1 %v2074_v47  ;;  %v12945_v14 = vld [vmem:[%s16391_s11 + $0x220] sm:$0xff]  }
  0x7e   : > { %v2419_v21 = vrot.slane %v9897_v16, 1  ;;  %v12948_v16 = vld [vmem:[%s16391_s11 + $0x228] sm:$0xff]  }
  0x7f   : > { %11273 = vmatpush3.bf16.msra.mxu0 %v12881_v20  ;;  %12131 = vmatpush3.bf16.msra.mxu1 %v12880_v19  ;;  %v2402_v19 = vshll.u32 %v14049_v13, 16  ;;  %v2420_v20 = vrot.slane %v14049_v13, 1 }
  0x80   : > { %11274 = vmatprep.subr.bf16.mxu0 %v12882_v22  ;;  %12132 = vmatprep.subr.bf16.mxu1 %v12883_v23  ;;  %v12915_v22 = vld [vmem:[%s16391_s11 + $0xd8] sm:$0xff]  }
  0x82   : > { %1961 = vmatmul.mubr.bf16.gmra.mrb[20].mxu0 %v13892_v52  ;;  %v12905_v52 = vld [vmem:[%s13787_s1 + $0x10] ss:$0 sps:$4 sm:$0x11]  }
  0x83   : > { %11275 = vmatpush3.bf16.msra.mxu0 %v12884_v24  ;;  %12133 = vmatpush3.bf16.msra.mxu1 %v12883_v23  ;;  %v2063_v58 = vshll.u32 %v12905_v52, 16  ;;  %v2075_v60 = vrot.slane %v12905_v52, 1  ;;  %v12916_v23 = vld [vmem:[%s16391_s11 + $0x120] sm:$0xff]   ;;  %v12937_v52 = vld [vmem:[%s16391_s11 + $0x188] sm:$0xff]  }
  0x84   : > { %11276 = vmatprep.subr.bf16.mxu0 %v12885_v25  ;;  %12134 = vmatprep.subr.bf16.mxu1 %v12886_v26  ;;  %v12917_v24 = vld [vmem:[%s16391_s11 + $0x160] sm:$0xff]   ;;  %v2399_v25 = vrot.slane %v2397_v18, 1  ;;  %v12950_v18 = vld [vmem:[%s16391_s11 + $0x1f0] sm:$0xff]  }
  0x85   : > { %2303 = vmatprep.mubr.bf16.mxu0 %v2058_v50  ;;  %v2065_v0 = vrot.slane %v2063_v58, 1  ;;  %v2076_v1 = vsel %vm1024_vm0, %v2073_v39, %v2075_v60  ;;  %v12926_v39 = vld [vmem:[%s16391_s11 + $0x178] sm:$0xff]   ;;  %v12935_v50 = vld [vmem:[%s16391_s11 + $0x1c8] sm:$0xff]   ;;  %v2725_v58 = vld [vmem:[%s14120_s17] sm:$0xe] }
  0x86   : > { %v12939_v60 = vld [vmem:[%s16391_s11 + $0x210] sm:$0xff]  }
  0x87   : > { %11277 = vmatpush3.bf16.msra.mxu0 %v12887_v27  ;;  %12135 = vmatpush3.bf16.msra.mxu1 %v12886_v26  ;;  %v2066_v5 = vsel %vm998_vm1, %v2061_v63, %v2065_v0  ;;  %v2404_v26 = vrot.slane %v2402_v19, 1  ;;  %v2421_v27 = vsel %vm1024_vm0, %v2419_v21, %v2420_v20  ;;  %v2749_v0 = vshll.u32 %v14139_v57, 16  ;;  %v12951_v19 = vld [vmem:[%s16391_s11 + $0x230] sm:$0xff]  }
  0x88   : > { %11278 = vmatprep.subr.bf16.mxu0 %v12888_v28  ;;  %12136 = vmatprep.subr.bf16.mxu1 %v12889_v29  ;;  %v2400_v28 = vor.u32 %v2399_v25, %v2395_v17  ;;  %v12949_v17 = vld [vmem:[%s16391_s11 + $0x1a8] sm:$0xff]   ;;  %v12952_v21 = vld [vmem:[%s16391_s11 + $0x1b0] sm:$0xff]  }
  0x8a   : > { %v2405_v31 = vsel %vm998_vm1, %v2400_v28, %v2404_v26  ;;  %v12960_v28 = vld [vmem:[%s16391_s11 + $0x40] sm:$0xff]  }
  0x8b   : > { %11279 = vmatpush3.bf16.msra.mxu0 %v12890_v40  ;;  %12137 = vmatpush3.bf16.msra.mxu1 %v12889_v29  ;;  %v12918_v29 = vld [vmem:[%s16391_s11 + $0xe0] sm:$0xff]   ;;  %v12927_v40 = vld [vmem:[%s16391_s11 + $0xf8] sm:$0xff]  }
  0x8c   : > { %11280 = vmatprep.subr.bf16.mxu0 %v12891_v41  ;;  %12138 = vmatprep.subr.bf16.mxu1 %v12892_v45  ;;  %v2406_v41 = vshrl.u32 %v14049_v13, 16 }
  0x8e   : > { %v2408_v47 = vor.u32 %v2406_v41, %v2404_v26  ;;  %v12955_v26 = vld [vmem:[%s16391_s11 + $0x1b8] sm:$0xff]  }
  0x8f   : > { %11281 = vmatpush3.bf16.msra.mxu0 %v12893_v48  ;;  %12139 = vmatpush3.bf16.msra.mxu1 %v12892_v45  ;;  %v12932_v45 = vld [vmem:[%s16391_s11 + $0x200] sm:$0xff]   ;;  %v2412_v48 = vrot.slane %v2410_v42, 1 }
  0x90   : > { %11282 = vmatprep.subr.bf16.mxu0 %v12894_v49  ;;  %12140 = vmatprep.subr.bf16.mxu1 %v12895_v51  ;;  %v2423_v49 = vsel %vm1024_vm0, %v2420_v20, %v2422_v44  ;;  %v12959_v20 = vld [vmem:[%s14120_s17 + $0x10] ss:$0 sps:$4 sm:$0x11]   ;;  %v3119_v44 = vrot.slane %v14221_v36, 1 }
  0x91   : > { %v2757_v25 = vshll.u32 %v12959_v20, 16 }
  0x93   : > { %11283 = vmatpush3.bf16.msra.mxu0 %v12896_v53  ;;  %12141 = vmatpush3.bf16.msra.mxu1 %v12895_v51  ;;  %v12936_v51 = vld [vmem:[%s16391_s11 + $0x208] sm:$0xff]   ;;  %v2720_v53 = vld [vmem:[%s14120_s17] sm:$0xf] }
  0x94   : > { %11284 = vmatprep.subr.bf16.mxu0 %v12897_v54  ;;  %12142 = vmatprep.subr.bf16.mxu1 %v12898_v55  ;;  %v2413_v54 = vsel %vm998_vm1, %v2408_v47, %v2412_v48  ;;  %v3101_v48 = vshll.u32 %v14221_v36, 16 }
  0x97   : > { %11285 = vmatpush3.bf16.msra.mxu0 %v12899_v56  ;;  %12143 = vmatpush3.bf16.msra.mxu1 %v12898_v55  ;;  %v2721_v55 = vld [vmem:[%s14120_s17 + $0x4] sm:$0xf] }
  0x98   : > { %11308 = vmatprep.subr.bf16.mxu0 %v12903_v59  ;;  %12148 = vmatprep.subr.bf16.mxu1 %v12904_v61  ;;  %v14136_v56 = vcombine.low %v2720_v53, %v2721_v55  ;;  %v12938_v59 = vld [vmem:[%s16391_s11 + $0x1d0] sm:$0xff]  }
  0x99   : > { %v12968_v53 = vld [vmem:[%s16391_s11 + $0x10] sm:$0xff]  }
  0x9a   : > { %2304 = vmatmul.mubr.bf16.vlgmr.msra.gmra.mrb[24].mxu0 %v9866_v32  ;;  %12145 = vmatmul.mubr.bf16.vlgmr.msra.gmra.mrb[4].mxu1 %v2076_v1  ;;  %v12920_v32 = vld [vmem:[%s16391_s11 + $0x168] sm:$0xff]   ;;  %v2744_v63 = vshll.u32 %v14136_v56, 16  ;;  %v2767_v1 = vrot.slane %v14139_v57, 1 }
  0x9b   : > { %11309 = vmatpush3.bf16.msra.mxu0 %v12906_v62  ;;  %12149 = vmatpush3.bf16.msra.mxu1 %v12904_v61  ;;  %v9973_v61 = vcombine.low %v2725_v58, %v2721_v55  ;;  %v2742_v62 = vshrl.u32 %v14136_v56, 16  ;;  %v3103_v55 = vrot.slane %v3101_v48, 1  ;;  %v12970_v58 = vld [vmem:[%s16391_s11 + $0x98] sm:$0xff]   ;;  %v13004_v48 = vld [vmem:[%s16391_s11 + $0x168] sm:$0xff]  }
  0x9c   : > { %11310 = vmatprep.subr.bf16.mxu0 %v12907_v2  ;;  %12150 = vmatprep.subr.bf16.mxu1 %v12908_v3  ;;  %v12940_v2 = vld [vmem:[%s16391_s11 + $0x190] sm:$0xff]  }
  0x9d   : > { %2311 = vmatprep.mubr.bf16.mxu0 %v2066_v5  ;;  %12164 = vmatprep.mubr.bf16.mxu1 %v2421_v27  ;;  %v12942_v5 = vld [vmem:[%s16391_s11 + $0x218] sm:$0xff]   ;;  %v2769_v27 = vrot.slane %v12959_v20, 1 }
  0x9f   : > { %11311 = vmatpush3.bf16.msra.mxu0 %v12909_v4  ;;  %12151 = vmatpush3.bf16.msra.mxu1 %v12908_v3  ;;  %v2766_v3 = vrot.slane %v9973_v61, 1  ;;  %v12941_v4 = vld [vmem:[%s16391_s11 + $0x1d8] sm:$0xff]   ;;  %v12972_v61 = vld [vmem:[%s16391_s11 + $0x60] sm:$0xff]  }
  0xa0   : > { %11312 = vmatprep.subr.bf16.mxu0 %v12910_v6  ;;  %12152 = vmatprep.subr.bf16.mxu1 %v12911_v7  ;;  %v2746_v6 = vrot.slane %v2744_v63, 1  ;;  %v12975_v63 = vld [vmem:[%s16391_s11 + $0x68] sm:$0xff]  }
  0xa2   : > { %2312 = vmatmul.mubr.bf16.gmra.mrb[28].mxu0 %v13970_v33  ;;  %v12921_v33 = vld [vmem:[%s16391_s11 + $0xe8] sm:$0xff]  }
  0xa3   : > { %11313 = vmatpush3.bf16.msra.mxu0 %v12912_v8  ;;  %12153 = vmatpush3.bf16.msra.mxu1 %v12911_v7  ;;  %v2751_v7 = vrot.slane %v2749_v0, 1  ;;  %v2768_v8 = vsel %vm1024_vm0, %v2766_v3, %v2767_v1  ;;  %v12976_v0 = vld [vmem:[%s16391_s11 + $0xa8] sm:$0xff]   ;;  %v12979_v3 = vld [vmem:[%s16391_s11 + $0xb0] sm:$0xff]  }
  0xa4   : > { %11314 = vmatprep.subr.bf16.mxu0 %v12913_v9  ;;  %12154 = vmatprep.subr.bf16.mxu1 %v12914_v15  ;;  %v2747_v9 = vor.u32 %v2746_v6, %v2742_v62  ;;  %v12973_v62 = vld [vmem:[%s16391_s11 + $0xa0] sm:$0xff]   ;;  %v12981_v6 = vld [vmem:[%s16391_s11 + $0x78] sm:$0xff]  }
  0xa5   : > { %2650 = vmatprep.mubr.bf16.mxu0 %v2405_v31 }
  0xa7   : > { %11315 = vmatpush3.bf16.msra.mxu0 %v12915_v22  ;;  %12155 = vmatpush3.bf16.msra.mxu1 %v12914_v15  ;;  %v12947_v15 = vld [vmem:[%s16391_s11 + $0x1e8] sm:$0xff]   ;;  %v12953_v22 = vld [vmem:[%s16391_s11 + $0x1f8] sm:$0xff]  }
  0xa8   : > { %11316 = vmatprep.subr.bf16.mxu0 %v12916_v23  ;;  %12156 = vmatprep.subr.bf16.mxu1 %v12917_v24  ;;  %v12954_v23 = vld [vmem:[%s16391_s11 + $0x238] sm:$0xff]  }
  0xab   : > { %11317 = vmatpush3.bf16.msra.mxu0 %v12918_v29  ;;  %12157 = vmatpush3.bf16.msra.mxu1 %v12917_v24  ;;  %v2753_v24 = vshrl.u32 %v14139_v57, 16  ;;  %v12961_v29 = vld [vmem:[%s16391_s11 + $0x80] sm:$0xff]  }
  0xac   : > { %11318 = vmatprep.subr.bf16.mxu0 %v12919_v30  ;;  %12158 = vmatprep.subr.bf16.mxu1 %v12920_v32  ;;  %v12962_v30 = vld [vmem:[%s16391_s11] sm:$0xff]  }
  0xad   : > { %v2755_v31 = vor.u32 %v2753_v24, %v2751_v7 }
  0xaf   : > { %11319 = vmatpush3.bf16.msra.mxu0 %v12921_v33  ;;  %12159 = vmatpush3.bf16.msra.mxu1 %v12920_v32  ;;  %v2759_v32 = vrot.slane %v2757_v25, 1  ;;  %v3072_v33 = vld [vmem:[%s13875_s18] sm:$0xf] }
  0xb0   : > { %11320 = vmatprep.subr.bf16.mxu0 %v12922_v34  ;;  %12160 = vmatprep.subr.bf16.mxu1 %v12923_v35  ;;  %v3073_v34 = vld [vmem:[%s13875_s18 + $0x4] sm:$0xf] }
  0xb3   : > { %11321 = vmatpush3.bf16.msra.mxu0 %v12924_v37  ;;  %12161 = vmatpush3.bf16.msra.mxu1 %v12923_v35  ;;  %v14218_v35 = vcombine.low %v3072_v33, %v3073_v34  ;;  %v2770_v37 = vsel %vm1024_vm0, %v2767_v1, %v2769_v27  ;;  %v12977_v1 = vld [vmem:[%s16391_s11 + $0x28] sm:$0xff]  }
  0xb4   : > { %11322 = vmatprep.subr.bf16.mxu0 %v12925_v38  ;;  %12162 = vmatprep.subr.bf16.mxu1 %v12926_v39  ;;  %v3077_v38 = vld [vmem:[%s13875_s18] sm:$0xe]  ;;  %v12991_v27 = vld [vmem:[%s16391_s11 + $0x108] sm:$0xff]  }
  0xb5   : > { %v3096_v41 = vshll.u32 %v14218_v35, 16  ;;  %v10053_v42 = vcombine.low %v3077_v38, %v3073_v34  ;;  %v12996_v38 = vld [vmem:[%s16391_s11 + $0xd0] sm:$0xff]  }
  0xb7   : > { %11323 = vmatpush3.bf16.msra.mxu0 %v12927_v40  ;;  %12163 = vmatpush3.bf16.msra.mxu1 %v12926_v39  ;;  %v12963_v39 = vld [vmem:[%s16391_s11 + $0x48] sm:$0xff]   ;;  %v3098_v47 = vrot.slane %v3096_v41, 1  ;;  %v12997_v41 = vld [vmem:[%s16391_s11 + $0x118] sm:$0xff]  }
  0xb8   : > { %11346 = vmatprep.subr.bf16.mxu0 %v12931_v43  ;;  %12168 = vmatprep.subr.bf16.mxu1 %v12932_v45  ;;  %v12964_v40 = vld [vmem:[%s16391_s11 + $0x88] sm:$0xff]   ;;  %v2760_v43 = vsel %vm998_vm1, %v2755_v31, %v2759_v32 }
  0xba   : > { %2651 = vmatmul.mubr.bf16.vlgmr.msra.gmra.mrb[32].mxu0 %v14046_v12  ;;  %12165 = vmatmul.mubr.bf16.vlgmr.msra.gmra.mrb[4].mxu1 %v2423_v49  ;;  %v2752_v12 = vsel %vm998_vm1, %v2747_v9, %v2751_v7  ;;  %v3118_v49 = vrot.slane %v10053_v42, 1  ;;  %v12982_v7 = vld [vmem:[%s16391_s11 + $0xb8] sm:$0xff]   ;;  %v3105_v9 = vshrl.u32 %v14221_v36, 16 }
  0xbb   : > { %11347 = vmatpush3.bf16.msra.mxu0 %v12934_v46  ;;  %12169 = vmatpush3.bf16.msra.mxu1 %v12932_v45  ;;  %v12965_v45 = vld [vmem:[%s16391_s11 + $0x8] sm:$0xff]   ;;  %v3094_v46 = vshrl.u32 %v14218_v35, 16  ;;  %v12998_v42 = vld [vmem:[%s16391_s11 + $0x158] sm:$0xff]  }
  0xbc   : > { %11348 = vmatprep.subr.bf16.mxu0 %v12935_v50  ;;  %12170 = vmatprep.subr.bf16.mxu1 %v12936_v51  ;;  %v12966_v50 = vld [vmem:[%s16391_s11 + $0x50] sm:$0xff]   ;;  %v3107_v20 = vor.u32 %v3105_v9, %v3103_v55 }
  0xbd   : > { %2658 = vmatprep.mubr.bf16.mxu0 %v2413_v54  ;;  %12184 = vmatprep.mubr.bf16.mxu1 %v2768_v8  ;;  %v3099_v54 = vor.u32 %v3098_v47, %v3094_v46  ;;  %v12983_v8 = vld [vmem:[%s16391_s11 + $0x38] sm:$0xff]   ;;  %v13001_v46 = vld [vmem:[%s16391_s11 + $0x160] sm:$0xff]   ;;  %v13003_v47 = vld [vmem:[%s16391_s11 + $0x128] sm:$0xff]  }
  0xbf   : > { %11349 = vmatpush3.bf16.msra.mxu0 %v12937_v52  ;;  %12171 = vmatpush3.bf16.msra.mxu1 %v12936_v51  ;;  %v12967_v51 = vld [vmem:[%s16391_s11 + $0x90] sm:$0xff]   ;;  %v3120_v52 = vsel %vm1024_vm0, %v3118_v49, %v3119_v44  ;;  %v13005_v49 = vld [vmem:[%s16391_s11 + $0xe8] sm:$0xff]  }
  0xc0   : > { %11350 = vmatprep.subr.bf16.mxu0 %v12938_v59  ;;  %12172 = vmatprep.subr.bf16.mxu1 %v12939_v60  ;;  %v12971_v59 = vld [vmem:[%s16391_s11 + $0x18] sm:$0xff]  }
  0xc2   : > { %2659 = vmatmul.mubr.bf16.gmra.mrb[36].mxu0 %v14049_v13  ;;  %v12946_v13 = vld [vmem:[%s16391_s11 + $0x1a0] sm:$0xff]  }
  0xc3   : > { %11351 = vmatpush3.bf16.msra.mxu0 %v12940_v2  ;;  %12173 = vmatpush3.bf16.msra.mxu1 %v12939_v60  ;;  %v3104_v60 = vsel %vm998_vm1, %v3099_v54, %v3103_v55  ;;  %v12978_v2 = vld [vmem:[%s16391_s11 + $0x70] sm:$0xff]  }
  0xc4   : > { %11352 = vmatprep.subr.bf16.mxu0 %v12941_v4  ;;  %12174 = vmatprep.subr.bf16.mxu1 %v12942_v5  ;;  %v12989_v4 = vld [vmem:[%s13875_s18 + $0x10] ss:$0 sps:$4 sm:$0x11]   ;;  %s14300_s18 = sld [smem:[#allocation3 + %s869_s23]] }
  0xc5   : > { %2997 = vmatprep.mubr.bf16.mxu0 %v2752_v12  ;;  %v12987_v12 = vld [vmem:[%s16391_s11 + $0x100] sm:$0xff]   ;;  %s14598_s23 = sld [smem:[#allocation3 + %s884_s30]]  ;;  %s9682_s30 = sshll.u32 %s14591_s27, 2 }
  0xc7   : > { %11353 = vmatpush3.bf16.msra.mxu0 %v12943_v10  ;;  %12175 = vmatpush3.bf16.msra.mxu1 %v12942_v5  ;;  %v12980_v5 = vld [vmem:[%s16391_s11 + $0x30] sm:$0xff]   ;;  %v3419_v10 = vld [vmem:[%s14120_s17] sm:$0xf] }
  0xc8   : > { %11354 = vmatprep.subr.bf16.mxu0 %v12944_v11  ;;  %12176 = vmatprep.subr.bf16.mxu1 %v12945_v14  ;;  %v3420_v11 = vld [vmem:[%s14120_s17 + $0x4] sm:$0xf] }
  0xca   : > { %p873_p1 = scmp.lt.s32.totalorder %s14300_s18, 15 }
  0xcb   : > { %11355 = vmatpush3.bf16.msra.mxu0 %v12946_v13  ;;  %12177 = vmatpush3.bf16.msra.mxu1 %v12945_v14  ;;  %v3121_v14 = vrot.slane %v12989_v4, 1  ;;  %v3109_v13 = vshll.u32 %v12989_v4, 16  ;;  %p888_p3 = scmp.lt.s32.totalorder %s14598_s23, 15 }
  0xcc   : > { %11356 = vmatprep.subr.bf16.mxu0 %v12947_v15  ;;  %12178 = vmatprep.subr.bf16.mxu1 %v12948_v16  ;;  %v14311_v15 = vcombine.low %v3419_v10, %v3420_v11  ;;  %s16423_s18 = smov (!%p873_p1, %s14300_s18), 15 }
  0xcd   : > { %s12745_s26 = smul.u32 5, %s16423_s18  ;;  %s16425_s23 = smov (!%p888_p3, %s14598_s23), 15 }
  0xce   : > { %s12746_s27 = smul.u32 5, %s16425_s23 }
  0xcf   : > { %11357 = vmatpush3.bf16.msra.mxu0 %v12949_v17  ;;  %12179 = vmatpush3.bf16.msra.mxu1 %v12948_v16  ;;  %v3424_v16 = vld [vmem:[%s14120_s17] sm:$0xe]  ;;  %s877_s18 = sadd.s32 %s12745_s26, %s13669_s22  ;;  %s14918_s26 = sld [smem:[#allocation3 + %s899_s2]] }
  0xd0   : > { %11358 = vmatprep.subr.bf16.mxu0 %v12950_v18  ;;  %12180 = vmatprep.subr.bf16.mxu1 %v12951_v19  ;;  %v12988_v17 = vld [vmem:[%s16391_s11 + $0x140] sm:$0xff]   ;;  %v14318_v18 = vld [vmem:[%s14120_s17 + $0x8] sm:$0xff]   ;;  %s9670_s29 = sshll.u32 %s877_s18, 2  ;;  %s14625_s18 = sadd.s32 %s9683_s25, %s9682_s30 }
  0xd1   : > { %v3466_v25 = vrot.slane %v14318_v18, 1  ;;  %v3448_v33 = vshll.u32 %v14318_v18, 16  ;;  %s14393_s28 = scalar_lea.vmem %s16385_s5, %s9670_s29  ;;  %s9684_s30 = sshll.u32 %s14625_s18, 3 }
  0xd2   : > { %v3766_v54 = vld [vmem:[%s14393_s28] sm:$0xf]  ;;  %v3767_v55 = vld [vmem:[%s14393_s28 + $0x4] sm:$0xf]  ;;  %v14424_v4 = vld [vmem:[%s14393_s28 + $0x8] sm:$0xff]   ;;  %s14679_s19 = scalar_lea.vmem %s16393_s13, %s9684_s30  ;;  %s892_s29 = sadd.s32 %s12746_s27, %s13669_s22 }
  0xd3   : > { %11359 = vmatpush3.bf16.msra.mxu0 %v12952_v21  ;;  %12181 = vmatpush3.bf16.msra.mxu1 %v12951_v19  ;;  %v10081_v19 = vcombine.low %v3424_v16, %v3420_v11  ;;  %v12990_v21 = vld [vmem:[%s16391_s11 + $0xc0] sm:$0xff]   ;;  %v3813_v11 = vrot.slane %v14424_v4, 1  ;;  %s9672_s23 = sshll.u32 %s892_s29, 2  ;;  %s944_s25 = sadd.s32 9, %s13631_s21 }
  0xd4   : > { %11360 = vmatprep.subr.bf16.mxu0 %v12953_v22  ;;  %12182 = vmatprep.subr.bf16.mxu1 %v12954_v23  ;;  %v3111_v22 = vrot.slane %v3109_v13, 1  ;;  %s15911_s27 = sld [smem:[#allocation3 + %s944_s25]] }
  0xd5   : > { %v3465_v24 = vrot.slane %v10081_v19, 1  ;;  %p903_p4 = scmp.lt.s32.totalorder %s14918_s26, 15 }
  0xd6   : > { %v3112_v31 = vsel %vm998_vm1, %v3107_v20, %v3111_v22  ;;  %v13020_v22 = vld [vmem:[%s16391_s11 + $0x208] sm:$0xff]  }
  0xd7   : > { %11361 = vmatpush3.bf16.msra.mxu0 %v12955_v26  ;;  %12183 = vmatpush3.bf16.msra.mxu1 %v12954_v23  ;;  %v3443_v23 = vshll.u32 %v14311_v15, 16  ;;  %v3122_v26 = vsel %vm1024_vm0, %v3119_v44, %v3121_v14  ;;  %v3467_v34 = vsel %vm1024_vm0, %v3465_v24, %v3466_v25  ;;  %s16427_s26 = smov (!%p903_p4, %s14918_s26), 15 }
  0xd8   : > { %11384 = vmatprep.subr.bf16.mxu0 %v12960_v28  ;;  %12188 = vmatprep.subr.bf16.mxu1 %v12961_v29  ;;  %v12992_v28 = vld [vmem:[%s16391_s11 + $0x148] sm:$0xff]   ;;  %s12747_s24 = smul.u32 5, %s16427_s26 }
  0xd9   : > { %v3445_v32 = vrot.slane %v3443_v23, 1 }
  0xda   : > { %2998 = vmatmul.mubr.bf16.vlgmr.msra.gmra.mrb[40].mxu0 %v14136_v56  ;;  %12185 = vmatmul.mubr.bf16.vlgmr.msra.gmra.mrb[4].mxu1 %v2770_v37  ;;  %v12969_v56 = vld [vmem:[%s16391_s11 + $0x58] sm:$0xff]   ;;  %v12994_v37 = vld [vmem:[%s16391_s11 + $0x110] sm:$0xff]   ;;  %s15006_s26 = sadd.s32 %s12747_s24, %s13669_s22  ;;  %p948_p7 = scmp.lt.s32.totalorder %s15911_s27, 15 }
  0xdb   : > { %11385 = vmatpush3.bf16.msra.mxu0 %v12962_v30  ;;  %12189 = vmatpush3.bf16.msra.mxu1 %v12961_v29  ;;  %v12993_v29 = vld [vmem:[%s16391_s11 + $0xc8] sm:$0xff]   ;;  %v3441_v30 = vshrl.u32 %v14311_v15, 16  ;;  %s9674_s24 = sshll.u32 %s15006_s26, 2  ;;  %s914_s26 = sadd.s32 7, %s13631_s21 }
  0xdc   : > { %11386 = vmatprep.subr.bf16.mxu0 %v12963_v39  ;;  %12190 = vmatprep.subr.bf16.mxu1 %v12964_v40  ;;  %s15058_s1 = scalar_lea.vmem %s16387_s7, %s9674_s24  ;;  %s15265_s18 = sld [smem:[#allocation3 + %s914_s26]] }
  0xdd   : > { %3005 = vmatprep.mubr.bf16.mxu0 %v2760_v43  ;;  %12204 = vmatprep.mubr.bf16.mxu1 %v3120_v52  ;;  %v3446_v39 = vor.u32 %v3445_v32, %v3441_v30  ;;  %v12999_v43 = vld [vmem:[%s16391_s11 + $0xd8] sm:$0xff]   ;;  %v13007_v52 = vld [vmem:[%s16391_s11 + $0x170] sm:$0xff]   ;;  %s16433_s27 = smov (!%p948_p7, %s15911_s27), 15 }
  0xdf   : > { %11387 = vmatpush3.bf16.msra.mxu0 %v12965_v45  ;;  %12191 = vmatpush3.bf16.msra.mxu1 %v12964_v40  ;;  %v14357_v40 = vrot.slane %v3448_v33, 1  ;;  %v13000_v45 = vld [vmem:[%s16391_s11 + $0x120] sm:$0xff]   ;;  %v13022_v33 = vld [vmem:[%s16391_s11 + $0x1d0] sm:$0xff]  }
  0xe0   : > { %11388 = vmatprep.subr.bf16.mxu0 %v12966_v50  ;;  %12192 = vmatprep.subr.bf16.mxu1 %v12967_v51  ;;  %v13006_v50 = vld [vmem:[%s16391_s11 + $0x130] sm:$0xff]  }
  0xe1   : > { %v3451_v44 = vsel %vm998_vm1, %v3446_v39, %v14357_v40  ;;  %v13026_v39 = vld [vmem:[%s16391_s11 + $0x218] sm:$0xff]  }
  0xe2   : > { %3006 = vmatmul.mubr.bf16.gmra.mrb[44].mxu0 %v14139_v57  ;;  %v12974_v57 = vld [vmem:[%s16391_s11 + $0x20] sm:$0xff]   ;;  %p918_p5 = scmp.lt.s32.totalorder %s15265_s18, 15 }
  0xe3   : > { %11389 = vmatpush3.bf16.msra.mxu0 %v12968_v53  ;;  %12193 = vmatpush3.bf16.msra.mxu1 %v12967_v51  ;;  %v13017_v51 = vld [vmem:[%s14120_s17 + $0x10] ss:$0 sps:$4 sm:$0x11]  }
  0xe4   : > { %11390 = vmatprep.subr.bf16.mxu0 %v12969_v56  ;;  %12194 = vmatprep.subr.bf16.mxu1 %v12970_v58  ;;  %s16429_s18 = smov (!%p918_p5, %s15265_s18), 15 }
  0xe5   : > { %3349 = vmatprep.mubr.bf16.mxu0 %v3104_v60  ;;  %v13008_v60 = vld [vmem:[%s16391_s11 + $0xf0] sm:$0xff]   ;;  %s12748_s24 = smul.u32 5, %s16429_s18 }
  0xe7   : > { %11391 = vmatpush3.bf16.msra.mxu0 %v12971_v59  ;;  %12195 = vmatpush3.bf16.msra.mxu1 %v12970_v58  ;;  %s922_s18 = sadd.s32 %s12748_s24, %s13669_s22 }
  0xe8   : > { %11392 = vmatprep.subr.bf16.mxu0 %v12972_v61  ;;  %12196 = vmatprep.subr.bf16.mxu1 %v12973_v62  ;;  %v3456_v61 = vshll.u32 %v13017_v51, 16 }
  0xea   : > { %v3458_v10 = vrot.slane %v3456_v61, 1  ;;  %v13038_v61 = vld [vmem:[%s16391_s11 + $0x238] sm:$0xff]  }
  0xeb   : > { %11393 = vmatpush3.bf16.msra.mxu0 %v12974_v57  ;;  %12197 = vmatpush3.bf16.msra.mxu1 %v12973_v62  ;;  %v3771_v62 = vld [vmem:[%s14393_s28] sm:$0xe] }
  0xec   : > { %11394 = vmatprep.subr.bf16.mxu0 %v12975_v63  ;;  %12198 = vmatprep.subr.bf16.mxu1 %v12976_v0  ;;  %v13009_v63 = vld [vmem:[%s16391_s11 + $0x138] sm:$0xff]   ;;  %v10157_v9 = vcombine.low %v3771_v62, %v3767_v55  ;;  %v4123_v62 = vld [vmem:[%s14120_s17] sm:$0xe] }
  0xee   : > { %v3812_v19 = vrot.slane %v10157_v9, 1  ;;  %v13045_v9 = vld [vmem:[%s16391_s11 + $0x80] sm:$0xff]  }
  0xef   : > { %11395 = vmatpush3.bf16.msra.mxu0 %v12977_v1  ;;  %12199 = vmatpush3.bf16.msra.mxu1 %v12976_v0  ;;  %v13010_v0 = vld [vmem:[%s16391_s11 + $0x178] sm:$0xff]  }
  0xf0   : > { %11396 = vmatprep.subr.bf16.mxu0 %v12978_v2  ;;  %12200 = vmatprep.subr.bf16.mxu1 %v12979_v3  ;;  %v13011_v2 = vld [vmem:[%s16391_s11 + $0xf8] sm:$0xff]   ;;  %v3814_v32 = vsel %vm1024_vm0, %v3812_v19, %v3813_v11  ;;  %v13046_v19 = vld [vmem:[%s16391_s11] sm:$0xff]  }
  0xf3   : > { %11397 = vmatpush3.bf16.msra.mxu0 %v12980_v5  ;;  %12201 = vmatpush3.bf16.msra.mxu1 %v12979_v3  ;;  %v14421_v3 = vcombine.low %v3766_v54, %v3767_v55  ;;  %v13015_v5 = vld [vmem:[%s16391_s11 + $0x1c0] sm:$0xff]   ;;  %v13037_v54 = vld [vmem:[%s16391_s11 + $0x1f8] sm:$0xff]   ;;  %v13043_v55 = vld [vmem:[%s14393_s28 + $0x10] ss:$0 sps:$4 sm:$0x11]  }
  0xf4   : > { %11398 = vmatprep.subr.bf16.mxu0 %v12981_v6  ;;  %12202 = vmatprep.subr.bf16.mxu1 %v12982_v7  ;;  %v13016_v6 = vld [vmem:[%s16391_s11 + $0x200] sm:$0xff]  }
  0xf5   : > { %v3790_v13 = vshll.u32 %v14421_v3, 16 }
  0xf7   : > { %11399 = vmatpush3.bf16.msra.mxu0 %v12983_v8  ;;  %12203 = vmatpush3.bf16.msra.mxu1 %v12982_v7  ;;  %v3468_v7 = vrot.slane %v13017_v51, 1  ;;  %v3452_v8 = vshrl.u32 %v14318_v18, 16  ;;  %v3792_v30 = vrot.slane %v3790_v13, 1  ;;  %v13036_v51 = vld [vmem:[%s16391_s11 + $0x1b0] sm:$0xff]  }
  0xf8   : > { %11422 = vmatprep.subr.bf16.mxu0 %v12987_v12  ;;  %12208 = vmatprep.subr.bf16.mxu1 %v12988_v17  ;;  %v13018_v12 = vld [vmem:[%s16391_s11 + $0x180] sm:$0xff]  }
  0xf9   : > { %v3454_v16 = vor.u32 %v3452_v8, %v14357_v40  ;;  %v3469_v20 = vsel %vm1024_vm0, %v3466_v25, %v3468_v7  ;;  %v13021_v25 = vld [vmem:[%s16391_s11 + $0x188] sm:$0xff]   ;;  %v13027_v40 = vld [vmem:[%s16391_s11 + $0x198] sm:$0xff]   ;;  %v3799_v7 = vshrl.u32 %v14424_v4, 16  ;;  %v13044_v8 = vld [vmem:[%s16391_s11 + $0x40] sm:$0xff]  }
  0xfa   : > { %3350 = vmatmul.mubr.bf16.vlgmr.msra.gmra.mrb[48].mxu0 %v14218_v35  ;;  %12205 = vmatmul.mubr.bf16.vlgmr.msra.gmra.mrb[8].mxu1 %v3122_v26  ;;  %v12995_v35 = vld [vmem:[%s16391_s11 + $0x150] sm:$0xff]  }
  0xfb   : > { %11423 = vmatpush3.bf16.msra.mxu0 %v12990_v21  ;;  %12209 = vmatpush3.bf16.msra.mxu1 %v12988_v17  ;;  %v13019_v21 = vld [vmem:[%s16391_s11 + $0x1c8] sm:$0xff]  }
  0xfc   : > { %11424 = vmatprep.subr.bf16.mxu0 %v12991_v27  ;;  %12210 = vmatprep.subr.bf16.mxu1 %v12992_v28  ;;  %v3795_v27 = vshll.u32 %v14424_v4, 16 }
  0xfd   : > { %3357 = vmatprep.mubr.bf16.mxu0 %v3112_v31  ;;  %12224 = vmatprep.mubr.bf16.mxu1 %v3467_v34  ;;  %v3459_v31 = vsel %vm998_vm1, %v3454_v16, %v3458_v10  ;;  %v13023_v34 = vld [vmem:[%s16391_s11 + $0x210] sm:$0xff]  }
  0xff   : > { %11425 = vmatpush3.bf16.msra.mxu0 %v12993_v29  ;;  %12211 = vmatpush3.bf16.msra.mxu1 %v12992_v28  ;;  %v3788_v29 = vshrl.u32 %v14421_v3, 16 }
 0x100   : > { %11426 = vmatprep.subr.bf16.mxu0 %v12994_v37  ;;  %12212 = vmatprep.subr.bf16.mxu1 %v12995_v35 }
 0x101   : > { %v3793_v37 = vor.u32 %v3792_v30, %v3788_v29  ;;  %v13047_v30 = vld [vmem:[%s16391_s11 + $0x48] sm:$0xff]  }
 0x102   : > { %3358 = vmatmul.mubr.bf16.gmra.mrb[52].mxu0 %v14221_v36  ;;  %v13002_v36 = vld [vmem:[%s16391_s11 + $0xe0] sm:$0xff]  }
 0x103   : > { %11427 = vmatpush3.bf16.msra.mxu0 %v12996_v38  ;;  %12213 = vmatpush3.bf16.msra.mxu1 %v12995_v35  ;;  %v14471_v35 = vrot.slane %v3795_v27, 1  ;;  %v13025_v38 = vld [vmem:[%s16391_s11 + $0x1d8] sm:$0xff]  }
 0x104   : > { %11428 = vmatprep.subr.bf16.mxu0 %v12997_v41  ;;  %12214 = vmatprep.subr.bf16.mxu1 %v12998_v42 }
 0x105   : > { %3696 = vmatprep.mubr.bf16.mxu0 %v3451_v44  ;;  %v3798_v41 = vsel %vm998_vm1, %v3793_v37, %v14471_v35  ;;  %v13031_v44 = vld [vmem:[%s16391_s11 + $0x1e8] sm:$0xff]  }
 0x107   : > { %11429 = vmatpush3.bf16.msra.mxu0 %v12999_v43  ;;  %12215 = vmatpush3.bf16.msra.mxu1 %v12998_v42  ;;  %v13028_v42 = vld [vmem:[%s16391_s11 + $0x1e0] sm:$0xff]  }
 0x108   : > { %11430 = vmatprep.subr.bf16.mxu0 %v13000_v45  ;;  %12216 = vmatprep.subr.bf16.mxu1 %v13001_v46  ;;  %v13030_v43 = vld [vmem:[%s16391_s11 + $0x1a0] sm:$0xff]   ;;  %v13032_v45 = vld [vmem:[%s16391_s11 + $0x228] sm:$0xff]  }
 0x10b   : > { %11431 = vmatpush3.bf16.msra.mxu0 %v13002_v36  ;;  %12217 = vmatpush3.bf16.msra.mxu1 %v13001_v46  ;;  %v14503_v46 = vld [vmem:[%s16392_s12] ss:$0 sm:$0xff]  ;;  %v13033_v36 = vld [vmem:[%s16391_s11 + $0x1a8] sm:$0xff]  }
 0x10c   : > { %11432 = vmatprep.subr.bf16.mxu0 %v13003_v47  ;;  %12218 = vmatprep.subr.bf16.mxu1 %v13004_v48  ;;  %v13034_v47 = vld [vmem:[%s16391_s11 + $0x1f0] sm:$0xff]  }
 0x10d   : > { %v11172_v53 = vpop.f32.mrb[0].mxu0 }
 0x10e   : > { %v11173_v56 = vpop.f32.mrb[1].mxu0 }
 0x10f   : > { %v14404_v58 = vadd.f32 %v11173_v56, %v11172_v53  ;;  %v11175_v59 = vpop.f32.mrb[2].mxu0  ;;  %11433 = vmatpush3.bf16.msra.mxu0 %v13005_v49  ;;  %12219 = vmatpush3.bf16.msra.mxu1 %v13004_v48  ;;  %v13035_v48 = vld [vmem:[%s16391_s11 + $0x230] sm:$0xff]   ;;  %v4118_v49 = vld [vmem:[%s14120_s17] sm:$0xf] }
 0x110   : > { %v11176_v57 = vpop.f32.mrb[3].mxu0  ;;  %11434 = vmatprep.subr.bf16.mxu0 %v13006_v50  ;;  %12220 = vmatprep.subr.bf16.mxu1 %v13007_v52 }
 0x111   : > { %v14416_v1 = vadd.f32 %v11176_v57, %v11175_v59  ;;  %v12552_v56 = vadd.f32 %v14404_v58, %v14503_v46 }
 0x113   : > { %11435 = vmatpush3.bf16.msra.mxu0 %v13008_v60  ;;  %12221 = vmatpush3.bf16.msra.mxu1 %v13007_v52  ;;  %v4119_v52 = vld [vmem:[%s14120_s17 + $0x4] sm:$0xf] }
 0x114   : > { %11436 = vmatprep.subr.bf16.mxu0 %v13009_v63  ;;  %12222 = vmatprep.subr.bf16.mxu1 %v13010_v0  ;;  %v3803_v63 = vshll.u32 %v13043_v55, 16  ;;  %v10237_v10 = vcombine.low %v4123_v62, %v4119_v52 }
 0x115   : > { %v11178_v14 = vpop.f32.mrb[4].mxu0 }
 0x116   : > { %v11179_v17 = vpop.f32.mrb[5].mxu0  ;;  %v3805_v13 = vrot.slane %v3803_v63, 1  ;;  %v13066_v63 = vld [vmem:[%s16391_s11 + $0xb8] sm:$0xff]  }
 0x117   : > { %11437 = vmatpush3.bf16.msra.mxu0 %v13011_v2  ;;  %12223 = vmatpush3.bf16.msra.mxu1 %v13010_v0  ;;  %v14448_v23 = vadd.f32 %v11179_v17, %v11178_v14  ;;  %v11181_v24 = vpop.f32.mrb[6].mxu0  ;;  %v14531_v0 = vcombine.low %v4118_v49, %v4119_v52  ;;  %v12560_v2 = vadd.f32 %v14416_v1, %v14503_v46  ;;  %v3815_v1 = vrot.slane %v13043_v55, 1  ;;  %v14550_v14 = vld [vmem:[%s14120_s17 + $0x8] sm:$0xff]   ;;  %v13063_v52 = vld [vmem:[%s16391_s11 + $0xb0] sm:$0xff]   ;;  %v4466_v55 = vld [vmem:[%s14393_s28 + $0x4] sm:$0xf] }
 0x118   : > { %11460 = vmatprep.subr.bf16.mxu0 %v13015_v5  ;;  %12228 = vmatprep.subr.bf16.mxu1 %v13016_v6  ;;  %v11182_v26 = vpop.f32.mrb[7].mxu0  ;;  %v13060_v49 = vld [vmem:[%s16391_s11 + $0xa8] sm:$0xff]  }
 0x119   : > { %v14454_v28 = vadd.f32 %v11182_v26, %v11181_v24  ;;  %v4142_v16 = vshll.u32 %v14531_v0, 16  ;;  %v4164_v24 = vrot.slane %v10237_v10, 1  ;;  %v12548_v26 = vadd.f32 %v14448_v23, %v14503_v46 }
 0x11a   : > { %3697 = vmatmul.mubr.bf16.vlgmr.msra.gmra.mrb[56].mxu0 %v14311_v15  ;;  %12225 = vmatmul.mubr.bf16.vlgmr.msra.gmra.mrb[8].mxu1 %v3469_v20  ;;  %v13024_v15 = vld [vmem:[%s16391_s11 + $0x190] sm:$0xff]   ;;  %v4165_v20 = vrot.slane %v14550_v14, 1  ;;  %v3816_v29 = vsel %vm1024_vm0, %v3813_v11, %v3815_v1  ;;  %v13049_v11 = vld [vmem:[%s16391_s11 + $0x8] sm:$0xff]  }
 0x11b   : > { %11461 = vmatpush3.bf16.msra.mxu0 %v13018_v12  ;;  %12229 = vmatpush3.bf16.msra.mxu1 %v13016_v6  ;;  %v13039_v6 = vld [vmem:[%s16391_s11 + $0x1b8] sm:$0xff]   ;;  %v12556_v23 = vadd.f32 %v14454_v28, %v14503_v46 }
 0x11c   : > { %11462 = vmatprep.subr.bf16.mxu0 %v13019_v21  ;;  %12230 = vmatprep.subr.bf16.mxu1 %v13020_v22  ;;  %v4166_v28 = vsel %vm1024_vm0, %v4164_v24, %v4165_v20 }
 0x11d   : > { %3704 = vmatprep.mubr.bf16.mxu0 %v3459_v31  ;;  %12244 = vmatprep.mubr.bf16.mxu1 %v3814_v32  ;;  %v13048_v32 = vld [vmem:[%s16391_s11 + $0x88] sm:$0xff]  }
 0x11f   : > { %11463 = vmatpush3.bf16.msra.mxu0 %v13021_v25  ;;  %12231 = vmatpush3.bf16.msra.mxu1 %v13020_v22  ;;  %v3801_v22 = vor.u32 %v3799_v7, %v14471_v35  ;;  %v4144_v35 = vrot.slane %v4142_v16, 1 }
 0x120   : > { %11464 = vmatprep.subr.bf16.mxu0 %v13022_v33  ;;  %12232 = vmatprep.subr.bf16.mxu1 %v13023_v34 }
 0x121   : > { %v3806_v37 = vsel %vm998_vm1, %v3801_v22, %v3805_v13 }
 0x122   : > { %3705 = vmatmul.mubr.bf16.gmra.mrb[60].mxu0 %v14318_v18  ;;  %v13029_v18 = vld [vmem:[%s16391_s11 + $0x220] sm:$0xff]  }
 0x123   : > { %11465 = vmatpush3.bf16.msra.mxu0 %v13024_v15  ;;  %12233 = vmatpush3.bf16.msra.mxu1 %v13023_v34  ;;  %v4140_v15 = vshrl.u32 %v14531_v0, 16 }
 0x124   : > { %11466 = vmatprep.subr.bf16.mxu0 %v13025_v38  ;;  %12234 = vmatprep.subr.bf16.mxu1 %v13026_v39  ;;  %v4147_v38 = vshll.u32 %v14550_v14, 16 }
 0x125   : > { %4043 = vmatprep.mubr.bf16.mxu0 %v3798_v41  ;;  %v13052_v41 = vld [vmem:[%s16391_s11 + $0x10] sm:$0xff]  }
 0x127   : > { %11467 = vmatpush3.bf16.msra.mxu0 %v13027_v40  ;;  %12235 = vmatpush3.bf16.msra.mxu1 %v13026_v39  ;;  %v13050_v40 = vld [vmem:[%s16391_s11 + $0x50] sm:$0xff]  }
 0x128   : > { %11468 = vmatprep.subr.bf16.mxu0 %v13028_v42  ;;  %12236 = vmatprep.subr.bf16.mxu1 %v13029_v18  ;;  %v4145_v42 = vor.u32 %v4144_v35, %v4140_v15 }
 0x12b   : > { %11469 = vmatpush3.bf16.msra.mxu0 %v13030_v43  ;;  %12237 = vmatpush3.bf16.msra.mxu1 %v13029_v18  ;;  %v14603_v18 = vrot.slane %v4147_v38, 1  ;;  %v13053_v43 = vld [vmem:[%s16391_s11 + $0x58] sm:$0xff]  }
 0x12c   : > { %11470 = vmatprep.subr.bf16.mxu0 %v13031_v44  ;;  %12238 = vmatprep.subr.bf16.mxu1 %v13032_v45  ;;  %v13054_v44 = vld [vmem:[%s16391_s11 + $0x98] sm:$0xff]  }
 0x12d   : > { %v11210_v50 = vpop.f32.mrb[8].mxu0  ;;  %v4150_v46 = vsel %vm998_vm1, %v4145_v42, %v14603_v18 }
 0x12e   : > { %v11211_v53 = vpop.f32.mrb[9].mxu0 }
 0x12f   : > { %v11212_v59 = vadd.f32 %v11211_v53, %v11210_v50  ;;  %v11213_v60 = vpop.f32.mrb[10].mxu0  ;;  %11471 = vmatpush3.bf16.msra.mxu0 %v13033_v36  ;;  %12239 = vmatpush3.bf16.msra.mxu1 %v13032_v45  ;;  %v13055_v45 = vld [vmem:[%s16391_s11 + $0x18] sm:$0xff]   ;;  %v13056_v36 = vld [vmem:[%s16391_s11 + $0x60] sm:$0xff]   ;;  %v13061_v50 = vld [vmem:[%s16391_s11 + $0x28] sm:$0xff]  }
 0x130   : > { %v11214_v57 = vpop.f32.mrb[11].mxu0  ;;  %11472 = vmatprep.subr.bf16.mxu0 %v13034_v47  ;;  %12240 = vmatprep.subr.bf16.mxu1 %v13035_v48  ;;  %v13058_v47 = vld [vmem:[%s16391_s11 + $0x20] sm:$0xff]   ;;  %v13073_v53 = vld [vmem:[%s14120_s17 + $0x10] ss:$0 sps:$4 sm:$0x11]   ;;  %s14748_s17 = scalar_lea.vmem %s16386_s6, %s9672_s23 }
 0x131   : > { %v14535_v58 = vadd.f32 %v12552_v56, %v11212_v59  ;;  %v11215_v5 = vadd.f32 %v11214_v57, %v11213_v60  ;;  %v13064_v60 = vld [vmem:[%s16391_s11 + $0x30] sm:$0xff]   ;;  %v13065_v57 = vld [vmem:[%s16391_s11 + $0x78] sm:$0xff]  }
 0x133   : > { %v14547_v12 = vadd.f32 %v12560_v2, %v11215_v5  ;;  %11473 = vmatpush3.bf16.msra.mxu0 %v13036_v51  ;;  %12241 = vmatpush3.bf16.msra.mxu1 %v13035_v48  ;;  %v13059_v48 = vld [vmem:[%s16391_s11 + $0x68] sm:$0xff]   ;;  %v13062_v51 = vld [vmem:[%s16391_s11 + $0x70] sm:$0xff]   ;;  %v4155_v2 = vshll.u32 %v13073_v53, 16 }
 0x134   : > { %11474 = vmatprep.subr.bf16.mxu0 %v13037_v54  ;;  %12242 = vmatprep.subr.bf16.mxu1 %v13038_v61  ;;  %v4465_v54 = vld [vmem:[%s14393_s28] sm:$0xf] }
 0x135   : > { %v11216_v17 = vpop.f32.mrb[12].mxu0  ;;  %v14667_v1 = vcombine.low %v4465_v54, %v4466_v55  ;;  %v13084_v54 = vld [vmem:[%s16391_s11 + $0x120] sm:$0xff]  }
 0x136   : > { %v11217_v21 = vpop.f32.mrb[13].mxu0 }
 0x137   : > { %v11218_v27 = vadd.f32 %v11217_v21, %v11216_v17  ;;  %v11219_v25 = vpop.f32.mrb[14].mxu0  ;;  %11475 = vmatpush3.bf16.msra.mxu0 %v13039_v6  ;;  %12243 = vmatpush3.bf16.msra.mxu1 %v13038_v61  ;;  %v13067_v17 = vld [vmem:[%s16391_s11 + $0x38] sm:$0xff]   ;;  %v4151_v21 = vshrl.u32 %v14550_v14, 16 }
 0x138   : > { %v11220_v31 = vpop.f32.mrb[15].mxu0  ;;  %11498 = vmatprep.subr.bf16.mxu0 %v13044_v8  ;;  %12248 = vmatprep.subr.bf16.mxu1 %v13045_v9  ;;  %v4470_v8 = vld [vmem:[%s14393_s28] sm:$0xe] }
 0x139   : > { %v14571_v33 = vadd.f32 %v12548_v26, %v11218_v27  ;;  %v11221_v34 = vadd.f32 %v11220_v31, %v11219_v25  ;;  %v10265_v22 = vcombine.low %v4470_v8, %v4466_v55  ;;  %v4167_v27 = vrot.slane %v13073_v53, 1  ;;  %v14690_v25 = vld [vmem:[%s14393_s28 + $0x8] sm:$0xff]   ;;  %v13083_v53 = vld [vmem:[%s16391_s11 + $0xd8] sm:$0xff]   ;;  %v13086_v55 = vld [vmem:[%s16391_s11 + $0xe0] sm:$0xff]  }
 0x13a   : > { %4044 = vmatmul.mubr.bf16.vlgmr.msra.gmra.mrb[64].mxu0 %v14421_v3  ;;  %12245 = vmatmul.mubr.bf16.vlgmr.msra.gmra.mrb[8].mxu1 %v3816_v29  ;;  %v13051_v3 = vld [vmem:[%s16391_s11 + $0x90] sm:$0xff]   ;;  %v4157_v29 = vrot.slane %v4155_v2, 1  ;;  %v4813_v2 = vld [vmem:[%s14748_s17 + $0x4] sm:$0xf] }
 0x13b   : > { %v14583_v39 = vadd.f32 %v12556_v23, %v11221_v34  ;;  %11499 = vmatpush3.bf16.msra.mxu0 %v13046_v19  ;;  %12249 = vmatpush3.bf16.msra.mxu1 %v13045_v9  ;;  %v13071_v19 = vld [vmem:[%s16391_s11 + $0x100] sm:$0xff]   ;;  %v4511_v15 = vrot.slane %v10265_v22, 1  ;;  %v4168_v38 = vsel %vm1024_vm0, %v4165_v20, %v4167_v27  ;;  %v13077_v20 = vld [vmem:[%s16391_s11 + $0xc8] sm:$0xff]   ;;  %v13095_v22 = vld [vmem:[%s16391_s11 + $0xf8] sm:$0xff]   ;;  %v4498_v27 = vshrl.u32 %v14690_v25, 16 }
 0x13c   : > { %11500 = vmatprep.subr.bf16.mxu0 %v13047_v30  ;;  %12250 = vmatprep.subr.bf16.mxu1 %v13048_v32  ;;  %v4489_v30 = vshll.u32 %v14667_v1, 16  ;;  %v13074_v23 = vld [vmem:[%s16391_s11 + $0xc0] sm:$0xff]  }
 0x13d   : > { %4051 = vmatprep.mubr.bf16.mxu0 %v3806_v37  ;;  %12264 = vmatprep.mubr.bf16.mxu1 %v4166_v28  ;;  %v13075_v28 = vld [vmem:[%s16391_s11 + $0x108] sm:$0xff]  }
 0x13f   : > { %11501 = vmatpush3.bf16.msra.mxu0 %v13049_v11  ;;  %12251 = vmatpush3.bf16.msra.mxu1 %v13048_v32  ;;  %v4153_v11 = vor.u32 %v4151_v21, %v14603_v18  ;;  %v4487_v18 = vshrl.u32 %v14667_v1, 16 }
 0x140   : > { %11502 = vmatprep.subr.bf16.mxu0 %v13050_v40  ;;  %12252 = vmatprep.subr.bf16.mxu1 %v13051_v3 }
 0x142   : > { %4052 = vmatmul.mubr.bf16.gmra.mrb[68].mxu0 %v14424_v4  ;;  %v13057_v4 = vld [vmem:[%s16391_s11 + $0xa0] sm:$0xff]  }
 0x143   : > { %11503 = vmatpush3.bf16.msra.mxu0 %v13052_v41  ;;  %12253 = vmatpush3.bf16.msra.mxu1 %v13051_v3  ;;  %v13076_v3 = vld [vmem:[%s16391_s11 + $0x148] sm:$0xff]  }
 0x144   : > { %11504 = vmatprep.subr.bf16.mxu0 %v13053_v43  ;;  %12254 = vmatprep.subr.bf16.mxu1 %v13054_v44  ;;  %v4158_v43 = vsel %vm998_vm1, %v4153_v11, %v4157_v29 }
 0x145   : > { %4395 = vmatprep.mubr.bf16.mxu0 %v4150_v46 }
 0x147   : > { %11505 = vmatpush3.bf16.msra.mxu0 %v13055_v45  ;;  %12255 = vmatpush3.bf16.msra.mxu1 %v13054_v44  ;;  %v4491_v44 = vrot.slane %v4489_v30, 1  ;;  %v4494_v45 = vshll.u32 %v14690_v25, 16 }
 0x148   : > { %11506 = vmatprep.subr.bf16.mxu0 %v13056_v36  ;;  %12256 = vmatprep.subr.bf16.mxu1 %v13057_v4 }
 0x14b   : > { %11507 = vmatpush3.bf16.msra.mxu0 %v13058_v47  ;;  %12257 = vmatpush3.bf16.msra.mxu1 %v13057_v4  ;;  %v13079_v4 = vld [vmem:[%s16391_s11 + $0x150] sm:$0xff]  }
 0x14c   : > { %11508 = vmatprep.subr.bf16.mxu0 %v13059_v48  ;;  %12258 = vmatprep.subr.bf16.mxu1 %v13060_v49  ;;  %v4492_v48 = vor.u32 %v4491_v44, %v4487_v18  ;;  %v13105_v18 = vld [vmem:[%s16391_s11 + $0x188] sm:$0xff]  }
 0x14d   : > { %v11248_v56 = vpop.f32.mrb[16].mxu0  ;;  %v14653_v59 = vpop.f32.mrb[0].mxu1 }
 0x14e   : > { %v11249_v61 = vpop.f32.mrb[17].mxu0  ;;  %v2003_v62 = vpop.f32.mrb[1].mxu1 }
 0x14f   : > { %v11250_v5 = vadd.f32 %v11249_v61, %v11248_v56  ;;  %v11251_v6 = vpop.f32.mrb[18].mxu0  ;;  %v14664_v7 = vpop.f32.mrb[2].mxu1  ;;  %11509 = vmatpush3.bf16.msra.mxu0 %v13061_v50  ;;  %12259 = vmatpush3.bf16.msra.mxu1 %v13060_v49  ;;  %v14736_v49 = vrot.slane %v4494_v45, 1  ;;  %v13081_v50 = vld [vmem:[%s16391_s11 + $0x118] sm:$0xff]   ;;  %v13087_v56 = vld [vmem:[%s16391_s11 + $0x128] sm:$0xff]   ;;  %v13090_v61 = vld [vmem:[%s16391_s11 + $0x130] sm:$0xff]  }
 0x150   : > { %v11252_v9 = vpop.f32.mrb[19].mxu0  ;;  %v2006_v10 = vpop.f32.mrb[3].mxu1  ;;  %11510 = vmatprep.subr.bf16.mxu0 %v13062_v51  ;;  %12260 = vmatprep.subr.bf16.mxu1 %v13063_v52  ;;  %v13082_v51 = vld [vmem:[%s16391_s11 + $0x158] sm:$0xff]  }
 0x151   : > { %v12554_v13 = vadd.f32 %v14535_v58, %v11250_v5  ;;  %v11253_v16 = vadd.f32 %v11252_v9, %v11251_v6  ;;  %v13072_v58 = vld [vmem:[%s16391_s11 + $0x140] sm:$0xff]   ;;  %v13092_v6 = vld [vmem:[%s16391_s11 + $0xf0] sm:$0xff]   ;;  %v13093_v9 = vld [vmem:[%s16391_s11 + $0x138] sm:$0xff]  }
 0x153   : > { %v12555_v24 = vadd.f32 %v12554_v13, %v2003_v62  ;;  %v12562_v26 = vadd.f32 %v14547_v12, %v11253_v16  ;;  %11511 = vmatpush3.bf16.msra.mxu0 %v13064_v60  ;;  %12261 = vmatpush3.bf16.msra.mxu1 %v13063_v52  ;;  %v4512_v12 = vrot.slane %v14690_v25, 1  ;;  %v4497_v52 = vsel %vm998_vm1, %v4492_v48, %v14736_v49  ;;  %v13089_v60 = vld [vmem:[%s16391_s11 + $0xe8] sm:$0xff]   ;;  %v13091_v62 = vld [vmem:[%s16391_s11 + $0x170] sm:$0xff]   ;;  %v13094_v16 = vld [vmem:[%s16391_s11 + $0x178] sm:$0xff]  }
 0x154   : > { %11512 = vmatprep.subr.bf16.mxu0 %v13065_v57  ;;  %12262 = vmatprep.subr.bf16.mxu1 %v13066_v63  ;;  %v4812_v57 = vld [vmem:[%s14748_s17] sm:$0xf]  ;;  %v13110_v48 = vld [vmem:[%s16391_s11 + $0x218] sm:$0xff]  }
 0x155   : > { %2022 = vst [vmem:[%s14679_s19] sm:$0xff] %v12555_v24  ;;  %v12563_v31 = vadd.f32 %v12562_v26, %v2006_v10  ;;  %v11254_v32 = vpop.f32.mrb[20].mxu0  ;;  %v13099_v24 = vld [vmem:[%s16391_s11 + $0x1c0] sm:$0xff]  }
 0x156   : > { %v11255_v34 = vpop.f32.mrb[21].mxu0  ;;  %v13100_v26 = vld [vmem:[%s16391_s11 + $0x200] sm:$0xff]  }
 0x157   : > { %2023 = vst [vmem:[%s14679_s19 + $0x8] sm:$0xff] %v12563_v31  ;;  %v11256_v37 = vadd.f32 %v11255_v34, %v11254_v32  ;;  %v11257_v35 = vpop.f32.mrb[22].mxu0  ;;  %11513 = vmatpush3.bf16.msra.mxu0 %v13067_v17  ;;  %12263 = vmatpush3.bf16.msra.mxu1 %v13066_v63  ;;  %v13101_v63 = vld [vmem:[%s14393_s28 + $0x10] ss:$0 sps:$4 sm:$0x11]   ;;  %v14810_v31 = vld [vmem:[%s14748_s17 + $0x8] sm:$0xff]  }
 0x158   : > { %v11258_v40 = vpop.f32.mrb[23].mxu0  ;;  %11536 = vmatprep.subr.bf16.mxu0 %v13071_v19  ;;  %12268 = vmatprep.subr.bf16.mxu1 %v13072_v58  ;;  %v4502_v19 = vshll.u32 %v13101_v63, 16  ;;  %v4514_v30 = vrot.slane %v13101_v63, 1  ;;  %v13102_v34 = vld [vmem:[%s16391_s11 + $0x180] sm:$0xff]  }
 0x159   : > { %v12550_v41 = vadd.f32 %v14571_v33, %v11256_v37  ;;  %v11259_v42 = vadd.f32 %v11258_v40, %v11257_v35  ;;  %v4513_v33 = vsel %vm1024_vm0, %v4511_v15, %v4512_v12  ;;  %v4859_v15 = vrot.slane %v14810_v31, 1  ;;  %v13103_v40 = vld [vmem:[%s16391_s11 + $0x1c8] sm:$0xff]   ;;  %v5169_v63 = vld [vmem:[%s14393_s28] sm:$0xe] }
 0x15a   : > { %4396 = vmatmul.mubr.bf16.vlgmr.msra.gmra.mrb[72].mxu0 %v14531_v0  ;;  %12265 = vmatmul.mubr.bf16.vlgmr.msra.gmra.mrb[12].mxu1 %v4168_v38  ;;  %v13078_v0 = vld [vmem:[%s16391_s11 + $0x110] sm:$0xff]   ;;  %v4504_v32 = vrot.slane %v4502_v19, 1  ;;  %v4500_v37 = vor.u32 %v4498_v27, %v14736_v49  ;;  %v13128_v27 = vld [vmem:[%s16391_s11 + $0x40] sm:$0xff]  }
 0x15b   : > { %v12551_v46 = vadd.f32 %v12550_v41, %v14653_v59  ;;  %v12558_v36 = vadd.f32 %v14583_v39, %v11259_v42  ;;  %11537 = vmatpush3.bf16.msra.mxu0 %v13074_v23  ;;  %12269 = vmatpush3.bf16.msra.mxu1 %v13072_v58  ;;  %v13080_v39 = vld [vmem:[%s16391_s11 + $0xd0] sm:$0xff]   ;;  %v13088_v59 = vld [vmem:[%s16391_s11 + $0x168] sm:$0xff]   ;;  %v14795_v58 = vcombine.low %v4812_v57, %v4813_v2 }
 0x15c   : > { %11538 = vmatprep.subr.bf16.mxu0 %v13075_v28  ;;  %12270 = vmatprep.subr.bf16.mxu1 %v13076_v3  ;;  %v4515_v28 = vsel %vm1024_vm0, %v4512_v12, %v4514_v30  ;;  %v13104_v42 = vld [vmem:[%s16391_s11 + $0x208] sm:$0xff]   ;;  %v4505_v44 = vsel %vm998_vm1, %v4500_v37, %v4504_v32  ;;  %v13120_v57 = vld [vmem:[%s16391_s11 + $0x1b0] sm:$0xff]   ;;  %v4845_v30 = vshrl.u32 %v14810_v31, 16 }
 0x15d   : > { %2024 = vst [vmem:[%s14679_s19 + $0x10] sm:$0xff] %v12551_v46  ;;  %v12559_v47 = vadd.f32 %v12558_v36, %v14664_v7  ;;  %4403 = vmatprep.mubr.bf16.mxu0 %v4158_v43  ;;  %12284 = vmatprep.mubr.bf16.mxu1 %v4513_v33  ;;  %v4817_v7 = vld [vmem:[%s14748_s17] sm:$0xe]  ;;  %v4836_v23 = vshll.u32 %v14795_v58, 16  ;;  %v4834_v12 = vshrl.u32 %v14795_v58, 16  ;;  %v4841_v33 = vshll.u32 %v14810_v31, 16 }
 0x15e   : > { %v10341_v29 = vcombine.low %v4817_v7, %v4813_v2  ;;  %v13106_v36 = vld [vmem:[%s16391_s11 + $0x1d0] sm:$0xff]  }
 0x15f   : > { %2025 = vst [vmem:[%s14679_s19 + $0x18] sm:$0xff] %v12559_v47  ;;  %11539 = vmatpush3.bf16.msra.mxu0 %v13077_v20  ;;  %12271 = vmatpush3.bf16.msra.mxu1 %v13076_v3  ;;  %v4838_v45 = vrot.slane %v4836_v23, 1  ;;  %v13108_v47 = vld [vmem:[%s16391_s11 + $0x190] sm:$0xff]  }
 0x160   : > { %11540 = vmatprep.subr.bf16.mxu0 %v13078_v0  ;;  %12272 = vmatprep.subr.bf16.mxu1 %v13079_v4  ;;  %v4858_v38 = vrot.slane %v10341_v29, 1  ;;  %v13129_v29 = vld [vmem:[%s16391_s11 + $0x80] sm:$0xff]  }
 0x161   : > { %v4839_v0 = vor.u32 %v4838_v45, %v4834_v12  ;;  %v13131_v45 = vld [vmem:[%s16391_s11 + $0x48] sm:$0xff]  }
 0x162   : > { %4404 = vmatmul.mubr.bf16.gmra.mrb[76].mxu0 %v14550_v14  ;;  %v13085_v14 = vld [vmem:[%s16391_s11 + $0x160] sm:$0xff]   ;;  %v4860_v46 = vsel %vm1024_vm0, %v4858_v38, %v4859_v15 }
 0x163   : > { %11541 = vmatpush3.bf16.msra.mxu0 %v13080_v39  ;;  %12273 = vmatpush3.bf16.msra.mxu1 %v13079_v4  ;;  %v14847_v4 = vrot.slane %v4841_v33, 1  ;;  %v13109_v39 = vld [vmem:[%s16391_s11 + $0x1d8] sm:$0xff]   ;;  %v13130_v38 = vld [vmem:[%s16391_s11] sm:$0xff]  }
 0x164   : > { %11542 = vmatprep.subr.bf16.mxu0 %v13081_v50  ;;  %12274 = vmatprep.subr.bf16.mxu1 %v13082_v51  ;;  %v13111_v50 = vld [vmem:[%s16391_s11 + $0x198] sm:$0xff]  }
 0x165   : > { %4742 = vmatprep.mubr.bf16.mxu0 %v4497_v52  ;;  %v4844_v49 = vsel %vm998_vm1, %v4839_v0, %v14847_v4  ;;  %v13113_v52 = vld [vmem:[%s16391_s11 + $0x220] sm:$0xff]  }
 0x167   : > { %11543 = vmatpush3.bf16.msra.mxu0 %v13083_v53  ;;  %12275 = vmatpush3.bf16.msra.mxu1 %v13082_v51  ;;  %v13112_v51 = vld [vmem:[%s16391_s11 + $0x1e0] sm:$0xff]   ;;  %v13115_v53 = vld [vmem:[%s16391_s11 + $0x1e8] sm:$0xff]  }
 0x168   : > { %11544 = vmatprep.subr.bf16.mxu0 %v13084_v54  ;;  %12276 = vmatprep.subr.bf16.mxu1 %v13085_v14  ;;  %v13116_v54 = vld [vmem:[%s16391_s11 + $0x228] sm:$0xff]  }
 0x16b   : > { %11545 = vmatpush3.bf16.msra.mxu0 %v13086_v55  ;;  %12277 = vmatpush3.bf16.msra.mxu1 %v13085_v14  ;;  %v13117_v14 = vld [vmem:[%s16391_s11 + $0x1a8] sm:$0xff]   ;;  %v13118_v55 = vld [vmem:[%s16391_s11 + $0x1f0] sm:$0xff]  }
 0x16c   : > { %11546 = vmatprep.subr.bf16.mxu0 %v13087_v56  ;;  %12278 = vmatprep.subr.bf16.mxu1 %v13088_v59  ;;  %v13119_v56 = vld [vmem:[%s16391_s11 + $0x230] sm:$0xff]  }
 0x16d   : > { %v11286_v5 = vpop.f32.mrb[24].mxu0 }
 0x16e   : > { %v11287_v8 = vpop.f32.mrb[25].mxu0 }
 0x16f   : > { %v14790_v10 = vadd.f32 %v11287_v8, %v11286_v5  ;;  %v11289_v13 = vpop.f32.mrb[26].mxu0  ;;  %11547 = vmatpush3.bf16.msra.mxu0 %v13089_v60  ;;  %12279 = vmatpush3.bf16.msra.mxu1 %v13088_v59  ;;  %v5164_v59 = vld [vmem:[%s14393_s28] sm:$0xf]  ;;  %v13127_v60 = vld [vmem:[%s14748_s17 + $0x10] ss:$0 sps:$4 sm:$0x11]  }
 0x170   : > { %v11290_v17 = vpop.f32.mrb[27].mxu0  ;;  %11548 = vmatprep.subr.bf16.mxu0 %v13090_v61  ;;  %12280 = vmatprep.subr.bf16.mxu1 %v13091_v62  ;;  %v5165_v61 = vld [vmem:[%s14393_s28 + $0x4] sm:$0xf]  ;;  %v13121_v5 = vld [vmem:[%s16391_s11 + $0x1f8] sm:$0xff]   ;;  %v4861_v23 = vrot.slane %v13127_v60, 1 }
 0x171   : > { %v14797_v21 = vadd.f32 %v11290_v17, %v11289_v13  ;;  %v13122_v13 = vld [vmem:[%s16391_s11 + $0x238] sm:$0xff]   ;;  %v4849_v17 = vshll.u32 %v13127_v60, 16  ;;  %v14909_v19 = vcombine.low %v5164_v59, %v5165_v61  ;;  %v13143_v59 = vld [vmem:[%s16391_s11 + $0x68] sm:$0xff]  }
 0x172   : > { %v13144_v60 = vld [vmem:[%s16391_s11 + $0xa8] sm:$0xff]  }
 0x173   : > { %11549 = vmatpush3.bf16.msra.mxu0 %v13092_v6  ;;  %12281 = vmatpush3.bf16.msra.mxu1 %v13091_v62  ;;  %v14902_v6 = vld [vmem:[%s16392_s12] ss:$0 sm:$0xff]  ;;  %v5188_v37 = vshll.u32 %v14909_v19, 16  ;;  %v5186_v0 = vshrl.u32 %v14909_v19, 16 }
 0x174   : > { %11550 = vmatprep.subr.bf16.mxu0 %v13093_v9  ;;  %12282 = vmatprep.subr.bf16.mxu1 %v13094_v16  ;;  %v12568_v7 = vadd.f32 %v14902_v6, %v14790_v10 }
 0x175   : > { %v11292_v11 = vpop.f32.mrb[28].mxu0 }
 0x176   : > { %v11293_v35 = vpop.f32.mrb[29].mxu0 }
 0x177   : > { %11551 = vmatpush3.bf16.msra.mxu0 %v13095_v22  ;;  %12283 = vmatpush3.bf16.msra.mxu1 %v13094_v16  ;;  %v14824_v3 = vadd.f32 %v11293_v35, %v11292_v11  ;;  %v11295_v41 = vpop.f32.mrb[30].mxu0  ;;  %v12576_v22 = vadd.f32 %v14902_v6, %v14797_v21  ;;  %v10421_v21 = vcombine.low %v5169_v63, %v5165_v61  ;;  %v4851_v11 = vrot.slane %v4849_v17, 1  ;;  %v13145_v61 = vld [vmem:[%s16391_s11 + $0x28] sm:$0xff]   ;;  %v13157_v63 = vld [vmem:[%s14393_s28 + $0x10] ss:$0 sps:$4 sm:$0x11]  }
 0x178   : > { %11574 = vmatprep.subr.bf16.mxu0 %v13099_v24  ;;  %12288 = vmatprep.subr.bf16.mxu1 %v13100_v26  ;;  %v11296_v20 = vpop.f32.mrb[31].mxu0  ;;  %v13149_v17 = vld [vmem:[%s16391_s11 + $0x78] sm:$0xff]  }
 0x179   : > { %v14832_v43 = vadd.f32 %v11296_v20, %v11295_v41  ;;  %v4847_v41 = vor.u32 %v4845_v30, %v14847_v4  ;;  %v12564_v20 = vadd.f32 %v14902_v6, %v14824_v3  ;;  %v5190_v4 = vrot.slane %v5188_v37, 1 }
 0x17a   : > { %4743 = vmatmul.mubr.bf16.vlgmr.msra.gmra.mrb[80].mxu0 %v14667_v1  ;;  %12285 = vmatmul.mubr.bf16.vlgmr.msra.gmra.mrb[12].mxu1 %v4515_v28  ;;  %v13107_v1 = vld [vmem:[%s16391_s11 + $0x210] sm:$0xff]  }
 0x17b   : > { %11575 = vmatpush3.bf16.msra.mxu0 %v13102_v34  ;;  %12289 = vmatpush3.bf16.msra.mxu1 %v13100_v26  ;;  %v13123_v26 = vld [vmem:[%s16391_s11 + $0x1b8] sm:$0xff]   ;;  %v14930_v34 = vld [vmem:[%s14393_s28 + $0x8] sm:$0xff]   ;;  %v12572_v3 = vadd.f32 %v14902_v6, %v14832_v43  ;;  %s9676_s28 = sshll.u32 %s922_s18, 2 }
 0x17c   : > { %11576 = vmatprep.subr.bf16.mxu0 %v13103_v40  ;;  %12290 = vmatprep.subr.bf16.mxu1 %v13104_v42  ;;  %v5211_v28 = vrot.slane %v14930_v34, 1  ;;  %v13133_v43 = vld [vmem:[%s16391_s11 + $0x8] sm:$0xff]   ;;  %s15373_s30 = scalar_lea.vmem %s16388_s8, %s9676_s28 }
 0x17d   : > { %4750 = vmatprep.mubr.bf16.mxu0 %v4505_v44  ;;  %12304 = vmatprep.mubr.bf16.mxu1 %v4860_v46  ;;  %v4862_v44 = vsel %vm1024_vm0, %v4859_v15, %v4861_v23  ;;  %v13132_v46 = vld [vmem:[%s16391_s11 + $0x88] sm:$0xff]   ;;  %v4852_v15 = vsel %vm998_vm1, %v4847_v41, %v4851_v11  ;;  %v5201_v23 = vshll.u32 %v13157_v63, 16 }
 0x17f   : > { %11577 = vmatpush3.bf16.msra.mxu0 %v13105_v18  ;;  %12291 = vmatpush3.bf16.msra.mxu1 %v13104_v42  ;;  %v5210_v42 = vrot.slane %v10421_v21, 1  ;;  %v13150_v21 = vld [vmem:[%s16391_s11 + $0xb8] sm:$0xff]  }
 0x180   : > { %11578 = vmatprep.subr.bf16.mxu0 %v13106_v36  ;;  %12292 = vmatprep.subr.bf16.mxu1 %v13107_v1 }
 0x182   : > { %4751 = vmatmul.mubr.bf16.gmra.mrb[84].mxu0 %v14690_v25  ;;  %v13114_v25 = vld [vmem:[%s16391_s11 + $0x1a0] sm:$0xff]  }
 0x183   : > { %11579 = vmatpush3.bf16.msra.mxu0 %v13108_v47  ;;  %12293 = vmatpush3.bf16.msra.mxu1 %v13107_v1  ;;  %v5193_v47 = vshll.u32 %v14930_v34, 16 }
 0x184   : > { %11580 = vmatprep.subr.bf16.mxu0 %v13109_v39  ;;  %12294 = vmatprep.subr.bf16.mxu1 %v13110_v48  ;;  %v5212_v39 = vsel %vm1024_vm0, %v5210_v42, %v5211_v28 }
 0x185   : > { %5089 = vmatprep.mubr.bf16.mxu0 %v4844_v49  ;;  %v13135_v49 = vld [vmem:[%s16391_s11 + $0x90] sm:$0xff]  }
 0x187   : > { %11581 = vmatpush3.bf16.msra.mxu0 %v13111_v50  ;;  %12295 = vmatpush3.bf16.msra.mxu1 %v13110_v48  ;;  %v13136_v50 = vld [vmem:[%s16391_s11 + $0x10] sm:$0xff]  }
 0x188   : > { %11582 = vmatprep.subr.bf16.mxu0 %v13112_v51  ;;  %12296 = vmatprep.subr.bf16.mxu1 %v13113_v52  ;;  %v5191_v51 = vor.u32 %v5190_v4, %v5186_v0 }
 0x18b   : > { %11583 = vmatpush3.bf16.msra.mxu0 %v13114_v25  ;;  %12297 = vmatpush3.bf16.msra.mxu1 %v13113_v52  ;;  %v14975_v52 = vrot.slane %v5193_v47, 1  ;;  %v13137_v25 = vld [vmem:[%s16391_s11 + $0x58] sm:$0xff]  }
 0x18c   : > { %11584 = vmatprep.subr.bf16.mxu0 %v13115_v53  ;;  %12298 = vmatprep.subr.bf16.mxu1 %v13116_v54  ;;  %v13138_v53 = vld [vmem:[%s16391_s11 + $0x98] sm:$0xff]  }
 0x18d   : > { %v11324_v62 = vpop.f32.mrb[32].mxu0 }
 0x18e   : > { %v11325_v2 = vpop.f32.mrb[33].mxu0 }
 0x18f   : > { %v11326_v8 = vadd.f32 %v11325_v2, %v11324_v62  ;;  %v11327_v9 = vpop.f32.mrb[34].mxu0  ;;  %11585 = vmatpush3.bf16.msra.mxu0 %v13117_v14  ;;  %12299 = vmatpush3.bf16.msra.mxu1 %v13116_v54  ;;  %v13139_v54 = vld [vmem:[%s16391_s11 + $0x18] sm:$0xff]   ;;  %v5196_v14 = vsel %vm998_vm1, %v5191_v51, %v14975_v52  ;;  %v13146_v62 = vld [vmem:[%s16391_s11 + $0x70] sm:$0xff]  }
 0x190   : > { %v11328_v16 = vpop.f32.mrb[35].mxu0  ;;  %11586 = vmatprep.subr.bf16.mxu0 %v13118_v55  ;;  %12300 = vmatprep.subr.bf16.mxu1 %v13119_v56  ;;  %v13140_v55 = vld [vmem:[%s16391_s11 + $0x60] sm:$0xff]  }
 0x191   : > { %v14913_v24 = vadd.f32 %v12568_v7, %v11326_v8  ;;  %v11329_v10 = vadd.f32 %v11328_v16, %v11327_v9  ;;  %v13148_v7 = vld [vmem:[%s16391_s11 + $0x30] sm:$0xff]   ;;  %v5511_v8 = vld [vmem:[%s14748_s17] sm:$0xf]  ;;  %v5512_v9 = vld [vmem:[%s14748_s17 + $0x4] sm:$0xf] }
 0x192   : > { %v15043_v41 = vcombine.low %v5511_v8, %v5512_v9  ;;  %v13171_v8 = vld [vmem:[%s16391_s11 + $0x128] sm:$0xff]  }
 0x193   : > { %v14927_v32 = vadd.f32 %v12576_v22, %v11329_v10  ;;  %11587 = vmatpush3.bf16.msra.mxu0 %v13120_v57  ;;  %12301 = vmatpush3.bf16.msra.mxu1 %v13119_v56  ;;  %v13142_v56 = vld [vmem:[%s16391_s11 + $0x20] sm:$0xff]   ;;  %v13147_v57 = vld [vmem:[%s16391_s11 + $0xb0] sm:$0xff]  }
 0x194   : > { %11588 = vmatprep.subr.bf16.mxu0 %v13121_v5  ;;  %12302 = vmatprep.subr.bf16.mxu1 %v13122_v13  ;;  %v5516_v22 = vld [vmem:[%s14748_s17] sm:$0xe] }
 0x195   : > { %v11330_v35 = vpop.f32.mrb[36].mxu0  ;;  %v10449_v42 = vcombine.low %v5516_v22, %v5512_v9  ;;  %v13172_v9 = vld [vmem:[%s16391_s11 + $0x168] sm:$0xff]   ;;  %v5858_v22 = vld [vmem:[%s15058_s1] sm:$0xf] }
 0x196   : > { %v11331_v40 = vpop.f32.mrb[37].mxu0 }
 0x197   : > { %v11332_v18 = vadd.f32 %v11331_v40, %v11330_v35  ;;  %v11333_v12 = vpop.f32.mrb[38].mxu0  ;;  %11589 = vmatpush3.bf16.msra.mxu0 %v13123_v26  ;;  %12303 = vmatpush3.bf16.msra.mxu1 %v13122_v13  ;;  %v13151_v35 = vld [vmem:[%s16391_s11 + $0x38] sm:$0xff]   ;;  %v5197_v40 = vshrl.u32 %v14930_v34, 16  ;;  %v5557_v0 = vrot.slane %v10449_v42, 1 }
 0x198   : > { %v11334_v33 = vpop.f32.mrb[39].mxu0  ;;  %11612 = vmatprep.subr.bf16.mxu0 %v13128_v27  ;;  %12308 = vmatprep.subr.bf16.mxu1 %v13129_v29 }
 0x199   : > { %v14951_v36 = vadd.f32 %v12564_v20, %v11332_v18  ;;  %v11335_v1 = vadd.f32 %v11334_v33, %v11333_v12  ;;  %v5213_v12 = vrot.slane %v13157_v63, 1  ;;  %v13167_v63 = vld [vmem:[%s16391_s11 + $0xd8] sm:$0xff]  }
 0x19a   : > { %5090 = vmatmul.mubr.bf16.vlgmr.msra.gmra.mrb[88].mxu0 %v14795_v58  ;;  %12305 = vmatmul.mubr.bf16.vlgmr.msra.gmra.mrb[12].mxu1 %v4862_v44  ;;  %v13134_v58 = vld [vmem:[%s16391_s11 + $0x50] sm:$0xff]   ;;  %v15050_v44 = vld [vmem:[%s14748_s17 + $0x8] sm:$0xff]  }
 0x19b   : > { %v14960_v48 = vadd.f32 %v12572_v3, %v11335_v1  ;;  %11613 = vmatpush3.bf16.msra.mxu0 %v13130_v38  ;;  %12309 = vmatpush3.bf16.msra.mxu1 %v13129_v29  ;;  %v13155_v38 = vld [vmem:[%s16391_s11 + $0x100] sm:$0xff]   ;;  %v5199_v3 = vor.u32 %v5197_v40, %v14975_v52  ;;  %v5535_v1 = vshll.u32 %v15043_v41, 16 }
 0x19c   : > { %11614 = vmatprep.subr.bf16.mxu0 %v13131_v45  ;;  %12310 = vmatprep.subr.bf16.mxu1 %v13132_v46 }
 0x19d   : > { %5097 = vmatprep.mubr.bf16.mxu0 %v4852_v15  ;;  %12324 = vmatprep.mubr.bf16.mxu1 %v5212_v39  ;;  %v5558_v15 = vrot.slane %v15050_v44, 1  ;;  %v5214_v39 = vsel %vm1024_vm0, %v5211_v28, %v5213_v12  ;;  %v13161_v28 = vld [vmem:[%s16391_s11 + $0xc8] sm:$0xff]  }
 0x19f   : > { %11615 = vmatpush3.bf16.msra.mxu0 %v13133_v43  ;;  %12311 = vmatpush3.bf16.msra.mxu1 %v13132_v46  ;;  %v5203_v46 = vrot.slane %v5201_v23, 1  ;;  %v13158_v43 = vld [vmem:[%s16391_s11 + $0xc0] sm:$0xff]  }
 0x1a0   : > { %11616 = vmatprep.subr.bf16.mxu0 %v13134_v58  ;;  %12312 = vmatprep.subr.bf16.mxu1 %v13135_v49 }
 0x1a2   : > { %5098 = vmatmul.mubr.bf16.gmra.mrb[92].mxu0 %v14810_v31  ;;  %v13141_v31 = vld [vmem:[%s16391_s11 + $0xa0] sm:$0xff]  }
 0x1a3   : > { %11617 = vmatpush3.bf16.msra.mxu0 %v13136_v50  ;;  %12313 = vmatpush3.bf16.msra.mxu1 %v13135_v49  ;;  %v13159_v49 = vld [vmem:[%s16391_s11 + $0x108] sm:$0xff]  }
 0x1a4   : > { %11618 = vmatprep.subr.bf16.mxu0 %v13137_v25  ;;  %12314 = vmatprep.subr.bf16.mxu1 %v13138_v53  ;;  %v13160_v50 = vld [vmem:[%s16391_s11 + $0x148] sm:$0xff]   ;;  %v5533_v25 = vshrl.u32 %v15043_v41, 16 }
 0x1a5   : > { %5441 = vmatprep.mubr.bf16.mxu0 %v5196_v14  ;;  %v5537_v14 = vrot.slane %v5535_v1, 1 }
 0x1a7   : > { %11619 = vmatpush3.bf16.msra.mxu0 %v13139_v54  ;;  %12315 = vmatpush3.bf16.msra.mxu1 %v13138_v53  ;;  %v13162_v53 = vld [vmem:[%s16391_s11 + $0x110] sm:$0xff]   ;;  %v5204_v54 = vsel %vm998_vm1, %v5199_v3, %v5203_v46  ;;  %v15166_v46 = vld [vmem:[%s15058_s1 + $0x8] sm:$0xff]  }
 0x1a8   : > { %11620 = vmatprep.subr.bf16.mxu0 %v13140_v55  ;;  %12316 = vmatprep.subr.bf16.mxu1 %v13141_v31  ;;  %v5559_v55 = vsel %vm1024_vm0, %v5557_v0, %v5558_v15 }
 0x1ab   : > { %11621 = vmatpush3.bf16.msra.mxu0 %v13142_v56  ;;  %12317 = vmatpush3.bf16.msra.mxu1 %v13141_v31 }
 0x1ac   : > { %11622 = vmatprep.subr.bf16.mxu0 %v13143_v59  ;;  %12318 = vmatprep.subr.bf16.mxu1 %v13144_v60 }
 0x1ad   : > { %v11362_v2 = vpop.f32.mrb[40].mxu0  ;;  %v15019_v5 = vpop.f32.mrb[4].mxu1 }
 0x1ae   : > { %v11363_v13 = vpop.f32.mrb[41].mxu0  ;;  %v3048_v16 = vpop.f32.mrb[5].mxu1 }
 0x1af   : > { %v11364_v10 = vadd.f32 %v11363_v13, %v11362_v2  ;;  %v11365_v26 = vpop.f32.mrb[42].mxu0  ;;  %v15030_v27 = vpop.f32.mrb[6].mxu1  ;;  %11623 = vmatpush3.bf16.msra.mxu0 %v13145_v61  ;;  %12319 = vmatpush3.bf16.msra.mxu1 %v13144_v60  ;;  %v13164_v60 = vld [vmem:[%s16391_s11 + $0xd0] sm:$0xff]   ;;  %v5538_v61 = vor.u32 %v5537_v14, %v5533_v25  ;;  %v13173_v13 = vld [vmem:[%s16391_s11 + $0xe8] sm:$0xff]  }
 0x1b0   : > { %v11366_v29 = vpop.f32.mrb[43].mxu0  ;;  %v3051_v30 = vpop.f32.mrb[7].mxu1  ;;  %11624 = vmatprep.subr.bf16.mxu0 %v13146_v62  ;;  %12320 = vmatprep.subr.bf16.mxu1 %v13147_v57 }
 0x1b1   : > { %v12570_v11 = vadd.f32 %v14913_v24, %v11364_v10  ;;  %v11367_v37 = vadd.f32 %v11366_v29, %v11365_v26  ;;  %v13156_v24 = vld [vmem:[%s16391_s11 + $0x140] sm:$0xff]  }
 0x1b2   : > { %v5859_v10 = vld [vmem:[%s15058_s1 + $0x4] sm:$0xf]  ;;  %v5863_v29 = vld [vmem:[%s15058_s1] sm:$0xe] }
 0x1b3   : > { %v12571_v20 = vadd.f32 %v12570_v11, %v3048_v16  ;;  %v12578_v18 = vadd.f32 %v14927_v32, %v11367_v37  ;;  %11625 = vmatpush3.bf16.msra.mxu0 %v13148_v7  ;;  %12321 = vmatpush3.bf16.msra.mxu1 %v13147_v57  ;;  %v13166_v57 = vld [vmem:[%s16391_s11 + $0x158] sm:$0xff]   ;;  %v13169_v7 = vld [vmem:[%s16391_s11 + $0x160] sm:$0xff]   ;;  %v13174_v16 = vld [vmem:[%s16391_s11 + $0x130] sm:$0xff]   ;;  %v10525_v12 = vcombine.low %v5863_v29, %v5859_v10 }
 0x1b4   : > { %11626 = vmatprep.subr.bf16.mxu0 %v13149_v17  ;;  %12322 = vmatprep.subr.bf16.mxu1 %v13150_v21  ;;  %v13175_v17 = vld [vmem:[%s16391_s11 + $0x170] sm:$0xff]   ;;  %v13177_v37 = vld [vmem:[%s16391_s11 + $0x138] sm:$0xff]  }
 0x1b5   : > { %10046 = vst [vmem:[%s14679_s19 + $0x20] sm:$0xff] %v12571_v20  ;;  %v12579_v45 = vadd.f32 %v12578_v18, %v3051_v30  ;;  %v11368_v33 = vpop.f32.mrb[44].mxu0  ;;  %v15156_v20 = vcombine.low %v5858_v22, %v5859_v10  ;;  %v13179_v18 = vld [vmem:[%s16391_s11 + $0xf8] sm:$0xff]   ;;  %v13211_v10 = vld [vmem:[%s15058_s1 + $0x10] ss:$0 sps:$4 sm:$0x11]  }
 0x1b6   : > { %v11369_v32 = vpop.f32.mrb[45].mxu0 }
 0x1b7   : > { %10047 = vst [vmem:[%s14679_s19 + $0x28] sm:$0xff] %v12579_v45  ;;  %v11370_v4 = vadd.f32 %v11369_v32, %v11368_v33  ;;  %v11371_v47 = vpop.f32.mrb[46].mxu0  ;;  %11627 = vmatpush3.bf16.msra.mxu0 %v13151_v35  ;;  %12323 = vmatpush3.bf16.msra.mxu1 %v13150_v21  ;;  %v13176_v21 = vld [vmem:[%s16391_s11 + $0xf0] sm:$0xff]   ;;  %v13183_v45 = vld [vmem:[%s16391_s11 + $0x1c0] sm:$0xff]   ;;  %v5882_v0 = vshll.u32 %v15156_v20, 16 }
 0x1b8   : > { %v11372_v58 = vpop.f32.mrb[47].mxu0  ;;  %11650 = vmatprep.subr.bf16.mxu0 %v13155_v38  ;;  %12328 = vmatprep.subr.bf16.mxu1 %v13156_v24  ;;  %v13178_v38 = vld [vmem:[%s16391_s11 + $0x178] sm:$0xff]   ;;  %v13184_v32 = vld [vmem:[%s16391_s11 + $0x200] sm:$0xff]  }
 0x1b9   : > { %v12566_v51 = vadd.f32 %v14951_v36, %v11370_v4  ;;  %v11373_v52 = vadd.f32 %v11372_v58, %v11371_v47  ;;  %v5540_v36 = vshll.u32 %v15050_v44, 16  ;;  %v5905_v4 = vrot.slane %v15166_v46, 1 }
 0x1ba   : > { %5442 = vmatmul.mubr.bf16.vlgmr.msra.gmra.mrb[96].mxu0 %v14909_v19  ;;  %12325 = vmatmul.mubr.bf16.vlgmr.msra.gmra.mrb[16].mxu1 %v5214_v39  ;;  %v13163_v19 = vld [vmem:[%s16391_s11 + $0x150] sm:$0xff]  }
 0x1bb   : > { %v12567_v31 = vadd.f32 %v12566_v51, %v15019_v5  ;;  %v12574_v56 = vadd.f32 %v14960_v48, %v11373_v52  ;;  %11651 = vmatpush3.bf16.msra.mxu0 %v13158_v43  ;;  %12329 = vmatpush3.bf16.msra.mxu1 %v13156_v24  ;;  %v15100_v62 = vrot.slane %v5540_v36, 1  ;;  %v13165_v48 = vld [vmem:[%s16391_s11 + $0x118] sm:$0xff]   ;;  %v13168_v5 = vld [vmem:[%s16391_s11 + $0x120] sm:$0xff]   ;;  %v5544_v24 = vshrl.u32 %v15050_v44, 16 }
 0x1bc   : > { %11652 = vmatprep.subr.bf16.mxu0 %v13159_v49  ;;  %12330 = vmatprep.subr.bf16.mxu1 %v13160_v50  ;;  %v5904_v43 = vrot.slane %v10525_v12, 1  ;;  %v13186_v49 = vld [vmem:[%s16391_s11 + $0x180] sm:$0xff]   ;;  %v5880_v36 = vshrl.u32 %v15156_v20, 16  ;;  %v13207_v12 = vld [vmem:[%s16391_s11 + $0x1b8] sm:$0xff]  }
 0x1bd   : > { %10048 = vst [vmem:[%s14679_s19 + $0x30] sm:$0xff] %v12567_v31  ;;  %v12575_v59 = vadd.f32 %v12574_v56, %v15030_v27  ;;  %5449 = vmatprep.mubr.bf16.mxu0 %v5204_v54  ;;  %12344 = vmatprep.mubr.bf16.mxu1 %v5559_v55  ;;  %v5543_v2 = vsel %vm998_vm1, %v5538_v61, %v15100_v62  ;;  %v13185_v27 = vld [vmem:[%s14748_s17 + $0x10] ss:$0 sps:$4 sm:$0x11]   ;;  %v5887_v54 = vshll.u32 %v15166_v46, 16  ;;  %v5884_v55 = vrot.slane %v5882_v0, 1 }
 0x1be   : > { %v5548_v42 = vshll.u32 %v13185_v27, 16  ;;  %v5560_v33 = vrot.slane %v13185_v27, 1  ;;  %v5546_v47 = vor.u32 %v5544_v24, %v15100_v62  ;;  %v5906_v31 = vsel %vm1024_vm0, %v5904_v43, %v5905_v4  ;;  %v13190_v56 = vld [vmem:[%s16391_s11 + $0x1d0] sm:$0xff]   ;;  %v13193_v61 = vld [vmem:[%s16391_s11 + $0x1d8] sm:$0xff]   ;;  %v15289_v0 = vld [vmem:[%s14748_s17 + $0x8] sm:$0xff]  }
 0x1bf   : > { %10049 = vst [vmem:[%s14679_s19 + $0x38] sm:$0xff] %v12575_v59  ;;  %11653 = vmatpush3.bf16.msra.mxu0 %v13161_v28  ;;  %12331 = vmatpush3.bf16.msra.mxu1 %v13160_v50  ;;  %v13187_v50 = vld [vmem:[%s16391_s11 + $0x1c8] sm:$0xff]   ;;  %v5885_v59 = vor.u32 %v5884_v55, %v5880_v36  ;;  %v13194_v62 = vld [vmem:[%s16391_s11 + $0x218] sm:$0xff]  }
 0x1c0   : > { %11654 = vmatprep.subr.bf16.mxu0 %v13162_v53  ;;  %12332 = vmatprep.subr.bf16.mxu1 %v13163_v19  ;;  %v5550_v3 = vrot.slane %v5548_v42, 1  ;;  %v5561_v58 = vsel %vm1024_vm0, %v5558_v15, %v5560_v33  ;;  %v13188_v28 = vld [vmem:[%s16391_s11 + $0x208] sm:$0xff]   ;;  %v5891_v33 = vshrl.u32 %v15166_v46, 16 }
 0x1c1   : > { %v13189_v15 = vld [vmem:[%s16391_s11 + $0x188] sm:$0xff]  }
 0x1c2   : > { %5450 = vmatmul.mubr.bf16.gmra.mrb[100].mxu0 %v14930_v34  ;;  %v13170_v34 = vld [vmem:[%s16391_s11 + $0xe0] sm:$0xff]   ;;  %v5551_v14 = vsel %vm998_vm1, %v5546_v47, %v5550_v3  ;;  %v13215_v36 = vld [vmem:[%s16391_s11 + $0x48] sm:$0xff]  }
 0x1c3   : > { %11655 = vmatpush3.bf16.msra.mxu0 %v13164_v60  ;;  %12333 = vmatpush3.bf16.msra.mxu1 %v13163_v19  ;;  %v13192_v19 = vld [vmem:[%s16391_s11 + $0x190] sm:$0xff]   ;;  %v15209_v60 = vrot.slane %v5887_v54, 1 }
 0x1c4   : > { %11656 = vmatprep.subr.bf16.mxu0 %v13165_v48  ;;  %12334 = vmatprep.subr.bf16.mxu1 %v13166_v57  ;;  %v13195_v48 = vld [vmem:[%s16391_s11 + $0x198] sm:$0xff]  }
 0x1c5   : > { %5788 = vmatprep.mubr.bf16.mxu0 %v5543_v2  ;;  %v13198_v2 = vld [vmem:[%s16391_s11 + $0x1a0] sm:$0xff]  }
 0x1c7   : > { %11657 = vmatpush3.bf16.msra.mxu0 %v13167_v63  ;;  %12335 = vmatpush3.bf16.msra.mxu1 %v13166_v57  ;;  %v5890_v57 = vsel %vm998_vm1, %v5885_v59, %v15209_v60  ;;  %v13196_v63 = vld [vmem:[%s16391_s11 + $0x1e0] sm:$0xff]  }
 0x1c8   : > { %11658 = vmatprep.subr.bf16.mxu0 %v13168_v5  ;;  %12336 = vmatprep.subr.bf16.mxu1 %v13169_v7  ;;  %v13199_v5 = vld [vmem:[%s16391_s11 + $0x1e8] sm:$0xff]  }
 0x1cb   : > { %11659 = vmatpush3.bf16.msra.mxu0 %v13170_v34  ;;  %12337 = vmatpush3.bf16.msra.mxu1 %v13169_v7  ;;  %v13200_v7 = vld [vmem:[%s16391_s11 + $0x228] sm:$0xff]  }
 0x1cc   : > { %11660 = vmatprep.subr.bf16.mxu0 %v13171_v8  ;;  %12338 = vmatprep.subr.bf16.mxu1 %v13172_v9  ;;  %v13201_v34 = vld [vmem:[%s16391_s11 + $0x1a8] sm:$0xff]   ;;  %v13202_v8 = vld [vmem:[%s16391_s11 + $0x1f0] sm:$0xff]  }
 0x1cd   : > { %v11400_v26 = vpop.f32.mrb[48].mxu0 }
 0x1ce   : > { %v11401_v30 = vpop.f32.mrb[49].mxu0 }
 0x1cf   : > { %v15146_v23 = vadd.f32 %v11401_v30, %v11400_v26  ;;  %v11403_v11 = vpop.f32.mrb[50].mxu0  ;;  %11661 = vmatpush3.bf16.msra.mxu0 %v13173_v13  ;;  %12339 = vmatpush3.bf16.msra.mxu1 %v13172_v9  ;;  %v13203_v9 = vld [vmem:[%s16391_s11 + $0x230] sm:$0xff]   ;;  %v6210_v13 = vld [vmem:[%s14748_s17] sm:$0xf] }
 0x1d0   : > { %v11404_v35 = vpop.f32.mrb[51].mxu0  ;;  %11662 = vmatprep.subr.bf16.mxu0 %v13174_v16  ;;  %12340 = vmatprep.subr.bf16.mxu1 %v13175_v17  ;;  %v6211_v16 = vld [vmem:[%s14748_s17 + $0x4] sm:$0xf]  ;;  %v6215_v26 = vld [vmem:[%s14748_s17] sm:$0xe] }
 0x1d1   : > { %v15154_v40 = vadd.f32 %v11404_v35, %v11403_v11  ;;  %v12584_v27 = vadd.f32 %v14902_v6, %v15146_v23  ;;  %v13206_v35 = vld [vmem:[%s16391_s11 + $0x238] sm:$0xff]   ;;  %v5895_v6 = vshll.u32 %v13211_v10, 16  ;;  %v15263_v23 = vcombine.low %v6210_v13, %v6211_v16  ;;  %v13227_v13 = vld [vmem:[%s16391_s11 + $0x68] sm:$0xff]  }
 0x1d3   : > { %11663 = vmatpush3.bf16.msra.mxu0 %v13176_v21  ;;  %12341 = vmatpush3.bf16.msra.mxu1 %v13175_v17  ;;  %v13204_v21 = vld [vmem:[%s16391_s11 + $0x1b0] sm:$0xff]   ;;  %v5897_v47 = vrot.slane %v5895_v6, 1  ;;  %v6557_v6 = vld [vmem:[%s15058_s1] sm:$0xf] }
 0x1d4   : > { %11664 = vmatprep.subr.bf16.mxu0 %v13177_v37  ;;  %12342 = vmatprep.subr.bf16.mxu1 %v13178_v38  ;;  %v13205_v37 = vld [vmem:[%s16391_s11 + $0x1f8] sm:$0xff]  }
 0x1d5   : > { %v11406_v1 = vpop.f32.mrb[52].mxu0 }
 0x1d6   : > { %v11407_v39 = vpop.f32.mrb[53].mxu0 }
 0x1d7   : > { %11665 = vmatpush3.bf16.msra.mxu0 %v13179_v18  ;;  %12343 = vmatpush3.bf16.msra.mxu1 %v13178_v38  ;;  %v15183_v51 = vadd.f32 %v11407_v39, %v11406_v1  ;;  %v11409_v52 = vpop.f32.mrb[54].mxu0  ;;  %v15270_v38 = vld [vmem:[%s16392_s12] ss:$0 sm:$0xff]  ;;  %v5907_v1 = vrot.slane %v13211_v10, 1  ;;  %v6234_v39 = vshll.u32 %v15263_v23, 16  ;;  %v13231_v10 = vld [vmem:[%s16391_s11 + $0xb0] sm:$0xff]  }
 0x1d8   : > { %11688 = vmatprep.subr.bf16.mxu0 %v13183_v45  ;;  %12348 = vmatprep.subr.bf16.mxu1 %v13184_v32  ;;  %v11410_v25 = vpop.f32.mrb[55].mxu0  ;;  %v12592_v42 = vadd.f32 %v15270_v38, %v15154_v40  ;;  %v13212_v45 = vld [vmem:[%s16391_s11 + $0x40] sm:$0xff]  }
 0x1d9   : > { %v15191_v53 = vadd.f32 %v11410_v25, %v11409_v52  ;;  %v13213_v40 = vld [vmem:[%s16391_s11 + $0x80] sm:$0xff]   ;;  %v5893_v52 = vor.u32 %v5891_v33, %v15209_v60  ;;  %v12580_v25 = vadd.f32 %v15270_v38, %v15183_v51  ;;  %v6232_v51 = vshrl.u32 %v15263_v23, 16 }
 0x1da   : > { %5789 = vmatmul.mubr.bf16.vlgmr.msra.gmra.mrb[104].mxu0 %v15043_v41  ;;  %12345 = vmatmul.mubr.bf16.vlgmr.msra.gmra.mrb[16].mxu1 %v5561_v58  ;;  %v13191_v41 = vld [vmem:[%s16391_s11 + $0x210] sm:$0xff]   ;;  %v13214_v58 = vld [vmem:[%s16391_s11] sm:$0xff]   ;;  %v6236_v60 = vrot.slane %v6234_v39, 1 }
 0x1db   : > { %11689 = vmatpush3.bf16.msra.mxu0 %v13186_v49  ;;  %12349 = vmatpush3.bf16.msra.mxu1 %v13184_v32  ;;  %v10605_v32 = vcombine.low %v6215_v26, %v6211_v16  ;;  %v6257_v49 = vrot.slane %v15289_v0, 1  ;;  %v5898_v59 = vsel %vm998_vm1, %v5893_v52, %v5897_v47  ;;  %v13228_v16 = vld [vmem:[%s16391_s11 + $0xa8] sm:$0xff]   ;;  %v6562_v33 = vld [vmem:[%s15058_s1] sm:$0xe] }
 0x1dc   : > { %11690 = vmatprep.subr.bf16.mxu0 %v13187_v50  ;;  %12350 = vmatprep.subr.bf16.mxu1 %v13188_v28 }
 0x1dd   : > { %5796 = vmatprep.mubr.bf16.mxu0 %v5551_v14  ;;  %12364 = vmatprep.mubr.bf16.mxu1 %v5906_v31  ;;  %v5908_v14 = vsel %vm1024_vm0, %v5905_v4, %v5907_v1  ;;  %v13216_v31 = vld [vmem:[%s16391_s11 + $0x88] sm:$0xff]  }
 0x1df   : > { %11691 = vmatpush3.bf16.msra.mxu0 %v13189_v15  ;;  %12351 = vmatpush3.bf16.msra.mxu1 %v13188_v28  ;;  %v6256_v28 = vrot.slane %v10605_v32, 1 }
 0x1e0   : > { %11692 = vmatprep.subr.bf16.mxu0 %v13190_v56  ;;  %12352 = vmatprep.subr.bf16.mxu1 %v13191_v41  ;;  %v12588_v56 = vadd.f32 %v15270_v38, %v15191_v53 }
 0x1e1   : > { %v6258_v53 = vsel %vm1024_vm0, %v6256_v28, %v6257_v49 }
 0x1e2   : > { %5797 = vmatmul.mubr.bf16.gmra.mrb[108].mxu0 %v15050_v44  ;;  %v13197_v44 = vld [vmem:[%s16391_s11 + $0x220] sm:$0xff]  }
 0x1e3   : > { %11693 = vmatpush3.bf16.msra.mxu0 %v13192_v19  ;;  %12353 = vmatpush3.bf16.msra.mxu1 %v13191_v41  ;;  %v13217_v19 = vld [vmem:[%s16391_s11 + $0x8] sm:$0xff]  }
 0x1e4   : > { %11694 = vmatprep.subr.bf16.mxu0 %v13193_v61  ;;  %12354 = vmatprep.subr.bf16.mxu1 %v13194_v62  ;;  %v6239_v61 = vshll.u32 %v15289_v0, 16 }
 0x1e5   : > { %6135 = vmatprep.mubr.bf16.mxu0 %v5890_v57  ;;  %v13220_v57 = vld [vmem:[%s16391_s11 + $0x10] sm:$0xff]  }
 0x1e7   : > { %11695 = vmatpush3.bf16.msra.mxu0 %v13195_v48  ;;  %12355 = vmatpush3.bf16.msra.mxu1 %v13194_v62  ;;  %v13218_v48 = vld [vmem:[%s16391_s11 + $0x50] sm:$0xff]  }
 0x1e8   : > { %11696 = vmatprep.subr.bf16.mxu0 %v13196_v63  ;;  %12356 = vmatprep.subr.bf16.mxu1 %v13197_v44  ;;  %v6237_v63 = vor.u32 %v6236_v60, %v6232_v51 }
 0x1eb   : > { %11697 = vmatpush3.bf16.msra.mxu0 %v13198_v2  ;;  %12357 = vmatpush3.bf16.msra.mxu1 %v13197_v44  ;;  %v15337_v44 = vrot.slane %v6239_v61, 1  ;;  %v13221_v2 = vld [vmem:[%s16391_s11 + $0x58] sm:$0xff]  }
 0x1ec   : > { %11698 = vmatprep.subr.bf16.mxu0 %v13199_v5  ;;  %12358 = vmatprep.subr.bf16.mxu1 %v13200_v7  ;;  %v13222_v5 = vld [vmem:[%s16391_s11 + $0x98] sm:$0xff]  }
 0x1ed   : > { %v11438_v17 = vpop.f32.mrb[56].mxu0 }
 0x1ee   : > { %v11439_v22 = vpop.f32.mrb[57].mxu0 }
 0x1ef   : > { %v11440_v29 = vadd.f32 %v11439_v22, %v11438_v17  ;;  %v11441_v30 = vpop.f32.mrb[58].mxu0  ;;  %11699 = vmatpush3.bf16.msra.mxu0 %v13201_v34  ;;  %12359 = vmatpush3.bf16.msra.mxu1 %v13200_v7  ;;  %v13223_v7 = vld [vmem:[%s16391_s11 + $0x18] sm:$0xff]   ;;  %v6242_v34 = vsel %vm998_vm1, %v6237_v63, %v15337_v44  ;;  %v13229_v17 = vld [vmem:[%s16391_s11 + $0x28] sm:$0xff]   ;;  %v13230_v22 = vld [vmem:[%s16391_s11 + $0x70] sm:$0xff]  }
 0x1f0   : > { %v11442_v11 = vpop.f32.mrb[59].mxu0  ;;  %11700 = vmatprep.subr.bf16.mxu0 %v13202_v8  ;;  %12360 = vmatprep.subr.bf16.mxu1 %v13203_v9  ;;  %v13224_v8 = vld [vmem:[%s16391_s11 + $0x60] sm:$0xff]  }
 0x1f1   : > { %v15274_v18 = vadd.f32 %v12584_v27, %v11440_v29  ;;  %v11443_v24 = vadd.f32 %v11442_v11, %v11441_v30  ;;  %v13232_v29 = vld [vmem:[%s16391_s11 + $0x30] sm:$0xff]  }
 0x1f2   : > { %v13241_v30 = vld [vmem:[%s14748_s17 + $0x10] ss:$0 sps:$4 sm:$0x11]   ;;  %s929_s17 = sadd.s32 8, %s13631_s21 }
 0x1f3   : > { %v15283_v3 = vadd.f32 %v12592_v42, %v11443_v24  ;;  %11701 = vmatpush3.bf16.msra.mxu0 %v13204_v21  ;;  %12361 = vmatpush3.bf16.msra.mxu1 %v13203_v9  ;;  %v13225_v9 = vld [vmem:[%s16391_s11 + $0xa0] sm:$0xff]   ;;  %v6247_v47 = vshll.u32 %v13241_v30, 16  ;;  %s15586_s28 = sld [smem:[#allocation3 + %s929_s17]] }
 0x1f4   : > { %11702 = vmatprep.subr.bf16.mxu0 %v13205_v37  ;;  %12362 = vmatprep.subr.bf16.mxu1 %v13206_v35  ;;  %v13233_v37 = vld [vmem:[%s16391_s11 + $0x78] sm:$0xff]  }
 0x1f5   : > { %v11444_v43 = vpop.f32.mrb[60].mxu0 }
 0x1f6   : > { %v11445_v50 = vpop.f32.mrb[61].mxu0 }
 0x1f7   : > { %v11446_v15 = vadd.f32 %v11445_v50, %v11444_v43  ;;  %v11447_v54 = vpop.f32.mrb[62].mxu0  ;;  %11703 = vmatpush3.bf16.msra.mxu0 %v13207_v12  ;;  %12363 = vmatpush3.bf16.msra.mxu1 %v13206_v35  ;;  %v13234_v35 = vld [vmem:[%s16391_s11 + $0xb8] sm:$0xff]   ;;  %v13239_v50 = vld [vmem:[%s16391_s11 + $0x100] sm:$0xff]  }
 0x1f8   : > { %v11448_v55 = vpop.f32.mrb[63].mxu0  ;;  %11726 = vmatprep.subr.bf16.mxu0 %v13212_v45  ;;  %12368 = vmatprep.subr.bf16.mxu1 %v13213_v40  ;;  %v6558_v45 = vld [vmem:[%s15058_s1 + $0x4] sm:$0xf] }
 0x1f9   : > { %v15312_v41 = vadd.f32 %v12580_v25, %v11446_v15  ;;  %v11449_v4 = vadd.f32 %v11448_v55, %v11447_v54  ;;  %v15406_v52 = vcombine.low %v6557_v6, %v6558_v45  ;;  %v10633_v28 = vcombine.low %v6562_v33, %v6558_v45  ;;  %v13259_v6 = vld [vmem:[%s16391_s11 + $0x170] sm:$0xff]   ;;  %p933_p6 = scmp.lt.s32.totalorder %s15586_s28, 15 }
 0x1fa   : > { %6136 = vmatmul.mubr.bf16.vlgmr.msra.gmra.mrb[112].mxu0 %v15156_v20  ;;  %12365 = vmatmul.mubr.bf16.vlgmr.msra.gmra.mrb[16].mxu1 %v5908_v14  ;;  %v13219_v20 = vld [vmem:[%s16391_s11 + $0x90] sm:$0xff]   ;;  %v6259_v54 = vrot.slane %v13241_v30, 1  ;;  %v15413_v14 = vld [vmem:[%s15058_s1 + $0x8] sm:$0xff]   ;;  %v13253_v30 = vld [vmem:[%s16391_s11 + $0x160] sm:$0xff]  }
 0x1fb   : > { %v15323_v62 = vadd.f32 %v12588_v56, %v11449_v4  ;;  %11727 = vmatpush3.bf16.msra.mxu0 %v13214_v58  ;;  %12369 = vmatpush3.bf16.msra.mxu1 %v13213_v40  ;;  %v6243_v40 = vshrl.u32 %v15289_v0, 16  ;;  %v13235_v58 = vld [vmem:[%s16391_s11 + $0x38] sm:$0xff]   ;;  %v13243_v56 = vld [vmem:[%s16391_s11 + $0x108] sm:$0xff]   ;;  %v6604_v60 = vrot.slane %v15413_v14, 1  ;;  %v6586_v63 = vshll.u32 %v15413_v14, 16  ;;  %v13260_v33 = vld [vmem:[%s16391_s11 + $0xf0] sm:$0xff]  }
 0x1fc   : > { %11728 = vmatprep.subr.bf16.mxu0 %v13215_v36  ;;  %12370 = vmatprep.subr.bf16.mxu1 %v13216_v31  ;;  %s16431_s28 = smov (!%p933_p6, %s15586_s28), 15 }
 0x1fd   : > { %6143 = vmatprep.mubr.bf16.mxu0 %v5898_v59  ;;  %12384 = vmatprep.mubr.bf16.mxu1 %v6258_v53  ;;  %v6245_v4 = vor.u32 %v6243_v40, %v15337_v44  ;;  %v6603_v59 = vrot.slane %v10633_v28, 1  ;;  %v13261_v40 = vld [vmem:[%s16391_s11 + $0x138] sm:$0xff]   ;;  %s12749_s29 = smul.u32 5, %s16431_s28 }
 0x1ff   : > { %11729 = vmatpush3.bf16.msra.mxu0 %v13217_v19  ;;  %12371 = vmatpush3.bf16.msra.mxu1 %v13216_v31  ;;  %v13242_v31 = vld [vmem:[%s16391_s11 + $0xc0] sm:$0xff]   ;;  %v6581_v19 = vshll.u32 %v15406_v52, 16  ;;  %s937_s24 = sadd.s32 %s12749_s29, %s13669_s22 }
 0x200   : > { %11730 = vmatprep.subr.bf16.mxu0 %v13218_v48  ;;  %12372 = vmatprep.subr.bf16.mxu1 %v13219_v20  ;;  %v6260_v48 = vsel %vm1024_vm0, %v6257_v49, %v6259_v54  ;;  %v13268_v54 = vld [vmem:[%s16391_s11 + $0x200] sm:$0xff]   ;;  %s9678_s17 = sshll.u32 %s937_s24, 2 }
 0x201   : > { %s15705_s20 = scalar_lea.vmem %s16389_s9, %s9678_s17  ;;  %s12750_s17 = smul.u32 5, %s16433_s27 }
 0x202   : > { %6144 = vmatmul.mubr.bf16.gmra.mrb[116].mxu0 %v15166_v46  ;;  %v13226_v46 = vld [vmem:[%s16391_s11 + $0x20] sm:$0xff]  }
 0x203   : > { %11731 = vmatpush3.bf16.msra.mxu0 %v13220_v57  ;;  %12373 = vmatpush3.bf16.msra.mxu1 %v13219_v20  ;;  %v13244_v20 = vld [vmem:[%s16391_s11 + $0x148] sm:$0xff]   ;;  %s952_s27 = sadd.s32 %s12750_s17, %s13669_s22 }
 0x204   : > { %11732 = vmatprep.subr.bf16.mxu0 %v13221_v2  ;;  %12374 = vmatprep.subr.bf16.mxu1 %v13222_v5  ;;  %s9680_s22 = sshll.u32 %s952_s27, 2 }
 0x205   : > { %6487 = vmatprep.mubr.bf16.mxu0 %v6242_v34  ;;  %v6583_v34 = vrot.slane %v6581_v19, 1  ;;  %s16008_s27 = scalar_lea.vmem %s16390_s10, %s9680_s22 }
 0x207   : > { %11733 = vmatpush3.bf16.msra.mxu0 %v13223_v7  ;;  %12375 = vmatpush3.bf16.msra.mxu1 %v13222_v5  ;;  %v13245_v5 = vld [vmem:[%s16391_s11 + $0xc8] sm:$0xff]   ;;  %v6579_v7 = vshrl.u32 %v15406_v52, 16 }
 0x208   : > { %11734 = vmatprep.subr.bf16.mxu0 %v13224_v8  ;;  %12376 = vmatprep.subr.bf16.mxu1 %v13225_v9  ;;  %v6605_v8 = vsel %vm1024_vm0, %v6603_v59, %v6604_v60 }
 0x20b   : > { %11735 = vmatpush3.bf16.msra.mxu0 %v13226_v46  ;;  %12377 = vmatpush3.bf16.msra.mxu1 %v13225_v9  ;;  %v13247_v46 = vld [vmem:[%s16391_s11 + $0x150] sm:$0xff]  }
 0x20c   : > { %11736 = vmatprep.subr.bf16.mxu0 %v13227_v13  ;;  %12378 = vmatprep.subr.bf16.mxu1 %v13228_v16 }
 0x20d   : > { %v11476_v26 = vpop.f32.mrb[64].mxu0  ;;  %v15381_v27 = vpop.f32.mrb[8].mxu1 }
 0x20e   : > { %v11477_v21 = vpop.f32.mrb[65].mxu0  ;;  %v4094_v11 = vpop.f32.mrb[9].mxu1 }
 0x20f   : > { %v11478_v42 = vadd.f32 %v11477_v21, %v11476_v26  ;;  %v11479_v24 = vpop.f32.mrb[66].mxu0  ;;  %v15394_v12 = vpop.f32.mrb[10].mxu1  ;;  %11737 = vmatpush3.bf16.msra.mxu0 %v13229_v17  ;;  %12379 = vmatpush3.bf16.msra.mxu1 %v13228_v16  ;;  %v6584_v16 = vor.u32 %v6583_v34, %v6579_v7  ;;  %v15456_v17 = vrot.slane %v6586_v63, 1  ;;  %v13251_v26 = vld [vmem:[%s16391_s11 + $0xd8] sm:$0xff]   ;;  %v13255_v21 = vld [vmem:[%s16391_s11 + $0x128] sm:$0xff]  }
 0x210   : > { %v11480_v32 = vpop.f32.mrb[67].mxu0  ;;  %v4097_v1 = vpop.f32.mrb[11].mxu1  ;;  %11738 = vmatprep.subr.bf16.mxu0 %v13230_v22  ;;  %12380 = vmatprep.subr.bf16.mxu1 %v13231_v10  ;;  %v13249_v22 = vld [vmem:[%s16391_s11 + $0x118] sm:$0xff]  }
 0x211   : > { %v12586_v39 = vadd.f32 %v15274_v18, %v11478_v42  ;;  %v11481_v43 = vadd.f32 %v11480_v32, %v11479_v24  ;;  %v13240_v18 = vld [vmem:[%s16391_s11 + $0x140] sm:$0xff]   ;;  %v13269_v42 = vld [vmem:[%s15058_s1 + $0x10] ss:$0 sps:$4 sm:$0x11]  }
 0x212   : > { %v6904_v24 = vld [vmem:[%s15373_s30] sm:$0xf] }
 0x213   : > { %v12587_v25 = vadd.f32 %v12586_v39, %v4094_v11  ;;  %v12594_v15 = vadd.f32 %v15283_v3, %v11481_v43  ;;  %11739 = vmatpush3.bf16.msra.mxu0 %v13232_v29  ;;  %12381 = vmatpush3.bf16.msra.mxu1 %v13231_v10  ;;  %v6249_v3 = vrot.slane %v6247_v47, 1  ;;  %v13250_v10 = vld [vmem:[%s16391_s11 + $0x158] sm:$0xff]   ;;  %v13252_v29 = vld [vmem:[%s16391_s11 + $0x120] sm:$0xff]   ;;  %v13256_v11 = vld [vmem:[%s16391_s11 + $0x168] sm:$0xff]  }
 0x214   : > { %11740 = vmatprep.subr.bf16.mxu0 %v13233_v37  ;;  %12382 = vmatprep.subr.bf16.mxu1 %v13234_v35  ;;  %v13257_v37 = vld [vmem:[%s16391_s11 + $0xe8] sm:$0xff]   ;;  %v6909_v32 = vld [vmem:[%s15373_s30] sm:$0xe]  ;;  %v13262_v43 = vld [vmem:[%s16391_s11 + $0x178] sm:$0xff]  }
 0x215   : > { %10230 = vst [vmem:[%s14679_s19 + $0x40] sm:$0xff] %v12587_v25  ;;  %v12595_v36 = vadd.f32 %v12594_v15, %v4097_v1  ;;  %v11482_v55 = vpop.f32.mrb[68].mxu0  ;;  %v6250_v49 = vsel %vm998_vm1, %v6245_v4, %v6249_v3  ;;  %v13263_v15 = vld [vmem:[%s16391_s11 + $0xf8] sm:$0xff]   ;;  %v15525_v3 = vld [vmem:[%s15373_s30 + $0x8] sm:$0xff]   ;;  %v13270_v4 = vld [vmem:[%s16391_s11 + $0x180] sm:$0xff]  }
 0x216   : > { %v11483_v51 = vpop.f32.mrb[69].mxu0  ;;  %v6951_v59 = vrot.slane %v15525_v3, 1 }
 0x217   : > { %10231 = vst [vmem:[%s14679_s19 + $0x48] sm:$0xff] %v12595_v36  ;;  %v11484_v61 = vadd.f32 %v11483_v51, %v11482_v55  ;;  %v11485_v53 = vpop.f32.mrb[70].mxu0  ;;  %11741 = vmatpush3.bf16.msra.mxu0 %v13235_v58  ;;  %12383 = vmatpush3.bf16.msra.mxu1 %v13234_v35  ;;  %v13258_v35 = vld [vmem:[%s16391_s11 + $0x130] sm:$0xff]   ;;  %v6590_v36 = vshrl.u32 %v15413_v14, 16 }
 0x218   : > { %v11486_v57 = vpop.f32.mrb[71].mxu0  ;;  %11764 = vmatprep.subr.bf16.mxu0 %v13239_v50  ;;  %12388 = vmatprep.subr.bf16.mxu1 %v13240_v18  ;;  %v6594_v50 = vshll.u32 %v13269_v42, 16 }
 0x219   : > { %v12582_v44 = vadd.f32 %v15312_v41, %v11484_v61  ;;  %v11487_v2 = vadd.f32 %v11486_v57, %v11485_v53  ;;  %v6592_v61 = vor.u32 %v6590_v36, %v15456_v17  ;;  %v13271_v57 = vld [vmem:[%s16391_s11 + $0x1c8] sm:$0xff]   ;;  %v13296_v36 = vld [vmem:[%s16391_s11 + $0x40] sm:$0xff]  }
 0x21a   : > { %6488 = vmatmul.mubr.bf16.vlgmr.msra.gmra.mrb[120].mxu0 %v15263_v23  ;;  %12385 = vmatmul.mubr.bf16.vlgmr.msra.gmra.mrb[20].mxu1 %v6260_v48  ;;  %v13246_v23 = vld [vmem:[%s16391_s11 + $0x110] sm:$0xff]   ;;  %v6596_v51 = vrot.slane %v6594_v50, 1 }
 0x21b   : > { %v12583_v41 = vadd.f32 %v12582_v44, %v15381_v27  ;;  %v12590_v9 = vadd.f32 %v15323_v62, %v11487_v2  ;;  %11765 = vmatpush3.bf16.msra.mxu0 %v13242_v31  ;;  %12389 = vmatpush3.bf16.msra.mxu1 %v13240_v18  ;;  %v13248_v62 = vld [vmem:[%s16391_s11 + $0xd0] sm:$0xff]   ;;  %v6589_v27 = vsel %vm998_vm1, %v6584_v16, %v15456_v17  ;;  %v13267_v18 = vld [vmem:[%s16391_s11 + $0x1c0] sm:$0xff]   ;;  %v6606_v31 = vrot.slane %v13269_v42, 1  ;;  %v13272_v2 = vld [vmem:[%s16391_s11 + $0x208] sm:$0xff]  }
 0x21c   : > { %11766 = vmatprep.subr.bf16.mxu0 %v13243_v56  ;;  %12390 = vmatprep.subr.bf16.mxu1 %v13244_v20  ;;  %v6597_v34 = vsel %vm998_vm1, %v6592_v61, %v6596_v51  ;;  %v13277_v16 = vld [vmem:[%s16391_s11 + $0x1d8] sm:$0xff]  }
 0x21d   : > { %10232 = vst [vmem:[%s14679_s19 + $0x50] sm:$0xff] %v12583_v41  ;;  %v12591_v13 = vadd.f32 %v12590_v9, %v15394_v12  ;;  %6495 = vmatprep.mubr.bf16.mxu0 %v6250_v49  ;;  %12404 = vmatprep.mubr.bf16.mxu1 %v6605_v8  ;;  %v6905_v12 = vld [vmem:[%s15373_s30 + $0x4] sm:$0xf]  ;;  %v13273_v49 = vld [vmem:[%s16391_s11 + $0x188] sm:$0xff]   ;;  %v6933_v41 = vshll.u32 %v15525_v3, 16  ;;  %v13278_v17 = vld [vmem:[%s16391_s11 + $0x218] sm:$0xff]  }
 0x21e   : > { %v15510_v28 = vcombine.low %v6904_v24, %v6905_v12  ;;  %v10709_v55 = vcombine.low %v6909_v32, %v6905_v12  ;;  %v13288_v24 = vld [vmem:[%s16391_s11 + $0x1b0] sm:$0xff]   ;;  %v7261_v12 = vld [vmem:[%s15058_s1] sm:$0xe] }
 0x21f   : > { %10233 = vst [vmem:[%s14679_s19 + $0x58] sm:$0xff] %v12591_v13  ;;  %11767 = vmatpush3.bf16.msra.mxu0 %v13245_v5  ;;  %12391 = vmatpush3.bf16.msra.mxu1 %v13244_v20  ;;  %v6607_v20 = vsel %vm1024_vm0, %v6604_v60, %v6606_v31 }
 0x220   : > { %11768 = vmatprep.subr.bf16.mxu0 %v13246_v23  ;;  %12392 = vmatprep.subr.bf16.mxu1 %v13247_v46  ;;  %v6928_v56 = vshll.u32 %v15510_v28, 16  ;;  %v6950_v48 = vrot.slane %v10709_v55, 1  ;;  %v6926_v60 = vshrl.u32 %v15510_v28, 16  ;;  %v13274_v23 = vld [vmem:[%s16391_s11 + $0x1d0] sm:$0xff]   ;;  %v13297_v55 = vld [vmem:[%s16391_s11 + $0x80] sm:$0xff]  }
 0x222   : > { %6496 = vmatmul.mubr.bf16.gmra.mrb[124].mxu0 %v15289_v0  ;;  %v13254_v0 = vld [vmem:[%s16391_s11 + $0xe0] sm:$0xff]   ;;  %v6930_v8 = vrot.slane %v6928_v56, 1  ;;  %v6952_v9 = vsel %vm1024_vm0, %v6950_v48, %v6951_v59 }
 0x223   : > { %11769 = vmatpush3.bf16.msra.mxu0 %v13248_v62  ;;  %12393 = vmatpush3.bf16.msra.mxu1 %v13247_v46  ;;  %v13276_v46 = vld [vmem:[%s16391_s11 + $0x190] sm:$0xff]   ;;  %v15565_v62 = vrot.slane %v6933_v41, 1  ;;  %v13298_v48 = vld [vmem:[%s16391_s11] sm:$0xff]  }
 0x224   : > { %11770 = vmatprep.subr.bf16.mxu0 %v13249_v22  ;;  %12394 = vmatprep.subr.bf16.mxu1 %v13250_v10  ;;  %v6931_v13 = vor.u32 %v6930_v8, %v6926_v60  ;;  %v13299_v8 = vld [vmem:[%s16391_s11 + $0x48] sm:$0xff]  }
 0x225   : > { %6834 = vmatprep.mubr.bf16.mxu0 %v6589_v27  ;;  %v13282_v27 = vld [vmem:[%s16391_s11 + $0x1a0] sm:$0xff]  }
 0x226   : > { %v6936_v22 = vsel %vm998_vm1, %v6931_v13, %v15565_v62 }
 0x227   : > { %11771 = vmatpush3.bf16.msra.mxu0 %v13251_v26  ;;  %12395 = vmatpush3.bf16.msra.mxu1 %v13250_v10  ;;  %v13279_v10 = vld [vmem:[%s16391_s11 + $0x198] sm:$0xff]   ;;  %v13280_v26 = vld [vmem:[%s16391_s11 + $0x1e0] sm:$0xff]  }
 0x228   : > { %11772 = vmatprep.subr.bf16.mxu0 %v13252_v29  ;;  %12396 = vmatprep.subr.bf16.mxu1 %v13253_v30  ;;  %v13283_v29 = vld [vmem:[%s16391_s11 + $0x1e8] sm:$0xff]  }
 0x22b   : > { %11773 = vmatpush3.bf16.msra.mxu0 %v13254_v0  ;;  %12397 = vmatpush3.bf16.msra.mxu1 %v13253_v30  ;;  %v13284_v30 = vld [vmem:[%s16391_s11 + $0x228] sm:$0xff]  }
 0x22c   : > { %11774 = vmatprep.subr.bf16.mxu0 %v13255_v21  ;;  %12398 = vmatprep.subr.bf16.mxu1 %v13256_v11  ;;  %v13285_v0 = vld [vmem:[%s16391_s11 + $0x1a8] sm:$0xff]   ;;  %v13286_v21 = vld [vmem:[%s16391_s11 + $0x1f0] sm:$0xff]  }
 0x22d   : > { %v11514_v45 = vpop.f32.mrb[72].mxu0 }
 0x22e   : > { %v11515_v1 = vpop.f32.mrb[73].mxu0 }
 0x22f   : > { %v15505_v47 = vadd.f32 %v11515_v1, %v11514_v45  ;;  %v11517_v39 = vpop.f32.mrb[74].mxu0  ;;  %11775 = vmatpush3.bf16.msra.mxu0 %v13257_v37  ;;  %12399 = vmatpush3.bf16.msra.mxu1 %v13256_v11  ;;  %v13287_v11 = vld [vmem:[%s16391_s11 + $0x230] sm:$0xff]  }
 0x230   : > { %v11518_v58 = vpop.f32.mrb[75].mxu0  ;;  %11776 = vmatprep.subr.bf16.mxu0 %v13258_v35  ;;  %12400 = vmatprep.subr.bf16.mxu1 %v13259_v6  ;;  %v13295_v37 = vld [vmem:[%s15373_s30 + $0x10] ss:$0 sps:$4 sm:$0x11]   ;;  %v7256_v35 = vld [vmem:[%s15058_s1] sm:$0xf] }
 0x231   : > { %v15512_v25 = vadd.f32 %v11518_v58, %v11517_v39  ;;  %v12600_v32 = vadd.f32 %v15270_v38, %v15505_v47  ;;  %v6941_v39 = vshll.u32 %v13295_v37, 16  ;;  %v13290_v58 = vld [vmem:[%s16391_s11 + $0x238] sm:$0xff]   ;;  %v6953_v56 = vrot.slane %v13295_v37, 1  ;;  %v13311_v37 = vld [vmem:[%s16391_s11 + $0x68] sm:$0xff]  }
 0x233   : > { %11777 = vmatpush3.bf16.msra.mxu0 %v13260_v33  ;;  %12401 = vmatpush3.bf16.msra.mxu1 %v13259_v6  ;;  %v7257_v6 = vld [vmem:[%s15058_s1 + $0x4] sm:$0xf]  ;;  %v13289_v33 = vld [vmem:[%s16391_s11 + $0x1f8] sm:$0xff]  }
 0x234   : > { %11778 = vmatprep.subr.bf16.mxu0 %v13261_v40  ;;  %12402 = vmatprep.subr.bf16.mxu1 %v13262_v43  ;;  %v15622_v50 = vcombine.low %v7256_v35, %v7257_v6  ;;  %v10789_v31 = vcombine.low %v7261_v12, %v7257_v6  ;;  %v15729_v35 = vld [vmem:[%s15058_s1 + $0x10] ss:$0 sps:$4 sm:$0x11]   ;;  %v13312_v6 = vld [vmem:[%s16391_s11 + $0xa8] sm:$0xff]  }
 0x235   : > { %v11520_v19 = vpop.f32.mrb[76].mxu0  ;;  %v13315_v12 = vld [vmem:[%s16391_s11 + $0xb0] sm:$0xff]  }
 0x236   : > { %v11521_v53 = vpop.f32.mrb[77].mxu0 }
 0x237   : > { %11779 = vmatpush3.bf16.msra.mxu0 %v13263_v15  ;;  %12403 = vmatpush3.bf16.msra.mxu1 %v13262_v43  ;;  %v15539_v63 = vadd.f32 %v11521_v53, %v11520_v19  ;;  %v11523_v44 = vpop.f32.mrb[78].mxu0  ;;  %v12608_v15 = vadd.f32 %v15270_v38, %v15512_v25  ;;  %v6937_v38 = vshrl.u32 %v15525_v3, 16  ;;  %v15644_v25 = vld [vmem:[%s15058_s1 + $0x8] sm:$0xff]   ;;  %v7280_v19 = vshll.u32 %v15622_v50, 16 }
 0x238   : > { %11802 = vmatprep.subr.bf16.mxu0 %v13267_v18  ;;  %12408 = vmatprep.subr.bf16.mxu1 %v13268_v54  ;;  %v11524_v5 = vpop.f32.mrb[79].mxu0  ;;  %v7303_v61 = vrot.slane %v15644_v25, 1 }
 0x239   : > { %v15547_v7 = vadd.f32 %v11524_v5, %v11523_v44  ;;  %v7302_v44 = vrot.slane %v10789_v31, 1 }
 0x23a   : > { %6835 = vmatmul.mubr.bf16.vlgmr.msra.gmra.mrb[128].mxu0 %v15406_v52  ;;  %12405 = vmatmul.mubr.bf16.vlgmr.msra.gmra.mrb[20].mxu1 %v6607_v20  ;;  %v13275_v52 = vld [vmem:[%s16391_s11 + $0x210] sm:$0xff]  }
 0x23b   : > { %11803 = vmatpush3.bf16.msra.mxu0 %v13270_v4  ;;  %12409 = vmatpush3.bf16.msra.mxu1 %v13268_v54  ;;  %v13291_v54 = vld [vmem:[%s16391_s11 + $0x1b8] sm:$0xff]   ;;  %v6943_v4 = vrot.slane %v6941_v39, 1  ;;  %v7604_v39 = vld [vmem:[%s15373_s30 + $0x4] sm:$0xf] }
 0x23c   : > { %11804 = vmatprep.subr.bf16.mxu0 %v13271_v57  ;;  %12410 = vmatprep.subr.bf16.mxu1 %v13272_v2  ;;  %v6939_v57 = vor.u32 %v6937_v38, %v15565_v62  ;;  %v7282_v62 = vrot.slane %v7280_v19, 1  ;;  %v7608_v38 = vld [vmem:[%s15373_s30] sm:$0xe] }
 0x23d   : > { %6842 = vmatprep.mubr.bf16.mxu0 %v6597_v34  ;;  %12424 = vmatprep.mubr.bf16.mxu1 %v6952_v9  ;;  %v6954_v34 = vsel %vm1024_vm0, %v6951_v59, %v6953_v56  ;;  %v13301_v59 = vld [vmem:[%s16391_s11 + $0x8] sm:$0xff]  }
 0x23e   : > { %v6944_v13 = vsel %vm998_vm1, %v6939_v57, %v6943_v4  ;;  %v13324_v57 = vld [vmem:[%s16391_s11 + $0x140] sm:$0xff]  }
 0x23f   : > { %11805 = vmatpush3.bf16.msra.mxu0 %v13273_v49  ;;  %12411 = vmatpush3.bf16.msra.mxu1 %v13272_v2  ;;  %v15658_v2 = vld [vmem:[%s16392_s12] ss:$0 sm:$0xff] }
 0x240   : > { %11806 = vmatprep.subr.bf16.mxu0 %v13274_v23  ;;  %12412 = vmatprep.subr.bf16.mxu1 %v13275_v52  ;;  %v12596_v5 = vadd.f32 %v15658_v2, %v15539_v63  ;;  %v13300_v63 = vld [vmem:[%s16391_s11 + $0x88] sm:$0xff]   ;;  %v12604_v9 = vadd.f32 %v15658_v2, %v15547_v7  ;;  %v7304_v7 = vsel %vm1024_vm0, %v7302_v44, %v7303_v61  ;;  %v7289_v44 = vshrl.u32 %v15644_v25, 16 }
 0x242   : > { %6843 = vmatmul.mubr.bf16.gmra.mrb[132].mxu0 %v15413_v14  ;;  %v13281_v14 = vld [vmem:[%s16391_s11 + $0x220] sm:$0xff]  }
 0x243   : > { %11807 = vmatpush3.bf16.msra.mxu0 %v13276_v46  ;;  %12413 = vmatpush3.bf16.msra.mxu1 %v13275_v52  ;;  %v7278_v46 = vshrl.u32 %v15622_v50, 16 }
 0x244   : > { %11808 = vmatprep.subr.bf16.mxu0 %v13277_v16  ;;  %12414 = vmatprep.subr.bf16.mxu1 %v13278_v17  ;;  %v7285_v16 = vshll.u32 %v15644_v25, 16 }
 0x245   : > { %7181 = vmatprep.mubr.bf16.mxu0 %v6936_v22  ;;  %v13302_v22 = vld [vmem:[%s16391_s11 + $0x50] sm:$0xff]  }
 0x247   : > { %11809 = vmatpush3.bf16.msra.mxu0 %v13279_v10  ;;  %12415 = vmatpush3.bf16.msra.mxu1 %v13278_v17  ;;  %v7283_v10 = vor.u32 %v7282_v62, %v7278_v46 }
 0x248   : > { %11810 = vmatprep.subr.bf16.mxu0 %v13280_v26  ;;  %12416 = vmatprep.subr.bf16.mxu1 %v13281_v14  ;;  %v15694_v26 = vrot.slane %v7285_v16, 1 }
 0x24a   : > { %v7291_v46 = vor.u32 %v7289_v44, %v15694_v26 }
 0x24b   : > { %11811 = vmatpush3.bf16.msra.mxu0 %v13282_v27  ;;  %12417 = vmatpush3.bf16.msra.mxu1 %v13281_v14  ;;  %v13304_v14 = vld [vmem:[%s16391_s11 + $0x10] sm:$0xff]   ;;  %v13305_v27 = vld [vmem:[%s16391_s11 + $0x58] sm:$0xff]  }
 0x24c   : > { %11812 = vmatprep.subr.bf16.mxu0 %v13283_v29  ;;  %12418 = vmatprep.subr.bf16.mxu1 %v13284_v30  ;;  %v13306_v29 = vld [vmem:[%s16391_s11 + $0x98] sm:$0xff]  }
 0x24d   : > { %v11552_v42 = vpop.f32.mrb[80].mxu0 }
 0x24e   : > { %v11553_v45 = vpop.f32.mrb[81].mxu0 }
 0x24f   : > { %v11554_v1 = vadd.f32 %v11553_v45, %v11552_v42  ;;  %v11555_v40 = vpop.f32.mrb[82].mxu0  ;;  %11813 = vmatpush3.bf16.msra.mxu0 %v13285_v0  ;;  %12419 = vmatpush3.bf16.msra.mxu1 %v13284_v30  ;;  %v7288_v30 = vsel %vm998_vm1, %v7283_v10, %v15694_v26  ;;  %v13307_v0 = vld [vmem:[%s16391_s11 + $0x18] sm:$0xff]   ;;  %v13313_v42 = vld [vmem:[%s16391_s11 + $0x28] sm:$0xff]   ;;  %v7293_v45 = vshll.u32 %v15729_v35, 16 }
 0x250   : > { %v11556_v43 = vpop.f32.mrb[83].mxu0  ;;  %11814 = vmatprep.subr.bf16.mxu0 %v13286_v21  ;;  %12420 = vmatprep.subr.bf16.mxu1 %v13287_v11  ;;  %v13308_v21 = vld [vmem:[%s16391_s11 + $0x60] sm:$0xff]   ;;  %v13328_v10 = vld [vmem:[%s16391_s11 + $0x148] sm:$0xff]  }
 0x251   : > { %v15626_v18 = vadd.f32 %v12600_v32, %v11554_v1  ;;  %v11557_v47 = vadd.f32 %v11556_v43, %v11555_v40  ;;  %v13316_v40 = vld [vmem:[%s16391_s11 + $0x30] sm:$0xff]  }
 0x253   : > { %v15646_v51 = vadd.f32 %v12608_v15, %v11557_v47  ;;  %11815 = vmatpush3.bf16.msra.mxu0 %v13288_v24  ;;  %12421 = vmatpush3.bf16.msra.mxu1 %v13287_v11  ;;  %v13309_v11 = vld [vmem:[%s16391_s11 + $0xa0] sm:$0xff]   ;;  %v13314_v24 = vld [vmem:[%s16391_s11 + $0x70] sm:$0xff]   ;;  %v13317_v15 = vld [vmem:[%s16391_s11 + $0x78] sm:$0xff]  }
 0x254   : > { %11816 = vmatprep.subr.bf16.mxu0 %v13289_v33  ;;  %12422 = vmatprep.subr.bf16.mxu1 %v13290_v58  ;;  %v7603_v33 = vld [vmem:[%s15373_s30] sm:$0xf]  ;;  %v13318_v47 = vld [vmem:[%s16391_s11 + $0xb8] sm:$0xff]  }
 0x255   : > { %v11558_v53 = vpop.f32.mrb[84].mxu0  ;;  %v15760_v4 = vcombine.low %v7603_v33, %v7604_v39  ;;  %v13336_v33 = vld [vmem:[%s16391_s11 + $0x120] sm:$0xff]  }
 0x256   : > { %v11559_v20 = vpop.f32.mrb[85].mxu0 }
 0x257   : > { %v11560_v49 = vadd.f32 %v11559_v20, %v11558_v53  ;;  %v11561_v60 = vpop.f32.mrb[86].mxu0  ;;  %11817 = vmatpush3.bf16.msra.mxu0 %v13291_v54  ;;  %12423 = vmatpush3.bf16.msra.mxu1 %v13290_v58  ;;  %v13323_v20 = vld [vmem:[%s16391_s11 + $0x100] sm:$0xff]  }
 0x258   : > { %v11562_v41 = vpop.f32.mrb[87].mxu0  ;;  %11840 = vmatprep.subr.bf16.mxu0 %v13296_v36  ;;  %12428 = vmatprep.subr.bf16.mxu1 %v13297_v55 }
 0x259   : > { %v15673_v23 = vadd.f32 %v12596_v5, %v11560_v49  ;;  %v11563_v52 = vadd.f32 %v11562_v41, %v11561_v60  ;;  %v10817_v5 = vcombine.low %v7608_v38, %v7604_v39  ;;  %v7305_v60 = vrot.slane %v15729_v35, 1  ;;  %v13341_v39 = vld [vmem:[%s16391_s11 + $0xe8] sm:$0xff]   ;;  %v13344_v38 = vld [vmem:[%s16391_s11 + $0xf0] sm:$0xff]  }
 0x25a   : > { %7182 = vmatmul.mubr.bf16.vlgmr.msra.gmra.mrb[136].mxu0 %v15510_v28  ;;  %12425 = vmatmul.mubr.bf16.vlgmr.msra.gmra.mrb[20].mxu1 %v6954_v34  ;;  %v13303_v28 = vld [vmem:[%s16391_s11 + $0x90] sm:$0xff]   ;;  %v15776_v34 = vld [vmem:[%s15373_s30 + $0x8] sm:$0xff]   ;;  %v7627_v41 = vshll.u32 %v15760_v4, 16 }
 0x25b   : > { %v15686_v17 = vadd.f32 %v12604_v9, %v11563_v52  ;;  %11841 = vmatpush3.bf16.msra.mxu0 %v13298_v48  ;;  %12429 = vmatpush3.bf16.msra.mxu1 %v13297_v55  ;;  %v13319_v48 = vld [vmem:[%s16391_s11 + $0x38] sm:$0xff]   ;;  %v13326_v52 = vld [vmem:[%s16391_s11 + $0xc0] sm:$0xff]  }
 0x25c   : > { %11842 = vmatprep.subr.bf16.mxu0 %v13299_v8  ;;  %12430 = vmatprep.subr.bf16.mxu1 %v13300_v63  ;;  %v7295_v8 = vrot.slane %v7293_v45, 1 }
 0x25d   : > { %7189 = vmatprep.mubr.bf16.mxu0 %v6944_v13  ;;  %12444 = vmatprep.mubr.bf16.mxu1 %v7304_v7  ;;  %v7649_v13 = vrot.slane %v10817_v5, 1  ;;  %v7306_v7 = vsel %vm1024_vm0, %v7303_v61, %v7305_v60 }
 0x25e   : > { %v7296_v61 = vsel %vm998_vm1, %v7291_v46, %v7295_v8  ;;  %v13351_v8 = vld [vmem:[%s16391_s11 + $0x1c0] sm:$0xff]  }
 0x25f   : > { %11843 = vmatpush3.bf16.msra.mxu0 %v13301_v59  ;;  %12431 = vmatpush3.bf16.msra.mxu1 %v13300_v63 }
 0x260   : > { %11844 = vmatprep.subr.bf16.mxu0 %v13302_v22  ;;  %12432 = vmatprep.subr.bf16.mxu1 %v13303_v28  ;;  %v13327_v22 = vld [vmem:[%s16391_s11 + $0x108] sm:$0xff]  }
 0x262   : > { %7190 = vmatmul.mubr.bf16.gmra.mrb[140].mxu0 %v15525_v3  ;;  %v13310_v3 = vld [vmem:[%s16391_s11 + $0x20] sm:$0xff]  }
 0x263   : > { %11845 = vmatpush3.bf16.msra.mxu0 %v13304_v14  ;;  %12433 = vmatpush3.bf16.msra.mxu1 %v13303_v28 }
 0x264   : > { %11846 = vmatprep.subr.bf16.mxu0 %v13305_v27  ;;  %12434 = vmatprep.subr.bf16.mxu1 %v13306_v29  ;;  %v7625_v27 = vshrl.u32 %v15760_v4, 16 }
 0x265   : > { %7533 = vmatprep.mubr.bf16.mxu0 %v7288_v30  ;;  %v7632_v30 = vshll.u32 %v15776_v34, 16 }
 0x267   : > { %11847 = vmatpush3.bf16.msra.mxu0 %v13307_v0  ;;  %12435 = vmatpush3.bf16.msra.mxu1 %v13306_v29  ;;  %v7629_v29 = vrot.slane %v7627_v41, 1  ;;  %v15816_v35 = vrot.slane %v7632_v30, 1  ;;  %v13352_v41 = vld [vmem:[%s16391_s11 + $0x200] sm:$0xff]   ;;  %v13357_v30 = vld [vmem:[%s16391_s11 + $0x188] sm:$0xff]  }
 0x268   : > { %11848 = vmatprep.subr.bf16.mxu0 %v13308_v21  ;;  %12436 = vmatprep.subr.bf16.mxu1 %v13309_v11 }
 0x26b   : > { %11849 = vmatpush3.bf16.msra.mxu0 %v13310_v3  ;;  %12437 = vmatpush3.bf16.msra.mxu1 %v13309_v11  ;;  %v13330_v11 = vld [vmem:[%s16391_s11 + $0x110] sm:$0xff]  }
 0x26c   : > { %11850 = vmatprep.subr.bf16.mxu0 %v13311_v37  ;;  %12438 = vmatprep.subr.bf16.mxu1 %v13312_v6  ;;  %v13331_v3 = vld [vmem:[%s16391_s11 + $0x150] sm:$0xff]  }
 0x26d   : > { %v11590_v32 = vpop.f32.mrb[88].mxu0  ;;  %v15745_v1 = vpop.f32.mrb[12].mxu1 }
 0x26e   : > { %v11591_v43 = vpop.f32.mrb[89].mxu0  ;;  %v5140_v58 = vpop.f32.mrb[13].mxu1 }
 0x26f   : > { %v11592_v54 = vadd.f32 %v11591_v43, %v11590_v32  ;;  %v11593_v36 = vpop.f32.mrb[90].mxu0  ;;  %v15757_v55 = vpop.f32.mrb[14].mxu1  ;;  %11851 = vmatpush3.bf16.msra.mxu0 %v13313_v42  ;;  %12439 = vmatpush3.bf16.msra.mxu1 %v13312_v6  ;;  %v13332_v6 = vld [vmem:[%s16391_s11 + $0xd0] sm:$0xff]   ;;  %v13333_v42 = vld [vmem:[%s16391_s11 + $0x118] sm:$0xff]   ;;  %v13337_v32 = vld [vmem:[%s16391_s11 + $0x160] sm:$0xff]  }
 0x270   : > { %v11594_v31 = vpop.f32.mrb[91].mxu0  ;;  %v5143_v56 = vpop.f32.mrb[15].mxu1  ;;  %11852 = vmatprep.subr.bf16.mxu0 %v13314_v24  ;;  %12440 = vmatprep.subr.bf16.mxu1 %v13315_v12  ;;  %v13334_v24 = vld [vmem:[%s16391_s11 + $0x158] sm:$0xff]   ;;  %v13342_v43 = vld [vmem:[%s16391_s11 + $0x130] sm:$0xff]  }
 0x271   : > { %v12602_v19 = vadd.f32 %v15626_v18, %v11592_v54  ;;  %v11595_v53 = vadd.f32 %v11594_v31, %v11593_v36  ;;  %v7951_v54 = vld [vmem:[%s15705_s20 + $0x4] sm:$0xf]  ;;  %v7955_v36 = vld [vmem:[%s15705_s20] sm:$0xe] }
 0x272   : > { %v10893_v60 = vcombine.low %v7955_v36, %v7951_v54 }
 0x273   : > { %v12603_v49 = vadd.f32 %v12602_v19, %v5140_v58  ;;  %v12610_v18 = vadd.f32 %v15646_v51, %v11595_v53  ;;  %11853 = vmatpush3.bf16.msra.mxu0 %v13316_v40  ;;  %12441 = vmatpush3.bf16.msra.mxu1 %v13315_v12  ;;  %v7650_v51 = vrot.slane %v15776_v34, 1  ;;  %v13335_v12 = vld [vmem:[%s16391_s11 + $0xd8] sm:$0xff]   ;;  %v13340_v40 = vld [vmem:[%s16391_s11 + $0x168] sm:$0xff]   ;;  %v13343_v58 = vld [vmem:[%s16391_s11 + $0x170] sm:$0xff]  }
 0x274   : > { %11854 = vmatprep.subr.bf16.mxu0 %v13317_v15  ;;  %12442 = vmatprep.subr.bf16.mxu1 %v13318_v47  ;;  %v13353_v15 = vld [vmem:[%s15373_s30 + $0x10] ss:$0 sps:$4 sm:$0x11]  }
 0x275   : > { %10414 = vst [vmem:[%s14679_s19 + $0x60] sm:$0xff] %v12603_v49  ;;  %v12611_v63 = vadd.f32 %v12610_v18, %v5143_v56  ;;  %v11596_v9 = vpop.f32.mrb[92].mxu0  ;;  %v7651_v0 = vsel %vm1024_vm0, %v7649_v13, %v7650_v51  ;;  %v13345_v56 = vld [vmem:[%s16391_s11 + $0x138] sm:$0xff]   ;;  %v7636_v18 = vshrl.u32 %v15776_v34, 16 }
 0x276   : > { %v11597_v59 = vpop.f32.mrb[93].mxu0  ;;  %v13347_v49 = vld [vmem:[%s16391_s11 + $0xf8] sm:$0xff]  }
 0x277   : > { %10415 = vst [vmem:[%s14679_s19 + $0x68] sm:$0xff] %v12611_v63  ;;  %v11598_v62 = vadd.f32 %v11597_v59, %v11596_v9  ;;  %v11599_v16 = vpop.f32.mrb[94].mxu0  ;;  %11855 = vmatpush3.bf16.msra.mxu0 %v13319_v48  ;;  %12443 = vmatpush3.bf16.msra.mxu1 %v13318_v47  ;;  %v7950_v47 = vld [vmem:[%s15705_s20] sm:$0xf]  ;;  %v7640_v48 = vshll.u32 %v13353_v15, 16  ;;  %v15888_v63 = vld [vmem:[%s15705_s20 + $0x8] sm:$0xff]   ;;  %v7638_v13 = vor.u32 %v7636_v18, %v15816_v35 }
 0x278   : > { %v11600_v28 = vpop.f32.mrb[95].mxu0  ;;  %11878 = vmatprep.subr.bf16.mxu0 %v13323_v20  ;;  %12448 = vmatprep.subr.bf16.mxu1 %v13324_v57  ;;  %v15873_v44 = vcombine.low %v7950_v47, %v7951_v54  ;;  %v7652_v9 = vrot.slane %v13353_v15, 1  ;;  %v7997_v46 = vrot.slane %v15888_v63, 1  ;;  %v8302_v15 = vld [vmem:[%s15373_s30] sm:$0xf] }
 0x279   : > { %v12598_v26 = vadd.f32 %v15673_v23, %v11598_v62  ;;  %v11601_v14 = vadd.f32 %v11600_v28, %v11599_v16  ;;  %v7996_v16 = vrot.slane %v10893_v60, 1  ;;  %v13354_v28 = vld [vmem:[%s16391_s11 + $0x180] sm:$0xff]  }
 0x27a   : > { %7534 = vmatmul.mubr.bf16.vlgmr.msra.gmra.mrb[144].mxu0 %v15622_v50  ;;  %12445 = vmatmul.mubr.bf16.vlgmr.msra.gmra.mrb[24].mxu1 %v7306_v7  ;;  %v13329_v50 = vld [vmem:[%s16391_s11 + $0xc8] sm:$0xff]   ;;  %v7974_v59 = vshll.u32 %v15873_v44, 16  ;;  %v8303_v47 = vld [vmem:[%s15373_s30 + $0x4] sm:$0xf]  ;;  %v8307_v54 = vld [vmem:[%s15373_s30] sm:$0xe] }
 0x27b   : > { %v12599_v21 = vadd.f32 %v12598_v26, %v15745_v1  ;;  %v12606_v23 = vadd.f32 %v15686_v17, %v11601_v14  ;;  %11879 = vmatpush3.bf16.msra.mxu0 %v13326_v52  ;;  %12449 = vmatpush3.bf16.msra.mxu1 %v13324_v57  ;;  %v7630_v17 = vor.u32 %v7629_v29, %v7625_v27  ;;  %v13339_v1 = vld [vmem:[%s16391_s11 + $0x128] sm:$0xff]   ;;  %v13346_v57 = vld [vmem:[%s16391_s11 + $0x178] sm:$0xff]   ;;  %v7642_v52 = vrot.slane %v7640_v48, 1 }
 0x27c   : > { %11880 = vmatprep.subr.bf16.mxu0 %v13327_v22  ;;  %12450 = vmatprep.subr.bf16.mxu1 %v13328_v10  ;;  %v7653_v22 = vsel %vm1024_vm0, %v7650_v51, %v7652_v9  ;;  %v13355_v14 = vld [vmem:[%s16391_s11 + $0x1c8] sm:$0xff]   ;;  %v7983_v48 = vshrl.u32 %v15888_v63, 16  ;;  %v13375_v9 = vld [vmem:[%s16391_s11 + $0x1b8] sm:$0xff]  }
 0x27d   : > { %10416 = vst [vmem:[%s14679_s19 + $0x70] sm:$0xff] %v12599_v21  ;;  %v12607_v37 = vadd.f32 %v12606_v23, %v15757_v55  ;;  %7541 = vmatprep.mubr.bf16.mxu0 %v7296_v61  ;;  %12464 = vmatprep.mubr.bf16.mxu1 %v7651_v0  ;;  %v7635_v45 = vsel %vm998_vm1, %v7630_v17, %v15816_v35  ;;  %v13356_v27 = vld [vmem:[%s16391_s11 + $0x208] sm:$0xff]   ;;  %v7972_v0 = vshrl.u32 %v15873_v44, 16  ;;  %v7976_v21 = vrot.slane %v7974_v59, 1  ;;  %v13361_v35 = vld [vmem:[%s16391_s11 + $0x1d8] sm:$0xff]   ;;  %v13381_v59 = vld [vmem:[%s16391_s11 + $0x80] sm:$0xff]  }
 0x27e   : > { %v7643_v51 = vsel %vm998_vm1, %v7638_v13, %v7642_v52  ;;  %v7979_v23 = vshll.u32 %v15888_v63, 16  ;;  %v16011_v13 = vld [vmem:[%s15373_s30 + $0x8] sm:$0xff]  }
 0x27f   : > { %10417 = vst [vmem:[%s14679_s19 + $0x78] sm:$0xff] %v12607_v37  ;;  %11881 = vmatpush3.bf16.msra.mxu0 %v13329_v50  ;;  %12451 = vmatpush3.bf16.msra.mxu1 %v13328_v10  ;;  %v7998_v50 = vsel %vm1024_vm0, %v7996_v16, %v7997_v46  ;;  %v7977_v37 = vor.u32 %v7976_v21, %v7972_v0  ;;  %v13382_v0 = vld [vmem:[%s16391_s11] sm:$0xff]  }
 0x280   : > { %11882 = vmatprep.subr.bf16.mxu0 %v13330_v11  ;;  %12452 = vmatprep.subr.bf16.mxu1 %v13331_v3  ;;  %v13359_v11 = vld [vmem:[%s16391_s11 + $0x210] sm:$0xff]   ;;  %v15931_v17 = vrot.slane %v7979_v23, 1  ;;  %v13383_v23 = vld [vmem:[%s16391_s11 + $0x48] sm:$0xff]  }
 0x282   : > { %7542 = vmatmul.mubr.bf16.gmra.mrb[148].mxu0 %v15644_v25  ;;  %v13338_v25 = vld [vmem:[%s16391_s11 + $0xe0] sm:$0xff]   ;;  %v7985_v16 = vor.u32 %v7983_v48, %v15931_v17 }
 0x283   : > { %11883 = vmatpush3.bf16.msra.mxu0 %v13332_v6  ;;  %12453 = vmatpush3.bf16.msra.mxu1 %v13331_v3  ;;  %v13360_v3 = vld [vmem:[%s16391_s11 + $0x190] sm:$0xff]   ;;  %v13362_v6 = vld [vmem:[%s16391_s11 + $0x218] sm:$0xff]  }
 0x284   : > { %11884 = vmatprep.subr.bf16.mxu0 %v13333_v42  ;;  %12454 = vmatprep.subr.bf16.mxu1 %v13334_v24  ;;  %v13363_v42 = vld [vmem:[%s16391_s11 + $0x198] sm:$0xff]  }
 0x285   : > { %7880 = vmatprep.mubr.bf16.mxu0 %v7635_v45  ;;  %v13365_v45 = vld [vmem:[%s16391_s11 + $0x220] sm:$0xff]  }
 0x287   : > { %11885 = vmatpush3.bf16.msra.mxu0 %v13335_v12  ;;  %12455 = vmatpush3.bf16.msra.mxu1 %v13334_v24  ;;  %v7982_v24 = vsel %vm998_vm1, %v7977_v37, %v15931_v17  ;;  %v13364_v12 = vld [vmem:[%s16391_s11 + $0x1e0] sm:$0xff]   ;;  %v8331_v17 = vshll.u32 %v16011_v13, 16 }
 0x288   : > { %11886 = vmatprep.subr.bf16.mxu0 %v13336_v33  ;;  %12456 = vmatprep.subr.bf16.mxu1 %v13337_v32  ;;  %v13367_v33 = vld [vmem:[%s16391_s11 + $0x1e8] sm:$0xff]  }
 0x28b   : > { %11887 = vmatpush3.bf16.msra.mxu0 %v13338_v25  ;;  %12457 = vmatpush3.bf16.msra.mxu1 %v13337_v32  ;;  %v13368_v32 = vld [vmem:[%s16391_s11 + $0x228] sm:$0xff]  }
 0x28c   : > { %11888 = vmatprep.subr.bf16.mxu0 %v13339_v1  ;;  %12458 = vmatprep.subr.bf16.mxu1 %v13340_v40  ;;  %v13369_v25 = vld [vmem:[%s16391_s11 + $0x1a8] sm:$0xff]   ;;  %v13370_v1 = vld [vmem:[%s16391_s11 + $0x1f0] sm:$0xff]  }
 0x28d   : > { %v11628_v55 = vpop.f32.mrb[96].mxu0 }
 0x28e   : > { %v11629_v31 = vpop.f32.mrb[97].mxu0 }
 0x28f   : > { %v15868_v19 = vadd.f32 %v11629_v31, %v11628_v55  ;;  %v11631_v53 = vpop.f32.mrb[98].mxu0  ;;  %11889 = vmatpush3.bf16.msra.mxu0 %v13341_v39  ;;  %12459 = vmatpush3.bf16.msra.mxu1 %v13340_v40  ;;  %v13371_v40 = vld [vmem:[%s16391_s11 + $0x230] sm:$0xff]   ;;  %v13373_v55 = vld [vmem:[%s16391_s11 + $0x1f8] sm:$0xff]  }
 0x290   : > { %v11632_v20 = vpop.f32.mrb[99].mxu0  ;;  %11890 = vmatprep.subr.bf16.mxu0 %v13342_v43  ;;  %12460 = vmatprep.subr.bf16.mxu1 %v13343_v58  ;;  %v13372_v43 = vld [vmem:[%s16391_s11 + $0x1b0] sm:$0xff]  }
 0x291   : > { %v15875_v5 = vadd.f32 %v11632_v20, %v11631_v53  ;;  %v12616_v31 = vadd.f32 %v15658_v2, %v15868_v19  ;;  %v10973_v19 = vcombine.low %v8307_v54, %v8303_v47 }
 0x293   : > { %11891 = vmatpush3.bf16.msra.mxu0 %v13344_v38  ;;  %12461 = vmatpush3.bf16.msra.mxu1 %v13343_v58  ;;  %v13379_v58 = vld [vmem:[%s15705_s20 + $0x10] ss:$0 sps:$4 sm:$0x11]   ;;  %v13374_v38 = vld [vmem:[%s16391_s11 + $0x238] sm:$0xff]  }
 0x294   : > { %11892 = vmatprep.subr.bf16.mxu0 %v13345_v56  ;;  %12462 = vmatprep.subr.bf16.mxu1 %v13346_v57  ;;  %v7987_v60 = vshll.u32 %v13379_v58, 16  ;;  %v7999_v52 = vrot.slane %v13379_v58, 1  ;;  %v13397_v58 = vld [vmem:[%s16391_s11 + $0x28] sm:$0xff]  }
 0x295   : > { %v11634_v62 = vpop.f32.mrb[100].mxu0 }
 0x296   : > { %v11635_v7 = vpop.f32.mrb[101].mxu0 }
 0x297   : > { %11893 = vmatpush3.bf16.msra.mxu0 %v13347_v49  ;;  %12463 = vmatpush3.bf16.msra.mxu1 %v13346_v57  ;;  %v15900_v10 = vadd.f32 %v11635_v7, %v11634_v62  ;;  %v11637_v26 = vpop.f32.mrb[102].mxu0  ;;  %v12624_v57 = vadd.f32 %v15658_v2, %v15875_v5  ;;  %v13380_v5 = vld [vmem:[%s16391_s11 + $0x40] sm:$0xff]   ;;  %v7989_v7 = vrot.slane %v7987_v60, 1 }
 0x298   : > { %11916 = vmatprep.subr.bf16.mxu0 %v13351_v8  ;;  %12468 = vmatprep.subr.bf16.mxu1 %v13352_v41  ;;  %v11638_v61 = vpop.f32.mrb[103].mxu0  ;;  %v15992_v8 = vcombine.low %v8302_v15, %v8303_v47  ;;  %v13398_v15 = vld [vmem:[%s16391_s11 + $0x70] sm:$0xff]   ;;  %v8654_v60 = vld [vmem:[%s15705_s20] sm:$0xe] }
 0x299   : > { %v15909_v29 = vadd.f32 %v11638_v61, %v11637_v26  ;;  %v8348_v26 = vrot.slane %v10973_v19, 1  ;;  %v13399_v47 = vld [vmem:[%s16391_s11 + $0xb0] sm:$0xff]  }
 0x29a   : > { %7881 = vmatmul.mubr.bf16.vlgmr.msra.gmra.mrb[152].mxu0 %v15760_v4  ;;  %12465 = vmatmul.mubr.bf16.vlgmr.msra.gmra.mrb[24].mxu1 %v7653_v22  ;;  %v13358_v4 = vld [vmem:[%s16391_s11 + $0x1d0] sm:$0xff]  }
 0x29b   : > { %11917 = vmatpush3.bf16.msra.mxu0 %v13354_v28  ;;  %12469 = vmatpush3.bf16.msra.mxu1 %v13352_v41  ;;  %v8326_v28 = vshll.u32 %v15992_v8, 16 }
 0x29c   : > { %11918 = vmatprep.subr.bf16.mxu0 %v13355_v14  ;;  %12470 = vmatprep.subr.bf16.mxu1 %v13356_v27  ;;  %v8349_v14 = vrot.slane %v16011_v13, 1 }
 0x29d   : > { %7888 = vmatprep.mubr.bf16.mxu0 %v7643_v51  ;;  %12484 = vmatprep.mubr.bf16.mxu1 %v7998_v50  ;;  %v8328_v37 = vrot.slane %v8326_v28, 1 }
 0x29f   : > { %11919 = vmatpush3.bf16.msra.mxu0 %v13357_v30  ;;  %12471 = vmatpush3.bf16.msra.mxu1 %v13356_v27  ;;  %v12612_v27 = vadd.f32 %v15658_v2, %v15900_v10  ;;  %v8000_v30 = vsel %vm1024_vm0, %v7997_v46, %v7999_v52  ;;  %v13384_v2 = vld [vmem:[%s16391_s11 + $0x88] sm:$0xff]   ;;  %v16033_v10 = vld [vmem:[%s16392_s12] ss:$0 sm:$0xff]  ;;  %v13401_v52 = vld [vmem:[%s16391_s11 + $0x78] sm:$0xff]  }
 0x2a0   : > { %11920 = vmatprep.subr.bf16.mxu0 %v13358_v4  ;;  %12472 = vmatprep.subr.bf16.mxu1 %v13359_v11  ;;  %v12620_v46 = vadd.f32 %v16033_v10, %v15909_v29  ;;  %v13385_v29 = vld [vmem:[%s16391_s11 + $0x8] sm:$0xff]  }
 0x2a2   : > { %7889 = vmatmul.mubr.bf16.gmra.mrb[156].mxu0 %v15776_v34  ;;  %v13366_v34 = vld [vmem:[%s16391_s11 + $0x1a0] sm:$0xff]  }
 0x2a3   : > { %11921 = vmatpush3.bf16.msra.mxu0 %v13360_v3  ;;  %12473 = vmatpush3.bf16.msra.mxu1 %v13359_v11  ;;  %v7990_v11 = vsel %vm998_vm1, %v7985_v16, %v7989_v7  ;;  %v8324_v3 = vshrl.u32 %v15992_v8, 16  ;;  %v8335_v16 = vshrl.u32 %v16011_v13, 16 }
 0x2a4   : > { %11922 = vmatprep.subr.bf16.mxu0 %v13361_v35  ;;  %12474 = vmatprep.subr.bf16.mxu1 %v13362_v6  ;;  %v8350_v35 = vsel %vm1024_vm0, %v8348_v26, %v8349_v14 }
 0x2a5   : > { %8227 = vmatprep.mubr.bf16.mxu0 %v7982_v24  ;;  %v8329_v24 = vor.u32 %v8328_v37, %v8324_v3 }
 0x2a7   : > { %11923 = vmatpush3.bf16.msra.mxu0 %v13363_v42  ;;  %12475 = vmatpush3.bf16.msra.mxu1 %v13362_v6  ;;  %v13387_v42 = vld [vmem:[%s16391_s11 + $0x90] sm:$0xff]  }
 0x2a8   : > { %11924 = vmatprep.subr.bf16.mxu0 %v13364_v12  ;;  %12476 = vmatprep.subr.bf16.mxu1 %v13365_v45  ;;  %v16057_v12 = vrot.slane %v8331_v17, 1 }
 0x2ab   : > { %11925 = vmatpush3.bf16.msra.mxu0 %v13366_v34  ;;  %12477 = vmatpush3.bf16.msra.mxu1 %v13365_v45  ;;  %v13388_v45 = vld [vmem:[%s16391_s11 + $0x10] sm:$0xff]   ;;  %v13389_v34 = vld [vmem:[%s16391_s11 + $0x58] sm:$0xff]  }
 0x2ac   : > { %11926 = vmatprep.subr.bf16.mxu0 %v13367_v33  ;;  %12478 = vmatprep.subr.bf16.mxu1 %v13368_v32  ;;  %v13390_v33 = vld [vmem:[%s16391_s11 + $0x98] sm:$0xff]  }
 0x2ad   : > { %v11666_v39 = vpop.f32.mrb[104].mxu0 }
 0x2ae   : > { %v11667_v36 = vpop.f32.mrb[105].mxu0 }
 0x2af   : > { %v11668_v56 = vadd.f32 %v11667_v36, %v11666_v39  ;;  %v11669_v53 = vpop.f32.mrb[106].mxu0  ;;  %11927 = vmatpush3.bf16.msra.mxu0 %v13369_v25  ;;  %12479 = vmatpush3.bf16.msra.mxu1 %v13368_v32  ;;  %v8334_v32 = vsel %vm998_vm1, %v8329_v24, %v16057_v12  ;;  %v13391_v25 = vld [vmem:[%s16391_s11 + $0x18] sm:$0xff]   ;;  %v13395_v39 = vld [vmem:[%s16391_s11 + $0x68] sm:$0xff]  }
 0x2b0   : > { %v11670_v20 = vpop.f32.mrb[107].mxu0  ;;  %11928 = vmatprep.subr.bf16.mxu0 %v13370_v1  ;;  %12480 = vmatprep.subr.bf16.mxu1 %v13371_v40  ;;  %v13392_v1 = vld [vmem:[%s16391_s11 + $0x60] sm:$0xff]   ;;  %v13412_v24 = vld [vmem:[%s16391_s11 + $0x148] sm:$0xff]  }
 0x2b1   : > { %v15990_v49 = vadd.f32 %v12616_v31, %v11668_v56  ;;  %v11671_v18 = vadd.f32 %v11670_v20, %v11669_v53  ;;  %v13400_v56 = vld [vmem:[%s16391_s11 + $0x30] sm:$0xff]   ;;  %v8649_v53 = vld [vmem:[%s15705_s20] sm:$0xf] }
 0x2b3   : > { %v15994_v41 = vadd.f32 %v12624_v57, %v11671_v18  ;;  %11929 = vmatpush3.bf16.msra.mxu0 %v13372_v43  ;;  %12481 = vmatpush3.bf16.msra.mxu1 %v13371_v40  ;;  %v13393_v40 = vld [vmem:[%s16391_s11 + $0xa0] sm:$0xff]   ;;  %v13396_v43 = vld [vmem:[%s16391_s11 + $0xa8] sm:$0xff]  }
 0x2b4   : > { %11930 = vmatprep.subr.bf16.mxu0 %v13373_v55  ;;  %12482 = vmatprep.subr.bf16.mxu1 %v13374_v38  ;;  %v13409_v55 = vld [vmem:[%s15373_s30 + $0x10] ss:$0 sps:$4 sm:$0x11]   ;;  %v8650_v18 = vld [vmem:[%s15705_s20 + $0x4] sm:$0xf] }
 0x2b5   : > { %v11672_v62 = vpop.f32.mrb[108].mxu0  ;;  %v8339_v7 = vshll.u32 %v13409_v55, 16  ;;  %v11001_v28 = vcombine.low %v8654_v60, %v8650_v18  ;;  %v13437_v60 = vld [vmem:[%s15705_s20 + $0x10] ss:$0 sps:$4 sm:$0x11]  }
 0x2b6   : > { %v11673_v22 = vpop.f32.mrb[109].mxu0 }
 0x2b7   : > { %v11674_v61 = vadd.f32 %v11673_v22, %v11672_v62  ;;  %v11675_v51 = vpop.f32.mrb[110].mxu0  ;;  %11931 = vmatpush3.bf16.msra.mxu0 %v13375_v9  ;;  %12483 = vmatpush3.bf16.msra.mxu1 %v13374_v38  ;;  %v16117_v22 = vcombine.low %v8649_v53, %v8650_v18  ;;  %v13425_v53 = vld [vmem:[%s16391_s11 + $0xe8] sm:$0xff]  }
 0x2b8   : > { %v11676_v21 = vpop.f32.mrb[111].mxu0  ;;  %11954 = vmatprep.subr.bf16.mxu0 %v13380_v5  ;;  %12488 = vmatprep.subr.bf16.mxu1 %v13381_v59  ;;  %v13402_v5 = vld [vmem:[%s16391_s11 + $0xb8] sm:$0xff]  }
 0x2b9   : > { %v16037_v50 = vadd.f32 %v12612_v27, %v11674_v61  ;;  %v11677_v4 = vadd.f32 %v11676_v21, %v11675_v51  ;;  %v13403_v61 = vld [vmem:[%s16391_s11 + $0x38] sm:$0xff]   ;;  %v13407_v51 = vld [vmem:[%s16391_s11 + $0x100] sm:$0xff]  }
 0x2ba   : > { %8228 = vmatmul.mubr.bf16.vlgmr.msra.gmra.mrb[160].mxu0 %v15873_v44  ;;  %12485 = vmatmul.mubr.bf16.vlgmr.msra.gmra.mrb[24].mxu1 %v8000_v30  ;;  %v13386_v44 = vld [vmem:[%s16391_s11 + $0x50] sm:$0xff]   ;;  %v13408_v30 = vld [vmem:[%s16391_s11 + $0x140] sm:$0xff]  }
 0x2bb   : > { %v16046_v6 = vadd.f32 %v12620_v46, %v11677_v4  ;;  %11955 = vmatpush3.bf16.msra.mxu0 %v13382_v0  ;;  %12489 = vmatpush3.bf16.msra.mxu1 %v13381_v59  ;;  %v16130_v0 = vld [vmem:[%s15705_s20 + $0x8] sm:$0xff]   ;;  %v8673_v4 = vshll.u32 %v16117_v22, 16 }
 0x2bc   : > { %11956 = vmatprep.subr.bf16.mxu0 %v13383_v23  ;;  %12490 = vmatprep.subr.bf16.mxu1 %v13384_v2  ;;  %v8337_v23 = vor.u32 %v8335_v16, %v16057_v12  ;;  %v8696_v3 = vrot.slane %v16130_v0, 1 }
 0x2bd   : > { %8235 = vmatprep.mubr.bf16.mxu0 %v7990_v11  ;;  %12504 = vmatprep.mubr.bf16.mxu1 %v8350_v35  ;;  %v8695_v11 = vrot.slane %v11001_v28, 1  ;;  %v13430_v28 = vld [vmem:[%s16391_s11 + $0x178] sm:$0xff]  }
 0x2bf   : > { %11957 = vmatpush3.bf16.msra.mxu0 %v13385_v29  ;;  %12491 = vmatpush3.bf16.msra.mxu1 %v13384_v2  ;;  %v8341_v2 = vrot.slane %v8339_v7, 1  ;;  %v13410_v29 = vld [vmem:[%s16391_s11 + $0xc0] sm:$0xff]   ;;  %v13429_v7 = vld [vmem:[%s16391_s11 + $0x138] sm:$0xff]  }
 0x2c0   : > { %11958 = vmatprep.subr.bf16.mxu0 %v13386_v44  ;;  %12492 = vmatprep.subr.bf16.mxu1 %v13387_v42 }
 0x2c2   : > { %8236 = vmatmul.mubr.bf16.gmra.mrb[164].mxu0 %v15888_v63  ;;  %v13394_v63 = vld [vmem:[%s16391_s11 + $0x20] sm:$0xff]  }
 0x2c3   : > { %11959 = vmatpush3.bf16.msra.mxu0 %v13388_v45  ;;  %12493 = vmatpush3.bf16.msra.mxu1 %v13387_v42  ;;  %v13411_v42 = vld [vmem:[%s16391_s11 + $0x108] sm:$0xff]  }
 0x2c4   : > { %11960 = vmatprep.subr.bf16.mxu0 %v13389_v34  ;;  %12494 = vmatprep.subr.bf16.mxu1 %v13390_v33  ;;  %v8671_v34 = vshrl.u32 %v16117_v22, 16 }
 0x2c5   : > { %8579 = vmatprep.mubr.bf16.mxu0 %v8334_v32  ;;  %v8678_v32 = vshll.u32 %v16130_v0, 16 }
 0x2c7   : > { %11961 = vmatpush3.bf16.msra.mxu0 %v13391_v25  ;;  %12495 = vmatpush3.bf16.msra.mxu1 %v13390_v33  ;;  %v8675_v33 = vrot.slane %v8673_v4, 1  ;;  %v8697_v25 = vsel %vm1024_vm0, %v8695_v11, %v8696_v3 }
 0x2c8   : > { %11962 = vmatprep.subr.bf16.mxu0 %v13392_v1  ;;  %12496 = vmatprep.subr.bf16.mxu1 %v13393_v40 }
 0x2cb   : > { %11963 = vmatpush3.bf16.msra.mxu0 %v13394_v63  ;;  %12497 = vmatpush3.bf16.msra.mxu1 %v13393_v40  ;;  %v13414_v40 = vld [vmem:[%s16391_s11 + $0x110] sm:$0xff]  }
 0x2cc   : > { %11964 = vmatprep.subr.bf16.mxu0 %v13395_v39  ;;  %12498 = vmatprep.subr.bf16.mxu1 %v13396_v43  ;;  %v13415_v63 = vld [vmem:[%s16391_s11 + $0x150] sm:$0xff]  }
 0x2cd   : > { %v11704_v54 = vpop.f32.mrb[112].mxu0  ;;  %v16098_v36 = vpop.f32.mrb[16].mxu1 }
 0x2ce   : > { %v11705_v38 = vpop.f32.mrb[113].mxu0  ;;  %v6186_v31 = vpop.f32.mrb[17].mxu1 }
 0x2cf   : > { %v11706_v48 = vadd.f32 %v11705_v38, %v11704_v54  ;;  %v11707_v20 = vpop.f32.mrb[114].mxu0  ;;  %v16105_v57 = vpop.f32.mrb[18].mxu1  ;;  %11965 = vmatpush3.bf16.msra.mxu0 %v13397_v58  ;;  %12499 = vmatpush3.bf16.msra.mxu1 %v13396_v43  ;;  %v16170_v43 = vrot.slane %v8678_v32, 1  ;;  %v13416_v58 = vld [vmem:[%s16391_s11 + $0xd0] sm:$0xff]   ;;  %v13421_v38 = vld [vmem:[%s16391_s11 + $0x160] sm:$0xff]  }
 0x2d0   : > { %v11708_v19 = vpop.f32.mrb[115].mxu0  ;;  %v6189_v9 = vpop.f32.mrb[19].mxu1  ;;  %11966 = vmatprep.subr.bf16.mxu0 %v13398_v15  ;;  %12500 = vmatprep.subr.bf16.mxu1 %v13399_v47  ;;  %v13417_v15 = vld [vmem:[%s16391_s11 + $0x118] sm:$0xff]  }
 0x2d1   : > { %v12618_v59 = vadd.f32 %v15990_v49, %v11706_v48  ;;  %v11709_v62 = vadd.f32 %v11708_v19, %v11707_v20  ;;  %v8351_v49 = vrot.slane %v13409_v55, 1  ;;  %v13420_v55 = vld [vmem:[%s16391_s11 + $0x120] sm:$0xff]   ;;  %v13426_v48 = vld [vmem:[%s16391_s11 + $0x130] sm:$0xff]  }
 0x2d2   : > { %v13427_v20 = vld [vmem:[%s16391_s11 + $0x170] sm:$0xff]   ;;  %v8996_v19 = vld [vmem:[%s16008_s27] sm:$0xf] }
 0x2d3   : > { %v12619_v26 = vadd.f32 %v12618_v59, %v6186_v31  ;;  %v12626_v27 = vadd.f32 %v15994_v41, %v11709_v62  ;;  %11967 = vmatpush3.bf16.msra.mxu0 %v13400_v56  ;;  %12501 = vmatpush3.bf16.msra.mxu1 %v13399_v47  ;;  %v8352_v35 = vsel %vm1024_vm0, %v8349_v14, %v8351_v49  ;;  %v13418_v47 = vld [vmem:[%s16391_s11 + $0x158] sm:$0xff]   ;;  %v13423_v31 = vld [vmem:[%s16391_s11 + $0x128] sm:$0xff]   ;;  %v8997_v59 = vld [vmem:[%s16008_s27 + $0x4] sm:$0xf] }
 0x2d4   : > { %11968 = vmatprep.subr.bf16.mxu0 %v13401_v52  ;;  %12502 = vmatprep.subr.bf16.mxu1 %v13402_v5  ;;  %v8342_v14 = vsel %vm998_vm1, %v8337_v23, %v8341_v2  ;;  %v13424_v56 = vld [vmem:[%s16391_s11 + $0x168] sm:$0xff]   ;;  %v9001_v62 = vld [vmem:[%s16008_s27] sm:$0xe]  ;;  %v16230_v49 = vcombine.low %v8996_v19, %v8997_v59  ;;  %v13456_v19 = vld [vmem:[%s16391_s11 + $0x1b0] sm:$0xff]  }
 0x2d5   : > { %10598 = vst [vmem:[%s14679_s19 + $0x80] sm:$0xff] %v12619_v26  ;;  %v12627_v41 = vadd.f32 %v12626_v27, %v6189_v9  ;;  %v11710_v21 = vpop.f32.mrb[116].mxu0  ;;  %v8682_v27 = vshrl.u32 %v16130_v0, 16  ;;  %v13436_v23 = vld [vmem:[%s16391_s11 + $0x200] sm:$0xff]   ;;  %v16242_v2 = vld [vmem:[%s16008_s27 + $0x8] sm:$0xff]  }
 0x2d6   : > { %v11711_v46 = vpop.f32.mrb[117].mxu0  ;;  %v9018_v32 = vshrl.u32 %v16230_v49, 16 }
 0x2d7   : > { %10599 = vst [vmem:[%s14679_s19 + $0x88] sm:$0xff] %v12627_v41  ;;  %v11712_v37 = vadd.f32 %v11711_v46, %v11710_v21  ;;  %v11713_v17 = vpop.f32.mrb[118].mxu0  ;;  %11969 = vmatpush3.bf16.msra.mxu0 %v13403_v61  ;;  %12503 = vmatpush3.bf16.msra.mxu1 %v13402_v5  ;;  %v13428_v5 = vld [vmem:[%s16391_s11 + $0xf0] sm:$0xff]   ;;  %v8686_v61 = vshll.u32 %v13437_v60, 16  ;;  %v8698_v41 = vrot.slane %v13437_v60, 1  ;;  %v13435_v21 = vld [vmem:[%s16391_s11 + $0x1c0] sm:$0xff]   ;;  %v8684_v46 = vor.u32 %v8682_v27, %v16170_v43 }
 0x2d8   : > { %v11714_v44 = vpop.f32.mrb[119].mxu0  ;;  %11992 = vmatprep.subr.bf16.mxu0 %v13407_v51  ;;  %12508 = vmatprep.subr.bf16.mxu1 %v13408_v30  ;;  %v11077_v51 = vcombine.low %v9001_v62, %v8997_v59  ;;  %v13458_v59 = vld [vmem:[%s16391_s11 + $0x238] sm:$0xff]  }
 0x2d9   : > { %v12614_v12 = vadd.f32 %v16037_v50, %v11712_v37  ;;  %v11715_v45 = vadd.f32 %v11714_v44, %v11713_v17  ;;  %v8688_v4 = vrot.slane %v8686_v61, 1  ;;  %v9020_v17 = vshll.u32 %v16230_v49, 16  ;;  %v13459_v61 = vld [vmem:[%s16391_s11 + $0x1b8] sm:$0xff]  }
 0x2da   : > { %8580 = vmatmul.mubr.bf16.vlgmr.msra.gmra.mrb[168].mxu0 %v15992_v8  ;;  %12505 = vmatmul.mubr.bf16.vlgmr.msra.gmra.mrb[28].mxu1 %v8352_v35  ;;  %v13413_v8 = vld [vmem:[%s16391_s11 + $0xc8] sm:$0xff]   ;;  %v9042_v35 = vrot.slane %v11077_v51, 1  ;;  %v8699_v44 = vsel %vm1024_vm0, %v8696_v3, %v8698_v41 }
 0x2db   : > { %v12615_v1 = vadd.f32 %v12614_v12, %v16098_v36  ;;  %v12622_v50 = vadd.f32 %v16046_v6, %v11715_v45  ;;  %11993 = vmatpush3.bf16.msra.mxu0 %v13410_v29  ;;  %12509 = vmatpush3.bf16.msra.mxu1 %v13408_v30  ;;  %v8676_v6 = vor.u32 %v8675_v33, %v8671_v34  ;;  %v13419_v36 = vld [vmem:[%s16391_s11 + $0xd8] sm:$0xff]   ;;  %v9043_v29 = vrot.slane %v16242_v2, 1  ;;  %v13439_v45 = vld [vmem:[%s16391_s11 + $0x1c8] sm:$0xff]  }
 0x2dc   : > { %11994 = vmatprep.subr.bf16.mxu0 %v13411_v42  ;;  %12510 = vmatprep.subr.bf16.mxu1 %v13412_v24  ;;  %v13431_v30 = vld [vmem:[%s16391_s11 + $0xf8] sm:$0xff]   ;;  %v13438_v42 = vld [vmem:[%s16391_s11 + $0x180] sm:$0xff]   ;;  %v8689_v3 = vsel %vm998_vm1, %v8684_v46, %v8688_v4 }
 0x2dd   : > { %10600 = vst [vmem:[%s14679_s19 + $0x90] sm:$0xff] %v12615_v1  ;;  %v12623_v39 = vadd.f32 %v12622_v50, %v16105_v57  ;;  %8587 = vmatprep.mubr.bf16.mxu0 %v8342_v14  ;;  %12524 = vmatprep.mubr.bf16.mxu1 %v8697_v25  ;;  %v8681_v54 = vsel %vm998_vm1, %v8676_v6, %v16170_v43  ;;  %v13440_v14 = vld [vmem:[%s16391_s11 + $0x208] sm:$0xff]   ;;  %v9022_v25 = vrot.slane %v9020_v17, 1  ;;  %v9025_v1 = vshll.u32 %v16242_v2, 16  ;;  %v13444_v6 = vld [vmem:[%s16391_s11 + $0x190] sm:$0xff]   ;;  %v13445_v43 = vld [vmem:[%s16391_s11 + $0x1d8] sm:$0xff]  }
 0x2de   : > { %v9044_v50 = vsel %vm1024_vm0, %v9042_v35, %v9043_v29 }
 0x2df   : > { %10601 = vst [vmem:[%s14679_s19 + $0x98] sm:$0xff] %v12623_v39  ;;  %11995 = vmatpush3.bf16.msra.mxu0 %v13413_v8  ;;  %12511 = vmatpush3.bf16.msra.mxu1 %v13412_v24  ;;  %v13441_v8 = vld [vmem:[%s16391_s11 + $0x188] sm:$0xff]   ;;  %v9027_v39 = vrot.slane %v9025_v1, 1 }
 0x2e0   : > { %11996 = vmatprep.subr.bf16.mxu0 %v13414_v40  ;;  %12512 = vmatprep.subr.bf16.mxu1 %v13415_v63  ;;  %v13443_v40 = vld [vmem:[%s16391_s11 + $0x210] sm:$0xff]  }
 0x2e2   : > { %8588 = vmatmul.mubr.bf16.gmra.mrb[172].mxu0 %v16011_v13  ;;  %v13422_v13 = vld [vmem:[%s16391_s11 + $0xe0] sm:$0xff]  }
 0x2e3   : > { %11997 = vmatpush3.bf16.msra.mxu0 %v13416_v58  ;;  %12513 = vmatpush3.bf16.msra.mxu1 %v13415_v63  ;;  %v9023_v63 = vor.u32 %v9022_v25, %v9018_v32  ;;  %v13446_v58 = vld [vmem:[%s16391_s11 + $0x218] sm:$0xff]  }
 0x2e4   : > { %11998 = vmatprep.subr.bf16.mxu0 %v13417_v15  ;;  %12514 = vmatprep.subr.bf16.mxu1 %v13418_v47 }
 0x2e5   : > { %8926 = vmatprep.mubr.bf16.mxu0 %v8681_v54  ;;  %v9028_v15 = vsel %vm998_vm1, %v9023_v63, %v9027_v39  ;;  %v13448_v54 = vld [vmem:[%s16391_s11 + $0x1e0] sm:$0xff]  }
 0x2e7   : > { %11999 = vmatpush3.bf16.msra.mxu0 %v13419_v36  ;;  %12515 = vmatpush3.bf16.msra.mxu1 %v13418_v47  ;;  %v13447_v47 = vld [vmem:[%s16391_s11 + $0x198] sm:$0xff]   ;;  %v13449_v36 = vld [vmem:[%s16391_s11 + $0x220] sm:$0xff]  }
 0x2e8   : > { %12000 = vmatprep.subr.bf16.mxu0 %v13420_v55  ;;  %12516 = vmatprep.subr.bf16.mxu1 %v13421_v38  ;;  %v13451_v55 = vld [vmem:[%s16391_s11 + $0x1e8] sm:$0xff]  }
 0x2eb   : > { %12001 = vmatpush3.bf16.msra.mxu0 %v13422_v13  ;;  %12517 = vmatpush3.bf16.msra.mxu1 %v13421_v38  ;;  %v13452_v38 = vld [vmem:[%s16391_s11 + $0x228] sm:$0xff]  }
 0x2ec   : > { %12002 = vmatprep.subr.bf16.mxu0 %v13423_v31  ;;  %12518 = vmatprep.subr.bf16.mxu1 %v13424_v56  ;;  %v13453_v13 = vld [vmem:[%s16391_s11 + $0x1a8] sm:$0xff]   ;;  %v13454_v31 = vld [vmem:[%s16391_s11 + $0x1f0] sm:$0xff]  }
 0x2ed   : > { %v11742_v57 = vpop.f32.mrb[120].mxu0 }
 0x2ee   : > { %v11743_v18 = vpop.f32.mrb[121].mxu0 }
 0x2ef   : > { %v16214_v9 = vadd.f32 %v11743_v18, %v11742_v57  ;;  %v11745_v52 = vpop.f32.mrb[122].mxu0  ;;  %12003 = vmatpush3.bf16.msra.mxu0 %v13425_v53  ;;  %12519 = vmatpush3.bf16.msra.mxu1 %v13424_v56  ;;  %v13455_v56 = vld [vmem:[%s16391_s11 + $0x230] sm:$0xff]  }
 0x2f0   : > { %v11746_v16 = vpop.f32.mrb[123].mxu0  ;;  %12004 = vmatprep.subr.bf16.mxu0 %v13426_v48  ;;  %12520 = vmatprep.subr.bf16.mxu1 %v13427_v20 }
 0x2f1   : > { %v16227_v26 = vadd.f32 %v11746_v16, %v11745_v52  ;;  %v12632_v57 = vadd.f32 %v16033_v10, %v16214_v9  ;;  %v9029_v9 = vshrl.u32 %v16242_v2, 16 }
 0x2f3   : > { %12005 = vmatpush3.bf16.msra.mxu0 %v13428_v5  ;;  %12521 = vmatpush3.bf16.msra.mxu1 %v13427_v20  ;;  %v13463_v20 = vld [vmem:[%s16008_s27 + $0x10] ss:$0 sps:$4 sm:$0x11]   ;;  %v13457_v5 = vld [vmem:[%s16391_s11 + $0x1f8] sm:$0xff]   ;;  %v12640_v16 = vadd.f32 %v16033_v10, %v16227_v26 }
 0x2f4   : > { %12006 = vmatprep.subr.bf16.mxu0 %v13429_v7  ;;  %12522 = vmatprep.subr.bf16.mxu1 %v13430_v28  ;;  %v9033_v62 = vshll.u32 %v13463_v20, 16  ;;  %v9045_v51 = vrot.slane %v13463_v20, 1 }
 0x2f5   : > { %v11748_v11 = vpop.f32.mrb[124].mxu0 }
 0x2f6   : > { %v11749_v37 = vpop.f32.mrb[125].mxu0  ;;  %v9035_v41 = vrot.slane %v9033_v62, 1 }
 0x2f7   : > { %12007 = vmatpush3.bf16.msra.mxu0 %v13431_v30  ;;  %12523 = vmatpush3.bf16.msra.mxu1 %v13430_v28  ;;  %v16253_v24 = vadd.f32 %v11749_v37, %v11748_v11  ;;  %v11751_v12 = vpop.f32.mrb[126].mxu0  ;;  %v9031_v30 = vor.u32 %v9029_v9, %v9027_v39  ;;  %v9046_v11 = vsel %vm1024_vm0, %v9043_v29, %v9045_v51 }
 0x2f8   : > { %12030 = vmatprep.subr.bf16.mxu0 %v13435_v21  ;;  %12528 = vmatprep.subr.bf16.mxu1 %v13436_v23  ;;  %v11752_v34 = vpop.f32.mrb[127].mxu0 }
 0x2f9   : > { %v16262_v33 = vadd.f32 %v11752_v34, %v11751_v12  ;;  %v12628_v46 = vadd.f32 %v16033_v10, %v16253_v24  ;;  %v9036_v17 = vsel %vm998_vm1, %v9031_v30, %v9035_v41 }
 0x2fa   : > { %8927 = vmatmul.mubr.bf16.vlgmr.msra.gmra.mrb[176].mxu0 %v16117_v22  ;;  %12525 = vmatmul.mubr.bf16.vlgmr.msra.gmra.mrb[28].mxu1 %v8699_v44  ;;  %v13442_v22 = vld [vmem:[%s16391_s11 + $0x1d0] sm:$0xff]  }
 0x2fb   : > { %12031 = vmatpush3.bf16.msra.mxu0 %v13438_v42  ;;  %12529 = vmatpush3.bf16.msra.mxu1 %v13436_v23  ;;  %v12636_v35 = vadd.f32 %v16033_v10, %v16262_v33 }
 0x2fc   : > { %12032 = vmatprep.subr.bf16.mxu0 %v13439_v45  ;;  %12530 = vmatprep.subr.bf16.mxu1 %v13440_v14 }
 0x2fd   : > { %8934 = vmatprep.mubr.bf16.mxu0 %v8689_v3  ;;  %12544 = vmatprep.mubr.bf16.mxu1 %v9044_v50 }
 0x2ff   : > { %12033 = vmatpush3.bf16.msra.mxu0 %v13441_v8  ;;  %12531 = vmatpush3.bf16.msra.mxu1 %v13440_v14 }
 0x300   : > { %12034 = vmatprep.subr.bf16.mxu0 %v13442_v22  ;;  %12532 = vmatprep.subr.bf16.mxu1 %v13443_v40 }
 0x302   : > { %8935 = vmatmul.mubr.bf16.gmra.mrb[180].mxu0 %v16130_v0  ;;  %v13450_v0 = vld [vmem:[%s16391_s11 + $0x1a0] sm:$0xff]  }
 0x303   : > { %12035 = vmatpush3.bf16.msra.mxu0 %v13444_v6  ;;  %12533 = vmatpush3.bf16.msra.mxu1 %v13443_v40 }
 0x304   : > { %12036 = vmatprep.subr.bf16.mxu0 %v13445_v43  ;;  %12534 = vmatprep.subr.bf16.mxu1 %v13446_v58 }
 0x305   : > { %9273 = vmatprep.mubr.bf16.mxu0 %v9028_v15 }
 0x307   : > { %12037 = vmatpush3.bf16.msra.mxu0 %v13447_v47  ;;  %12535 = vmatpush3.bf16.msra.mxu1 %v13446_v58 }
 0x308   : > { %12038 = vmatprep.subr.bf16.mxu0 %v13448_v54  ;;  %12536 = vmatprep.subr.bf16.mxu1 %v13449_v36 }
 0x30b   : > { %12039 = vmatpush3.bf16.msra.mxu0 %v13450_v0  ;;  %12537 = vmatpush3.bf16.msra.mxu1 %v13449_v36 }
 0x30c   : > { %12040 = vmatprep.subr.bf16.mxu0 %v13451_v55  ;;  %12538 = vmatprep.subr.bf16.mxu1 %v13452_v38 }
 0x30d   : > { %v11780_v53 = vpop.f32.mrb[128].mxu0 }
 0x30e   : > { %v11781_v48 = vpop.f32.mrb[129].mxu0 }
 0x30f   : > { %v11782_v18 = vadd.f32 %v11781_v48, %v11780_v53  ;;  %v11783_v60 = vpop.f32.mrb[130].mxu0  ;;  %12041 = vmatpush3.bf16.msra.mxu0 %v13453_v13  ;;  %12539 = vmatpush3.bf16.msra.mxu1 %v13452_v38 }
 0x310   : > { %v11784_v52 = vpop.f32.mrb[131].mxu0  ;;  %12042 = vmatprep.subr.bf16.mxu0 %v13454_v31  ;;  %12540 = vmatprep.subr.bf16.mxu1 %v13455_v56 }
 0x311   : > { %v12633_v7 = vadd.f32 %v12632_v57, %v11782_v18  ;;  %v11785_v28 = vadd.f32 %v11784_v52, %v11783_v60 }
 0x313   : > { %v12641_v27 = vadd.f32 %v12640_v16, %v11785_v28  ;;  %12043 = vmatpush3.bf16.msra.mxu0 %v13456_v19  ;;  %12541 = vmatpush3.bf16.msra.mxu1 %v13455_v56 }
 0x314   : > { %12044 = vmatprep.subr.bf16.mxu0 %v13457_v5  ;;  %12542 = vmatprep.subr.bf16.mxu1 %v13458_v59 }
 0x315   : > { %v11786_v21 = vpop.f32.mrb[132].mxu0 }
 0x316   : > { %v11787_v23 = vpop.f32.mrb[133].mxu0 }
 0x317   : > { %v11788_v26 = vadd.f32 %v11787_v23, %v11786_v21  ;;  %v11789_v4 = vpop.f32.mrb[134].mxu0  ;;  %12045 = vmatpush3.bf16.msra.mxu0 %v13459_v61  ;;  %12543 = vmatpush3.bf16.msra.mxu1 %v13458_v59 }
 0x318   : > { %v11790_v37 = vpop.f32.mrb[135].mxu0 }
 0x319   : > { %v12629_v44 = vadd.f32 %v12628_v46, %v11788_v26  ;;  %v11791_v42 = vadd.f32 %v11790_v37, %v11789_v4 }
 0x31a   : > { %9274 = vmatmul.mubr.bf16.vlgmr.msra.gmra.mrb[184].mxu0 %v16230_v49  ;;  %12545 = vmatmul.mubr.bf16.vlgmr.msra.gmra.mrb[28].mxu1 %v9046_v11 }
 0x31b   : > { %v12637_v24 = vadd.f32 %v12636_v35, %v11791_v42  ;;  %9281 = vmatprep.mubr.bf16.mxu0 %v9036_v17 }
 0x322   : > { %9282 = vmatmul.mubr.bf16.gmra.mrb[188].mxu0 %v16242_v2 }
 0x32d   : > { %v11818_v12 = vpop.f32.mrb[136].mxu0  ;;  %v12426_v45 = vpop.f32.mrb[20].mxu1 }
 0x32e   : > { %v11819_v29 = vpop.f32.mrb[137].mxu0  ;;  %v7232_v14 = vpop.f32.mrb[21].mxu1 }
 0x32f   : > { %v11820_v34 = vadd.f32 %v11819_v29, %v11818_v12  ;;  %v11821_v3 = vpop.f32.mrb[138].mxu0  ;;  %v12427_v32 = vpop.f32.mrb[22].mxu1 }
 0x330   : > { %v11822_v25 = vpop.f32.mrb[139].mxu0  ;;  %v7235_v33 = vpop.f32.mrb[23].mxu1 }
 0x331   : > { %v12634_v1 = vadd.f32 %v12633_v7, %v11820_v34  ;;  %v11823_v50 = vadd.f32 %v11822_v25, %v11821_v3 }
 0x333   : > { %v12635_v49 = vadd.f32 %v12634_v1, %v7232_v14  ;;  %v12642_v8 = vadd.f32 %v12641_v27, %v11823_v50 }
 0x335   : > { %10782 = vst [vmem:[%s14679_s19 + $0xa0] sm:$0xff] %v12635_v49  ;;  %v12643_v22 = vadd.f32 %v12642_v8, %v7235_v33  ;;  %v11824_v40 = vpop.f32.mrb[140].mxu0 }
 0x336   : > { %v11825_v2 = vpop.f32.mrb[141].mxu0 }
 0x337   : > { %10783 = vst [vmem:[%s14679_s19 + $0xa8] sm:$0xff] %v12643_v22  ;;  %v11826_v63 = vadd.f32 %v11825_v2, %v11824_v40  ;;  %v11827_v39 = vpop.f32.mrb[142].mxu0 }
 0x338   : > { %v11828_v6 = vpop.f32.mrb[143].mxu0 }
 0x339   : > { %v12630_v43 = vadd.f32 %v12629_v44, %v11826_v63  ;;  %v11829_v58 = vadd.f32 %v11828_v6, %v11827_v39 }
 0x33b   : > { %v12631_v15 = vadd.f32 %v12630_v43, %v12426_v45  ;;  %v12638_v47 = vadd.f32 %v12637_v24, %v11829_v58 }
 0x33d   : > { %10784 = vst [vmem:[%s14679_s19 + $0xb0] sm:$0xff] %v12631_v15  ;;  %v12639_v54 = vadd.f32 %v12638_v47, %v12427_v32 }
 0x33f   : > { %10785 = vst [vmem:[%s14679_s19 + $0xb8] sm:$0xff] %v12639_v54 }
 0x34d   : > { %v11856_v36 = vpop.f32.mrb[144].mxu0 }
 0x34e   : > { %v11857_v0 = vpop.f32.mrb[145].mxu0 }
 0x34f   : > { %v11858_v55 = vadd.f32 %v11857_v0, %v11856_v36  ;;  %v11859_v38 = vpop.f32.mrb[146].mxu0 }
 0x350   : > { %v11860_v13 = vpop.f32.mrb[147].mxu0 }
 0x351   : > { %v11861_v31 = vadd.f32 %v11860_v13, %v11859_v38  ;;  %v12648_v52 = vadd.f32 %v16033_v10, %v11858_v55 }
 0x353   : > { %v12656_v62 = vadd.f32 %v16033_v10, %v11861_v31 }
 0x355   : > { %v11862_v56 = vpop.f32.mrb[148].mxu0 }
 0x356   : > { %v11863_v53 = vpop.f32.mrb[149].mxu0 }
 0x357   : > { %v11864_v48 = vadd.f32 %v11863_v53, %v11862_v56  ;;  %v11865_v20 = vpop.f32.mrb[150].mxu0 }
 0x358   : > { %v11866_v57 = vpop.f32.mrb[151].mxu0 }
 0x359   : > { %v11867_v18 = vadd.f32 %v11866_v57, %v11865_v20  ;;  %v12644_v51 = vadd.f32 %v16033_v10, %v11864_v48 }
 0x35b   : > { %v12652_v23 = vadd.f32 %v16033_v10, %v11867_v18 }
 0x36d   : > { %v11894_v60 = vpop.f32.mrb[152].mxu0 }
 0x36e   : > { %v11895_v19 = vpop.f32.mrb[153].mxu0 }
 0x36f   : > { %v11896_v5 = vadd.f32 %v11895_v19, %v11894_v60  ;;  %v11897_v59 = vpop.f32.mrb[154].mxu0 }
 0x370   : > { %v11898_v9 = vpop.f32.mrb[155].mxu0 }
 0x371   : > { %v12649_v16 = vadd.f32 %v12648_v52, %v11896_v5  ;;  %v11899_v7 = vadd.f32 %v11898_v9, %v11897_v59 }
 0x373   : > { %v12657_v28 = vadd.f32 %v12656_v62, %v11899_v7 }
 0x375   : > { %v11900_v27 = vpop.f32.mrb[156].mxu0 }
 0x376   : > { %v11901_v61 = vpop.f32.mrb[157].mxu0 }
 0x377   : > { %v11902_v30 = vadd.f32 %v11901_v61, %v11900_v27  ;;  %v11903_v41 = vpop.f32.mrb[158].mxu0 }
 0x378   : > { %v11904_v21 = vpop.f32.mrb[159].mxu0 }
 0x379   : > { %v12645_v46 = vadd.f32 %v12644_v51, %v11902_v30  ;;  %v11905_v26 = vadd.f32 %v11904_v21, %v11903_v41 }
 0x37b   : > { %v12653_v4 = vadd.f32 %v12652_v23, %v11905_v26 }
 0x38d   : > { %v11932_v11 = vpop.f32.mrb[160].mxu0  ;;  %v12486_v37 = vpop.f32.mrb[24].mxu1 }
 0x38e   : > { %v11933_v17 = vpop.f32.mrb[161].mxu0  ;;  %v8278_v35 = vpop.f32.mrb[25].mxu1 }
 0x38f   : > { %v11934_v44 = vadd.f32 %v11933_v17, %v11932_v11  ;;  %v11935_v42 = vpop.f32.mrb[162].mxu0  ;;  %v12487_v24 = vpop.f32.mrb[26].mxu1 }
 0x390   : > { %v11936_v12 = vpop.f32.mrb[163].mxu0  ;;  %v8281_v45 = vpop.f32.mrb[27].mxu1 }
 0x391   : > { %v12650_v29 = vadd.f32 %v12649_v16, %v11934_v44  ;;  %v11937_v14 = vadd.f32 %v11936_v12, %v11935_v42 }
 0x393   : > { %v12651_v34 = vadd.f32 %v12650_v29, %v8278_v35  ;;  %v12658_v3 = vadd.f32 %v12657_v28, %v11937_v14 }
 0x395   : > { %10966 = vst [vmem:[%s14679_s19 + $0xc0] sm:$0xff] %v12651_v34  ;;  %v12659_v32 = vadd.f32 %v12658_v3, %v8281_v45  ;;  %v11938_v25 = vpop.f32.mrb[164].mxu0 }
 0x396   : > { %v11939_v33 = vpop.f32.mrb[165].mxu0 }
 0x397   : > { %10967 = vst [vmem:[%s14679_s19 + $0xc8] sm:$0xff] %v12659_v32  ;;  %v11940_v1 = vadd.f32 %v11939_v33, %v11938_v25  ;;  %v11941_v50 = vpop.f32.mrb[166].mxu0 }
 0x398   : > { %v11942_v49 = vpop.f32.mrb[167].mxu0 }
 0x399   : > { %v12646_v8 = vadd.f32 %v12645_v46, %v11940_v1  ;;  %v11943_v22 = vadd.f32 %v11942_v49, %v11941_v50 }
 0x39b   : > { %v12647_v40 = vadd.f32 %v12646_v8, %v12486_v37  ;;  %v12654_v2 = vadd.f32 %v12653_v4, %v11943_v22 }
 0x39d   : > { %10968 = vst [vmem:[%s14679_s19 + $0xd0] sm:$0xff] %v12647_v40  ;;  %v12655_v63 = vadd.f32 %v12654_v2, %v12487_v24 }
 0x39f   : > { %10969 = vst [vmem:[%s14679_s19 + $0xd8] sm:$0xff] %v12655_v63 }
 0x3ad   : > { %v11970_v39 = vpop.f32.mrb[168].mxu0 }
 0x3ae   : > { %v11971_v6 = vpop.f32.mrb[169].mxu0 }
 0x3af   : > { %v11972_v43 = vadd.f32 %v11971_v6, %v11970_v39  ;;  %v11973_v58 = vpop.f32.mrb[170].mxu0 }
 0x3b0   : > { %v11974_v15 = vpop.f32.mrb[171].mxu0 }
 0x3b1   : > { %v11975_v47 = vadd.f32 %v11974_v15, %v11973_v58  ;;  %v12664_v53 = vadd.f32 %v16033_v10, %v11972_v43 }
 0x3b3   : > { %v12672_v18 = vadd.f32 %v16033_v10, %v11975_v47 }
 0x3b5   : > { %v11976_v54 = vpop.f32.mrb[172].mxu0 }
 0x3b6   : > { %v11977_v36 = vpop.f32.mrb[173].mxu0 }
 0x3b7   : > { %v11978_v0 = vadd.f32 %v11977_v36, %v11976_v54  ;;  %v11979_v55 = vpop.f32.mrb[174].mxu0 }
 0x3b8   : > { %v11980_v38 = vpop.f32.mrb[175].mxu0 }
 0x3b9   : > { %v11981_v13 = vadd.f32 %v11980_v38, %v11979_v55  ;;  %v12660_v9 = vadd.f32 %v16033_v10, %v11978_v0 }
 0x3bb   : > { %v12668_v28 = vadd.f32 %v16033_v10, %v11981_v13 }
 0x3cd   : > { %v12008_v31 = vpop.f32.mrb[176].mxu0 }
 0x3ce   : > { %v12009_v56 = vpop.f32.mrb[177].mxu0 }
 0x3cf   : > { %v12010_v48 = vadd.f32 %v12009_v56, %v12008_v31  ;;  %v12011_v20 = vpop.f32.mrb[178].mxu0 }
 0x3d0   : > { %v12012_v57 = vpop.f32.mrb[179].mxu0 }
 0x3d1   : > { %v12665_v60 = vadd.f32 %v12664_v53, %v12010_v48  ;;  %v12013_v19 = vadd.f32 %v12012_v57, %v12011_v20 }
 0x3d3   : > { %v12673_v52 = vadd.f32 %v12672_v18, %v12013_v19 }
 0x3d5   : > { %v12014_v5 = vpop.f32.mrb[180].mxu0 }
 0x3d6   : > { %v12015_v59 = vpop.f32.mrb[181].mxu0 }
 0x3d7   : > { %v12016_v62 = vadd.f32 %v12015_v59, %v12014_v5  ;;  %v12017_v16 = vpop.f32.mrb[182].mxu0 }
 0x3d8   : > { %v12018_v7 = vpop.f32.mrb[183].mxu0 }
 0x3d9   : > { %v12661_v27 = vadd.f32 %v12660_v9, %v12016_v62  ;;  %v12019_v61 = vadd.f32 %v12018_v7, %v12017_v16 }
 0x3db   : > { %v12669_v51 = vadd.f32 %v12668_v28, %v12019_v61 }
 0x3ed   : > { %v12046_v30 = vpop.f32.mrb[184].mxu0  ;;  %v12546_v41 = vpop.f32.mrb[28].mxu1 }
 0x3ee   : > { %v12047_v21 = vpop.f32.mrb[185].mxu0  ;;  %v9324_v23 = vpop.f32.mrb[29].mxu1 }
 0x3ef   : > { %v12048_v46 = vadd.f32 %v12047_v21, %v12046_v30  ;;  %v12049_v26 = vpop.f32.mrb[186].mxu0  ;;  %v12547_v4 = vpop.f32.mrb[30].mxu1 }
 0x3f0   : > { %v12050_v11 = vpop.f32.mrb[187].mxu0  ;;  %v9327_v37 = vpop.f32.mrb[31].mxu1 }
 0x3f1   : > { %v12666_v17 = vadd.f32 %v12665_v60, %v12048_v46  ;;  %v12051_v35 = vadd.f32 %v12050_v11, %v12049_v26 }
 0x3f3   : > { %v12667_v44 = vadd.f32 %v12666_v17, %v9324_v23  ;;  %v12674_v10 = vadd.f32 %v12673_v52, %v12051_v35 }
 0x3f5   : > { %11150 = vst [vmem:[%s14679_s19 + $0xe0] sm:$0xff] %v12667_v44  ;;  %v12675_v42 = vadd.f32 %v12674_v10, %v9327_v37  ;;  %v12052_v24 = vpop.f32.mrb[188].mxu0 }
 0x3f6   : > { %v12053_v12 = vpop.f32.mrb[189].mxu0 }
 0x3f7   : > { %11151 = vst [vmem:[%s14679_s19 + $0xe8] sm:$0xff] %v12675_v42  ;;  %v12054_v45 = vadd.f32 %v12053_v12, %v12052_v24  ;;  %v12055_v29 = vpop.f32.mrb[190].mxu0 }
 0x3f8   : > { %v12056_v14 = vpop.f32.mrb[191].mxu0 }
 0x3f9   : > { %v12662_v34 = vadd.f32 %v12661_v27, %v12054_v45  ;;  %v12057_v3 = vadd.f32 %v12056_v14, %v12055_v29 }
 0x3fb   : > { %v12663_v32 = vadd.f32 %v12662_v34, %v12546_v41  ;;  %v12670_v25 = vadd.f32 %v12669_v51, %v12057_v3 }
 0x3fd   : > { %11152 = vst [vmem:[%s14679_s19 + $0xf0] sm:$0xff] %v12663_v32  ;;  %v12671_v33 = vadd.f32 %v12670_v25, %v12547_v4 }
 0x3ff   : > { %11153 = vst [vmem:[%s14679_s19 + $0xf8] sm:$0xff] %v12671_v33 }
 0x400 PF: > { %s29_s16 = sadd.s32 1, %s13520_s16   ;;  %s16400_s2 = sld [smem:[#allocation5_spill]] }
 0x401   : > { %p26_p8 = scmp.ge.s32.totalorder %s29_s16, 10   ;;  %s16401_s21 = sld [smem:[#allocation6_spill]] }
 0x402   : > { %s16402_s30 = smov %s13512_s15  ;;  %s16403_s14 = smov %s13516_s0 }
 0x403   :  { %28 = sbr.rel (!%p26_p8) target bundleno = 19 (0x13), region = 134 }
 0x406   : > { %s16404_s15 = smov %s16400_s2 }
 0x407   : > { %s16405_s0 = smov %s16401_s21 }

</bundles_post_ra>
